<compile_context>
chip_gen: v5e
topology: v5e:2x2
jax: 0.10.0
libtpu: 0.0.40
codegen_flags: <defaults>
</compile_context>

<pallas_src>
import math

import jax
import jax.numpy as jnp
from jax import lax
from jax.experimental import pallas as pl
from jax.experimental.pallas import tpu as pltpu

NEG = -1.0e30          # python float literals only -> never captured as jnp constants
MASK_ADD = -10000.0


# ---------------------------------------------------------------------------
# Fused kernel: [masked max-pool init + mask prep @ layer 0] + cross-attn layer l
# ---------------------------------------------------------------------------
def _make_fused_encoder_kernel(num_heads, head_dim, pool_chunk, seq_len):
    scale = 1.0 / math.sqrt(head_dim)
    inv_sqrt2 = 1.0 / math.sqrt(2.0)
    n_chunks = seq_len // pool_chunk

    def layer_norm(x, g, b, eps=1e-12):
        mu = jnp.mean(x, axis=-1, keepdims=True)
        var = jnp.mean((x - mu) ** 2, axis=-1, keepdims=True)
        return (x - mu) * lax.rsqrt(var + eps) * g + b

    def kernel(init_mT_ref, attn_m_ref, hs_ref,
               wq_ref, bq_ref, wkv_ref, bkv_ref, wo_ref, bo_ref,
               g1_ref, be1_ref, wi_ref, bi_ref, wf_ref, bf_ref,
               g2_ref, be2_ref,
               out_ref,
               addmask_ref, ctx_ref):
        l = pl.program_id(1)
        kv = hs_ref[...]                         # (Bb, S, H) bf16 : this layer's K/V tokens
        Bb, S, H = kv.shape
        I = out_ref.shape[1]
        NH, DH = num_heads, head_dim
        CS = pool_chunk

        # ---- layer step 0 only: additive attn mask + SequencePooling(mode='max') ----
        @pl.when(l == 0)
        def _init():
            # additive attention mask, computed once, persists in VMEM across layers
            addmask_ref[...] = attn_m_ref[...].astype(jnp.float32) * MASK_ADD

            def pool_chunk_max(s0):
                h_c = hs_ref[:, pl.ds(s0, CS), :].astype(jnp.float32)             # (Bb,CS,H)
                m_c = init_mT_ref[:, pl.ds(s0, CS), :].astype(jnp.float32) * NEG  # (Bb,CS,I)
                return jnp.max(h_c[:, :, None, :] + m_c[:, :, :, None], axis=1)  # (Bb,I,H)

            acc = pool_chunk_max(0)
            if n_chunks > 1:
                def body(c, a):
                    s0 = pl.multiple_of(c * CS, CS)
                    return jnp.maximum(a, pool_chunk_max(s0))
                acc = lax.fori_loop(1, n_chunks, body, acc)
            out_ref[...] = acc

        # ---- cross-attention BERT layer l (Q = carried query, K/V = all_hs[l]) -----
        q3 = out_ref[...]                                       # (Bb, I, H) f32 (carried)
        q2 = q3.reshape(Bb * I, H)
        q2b = q2.astype(jnp.bfloat16)
        kv2 = kv.reshape(Bb * S, H)                             # bf16

        # full-width projections (bf16 MXU inputs, f32 accumulation, bf16 right away)
        qp = (jnp.dot(q2b, wq_ref[...], preferred_element_type=jnp.float32)
              + bq_ref[...]).astype(jnp.bfloat16)               # (Bb*I, H)
        kvp = (jnp.dot(kv2, wkv_ref[...], preferred_element_type=jnp.float32)
               + bkv_ref[...]).astype(jnp.bfloat16)             # (Bb*S, 2H)

        add_mask = addmask_ref[...]                             # (Bb, I, S) f32

        for h in range(NH):
            lo, hi = h * DH, (h + 1) * DH
            qh = qp[:, lo:hi].reshape(Bb, I, DH)
            kh = kvp[:, lo:hi].reshape(Bb, S, DH)
            vh = kvp[:, H + lo:H + hi].reshape(Bb, S, DH)
            sc = jnp.einsum('bid,bsd->bis', qh, kh,
                            preferred_element_type=jnp.float32) * scale + add_mask
            m = jnp.max(sc, axis=-1, keepdims=True)
            e = jnp.exp(sc - m)
            p = (e / jnp.sum(e, axis=-1, keepdims=True)).astype(jnp.bfloat16)
            ctx_h = jnp.einsum('bis,bsd->bid', p, vh,
                               preferred_element_type=jnp.float32)
            ctx_ref[:, lo:hi] = ctx_h.reshape(Bb * I, DH)       # assemble heads in scratch

        ctx = ctx_ref[...].astype(jnp.bfloat16)                 # (Bb*I, H)

        # BertSelfOutput: dense + residual + LayerNorm
        attn_out = jnp.dot(ctx, wo_ref[...],
                           preferred_element_type=jnp.float32) + bo_ref[...]
        h1 = layer_norm(attn_out + q2, g1_ref[...], be1_ref[...])

        # BertIntermediate: dense + exact GELU ; BertOutput: dense + residual + LayerNorm
        inter = jnp.dot(h1.astype(jnp.bfloat16), wi_ref[...],
                        preferred_element_type=jnp.float32) + bi_ref[...]
        inter = 0.5 * inter * (1.0 + lax.erf(inter * inv_sqrt2))
        ffn = jnp.dot(inter.astype(jnp.bfloat16), wf_ref[...],
                      preferred_element_type=jnp.float32) + bf_ref[...]
        out_ref[...] = layer_norm(ffn + h1, g2_ref[...], be2_ref[...]).reshape(Bb, I, H)

    return kernel


# ---------------------------------------------------------------------------
# Tiling / VMEM budget selection (generation-aware via get_tpu_info)
# ---------------------------------------------------------------------------
def _divisors(n):
    return [d for d in range(1, n + 1) if n % d == 0]


def _choose_tiling(B, I_pad, S, H, F):
    try:
        info = pltpu.get_tpu_info()
        vmem_cap = int(getattr(info, "vmem_capacity_bytes", 64 * 1024 * 1024))
    except Exception:
        vmem_cap = 64 * 1024 * 1024                 # v7x-safe fallback
    budget = int(vmem_cap * 0.8)

    # per-layer weights (double-buffered bf16) + biases / LN params (f32)
    w_bytes = 2 * ((4 * H * H + 2 * H * F) * 2 + (8 * H + F) * 4)

    def est(bb):
        io = (2 * bb * S * H * 2                    # hs block (double-buffered, bf16)
              + 2 * bb * I_pad * S                  # attn mask (int8)
              + 2 * bb * S * I_pad                  # transposed init mask (int8)
              + bb * I_pad * H * 4)                 # carried output block (f32)
        scratch = bb * I_pad * S * 4 + bb * I_pad * H * 4
        temps = (bb * S * 2 * H * 2                 # kvp bf16
                 + bb * I_pad * F * 4               # FFN intermediate f32
                 + 4 * bb * I_pad * H * 4           # q / h1 / ffn / pool temporaries
                 + bb * I_pad * S * 4               # one head's f32 scores
                 + (2 << 20))                       # bounded 4-D pooling temp
        return w_bytes + io + scratch + temps

    fitting = [d for d in _divisors(B) if est(d) <= budget] or [1]
    bb = max(fitting)                               # maximize MXU M, minimize weight re-DMA
    # v7x megacore: if a smaller block already fills the MXU (M >= 256) and leaves >= 2
    # batch blocks, prefer it so the "parallel" batch axis can be split across cores.
    for d in sorted(fitting):
        if d * I_pad >= 256 and B // d >= 2:
            bb = d
            break

    vmem_limit = int(min(vmem_cap, max(est(bb) + (8 << 20), 32 << 20)))

    # pooling chunk: largest divisor of S whose 4-D broadcast temp stays <= ~2 MiB
    cs = 1
    for d in _divisors(S):
        if bb * d * I_pad * H * 4 <= (2 << 20):
            cs = d
    return bb, vmem_limit, cs


# ---------------------------------------------------------------------------
# pallas_call wrapper: grid = (batch blocks, layers)
# ---------------------------------------------------------------------------
def _fused_query_encoder(hs_stacked, init_mask, attn_mask, pp, num_heads):
    L, B, S, H = hs_stacked.shape
    I = init_mask.shape[1]
    F = pp["wi"].shape[-1]
    assert H % num_heads == 0
    DH = H // num_heads

    # pad item axis to a multiple of 16 (bf16 sublane packing) with all-attend rows;
    # padded rows are finite garbage and are sliced off below.
    I_pad = -(-I // 16) * 16
    if I_pad != I:
        pad = ((0, 0), (0, I_pad - I), (0, 0))
        init_mask = jnp.pad(init_mask, pad, constant_values=False)
        attn_mask = jnp.pad(attn_mask, pad, constant_values=False)
    init_mask_T = jnp.transpose(init_mask, (0, 2, 1)).astype(jnp.int8)   # (B, S, I_pad)
    attn_mask_i8 = attn_mask.astype(jnp.int8)                            # (B, I_pad, S)

    Bb, vmem_limit, cs = _choose_tiling(B, I_pad, S, H, F)
    grid = (B // Bb, L)

    def wspec(shape):
        nd = len(shape)
        return pl.BlockSpec((None,) + shape, lambda b, l, _nd=nd: (l,) + (0,) * _nd)

    kernel = _make_fused_encoder_kernel(num_heads, DH, cs, S)
    out = pl.pallas_call(
        kernel,
        out_shape=jax.ShapeDtypeStruct((B, I_pad, H), jnp.float32),
        grid=grid,
        in_specs=[
            pl.BlockSpec((Bb, S, I_pad), lambda b, l: (b, 0, 0)),        # init mask^T (pool)
            pl.BlockSpec((Bb, I_pad, S), lambda b, l: (b, 0, 0)),        # attention mask
            pl.BlockSpec((None, Bb, S, H), lambda b, l: (l, b, 0, 0)),   # K/V hidden states
            wspec((H, H)), wspec((1, H)),            # wq, bq
            wspec((H, 2 * H)), wspec((1, 2 * H)),    # packed wk|wv, bk|bv
            wspec((H, H)), wspec((1, H)),            # wo, bo
            wspec((1, H)), wspec((1, H)),            # LN1 gamma / beta
            wspec((H, F)), wspec((1, F)),            # wi, bi
            wspec((F, H)), wspec((1, H)),            # wf, bf
            wspec((1, H)), wspec((1, H)),            # LN2 gamma / beta
        ],
        out_specs=pl.BlockSpec((Bb, I_pad, H), lambda b, l: (b, 0, 0)),
        scratch_shapes=[
            pltpu.VMEM((Bb, I_pad, S), jnp.float32),     # additive attention mask (persist)
            pltpu.VMEM((Bb * I_pad, H), jnp.float32),    # per-head context assembly
        ],
        compiler_params=pltpu.CompilerParams(
            dimension_semantics=("parallel", "arbitrary"),
            vmem_limit_bytes=vmem_limit),
    )(init_mask_T, attn_mask_i8, hs_stacked,
      pp["wq"], pp["bq"], pp["wkv"], pp["bkv"], pp["wo"], pp["bo"],
      pp["g1"], pp["be1"], pp["wi"], pp["bi"], pp["wf"], pp["bf"],
      pp["g2"], pp["be2"])
    return out[:, :I, :]


# ---------------------------------------------------------------------------
# MaskedSpanBertLikeEncoder forward (glue around the fused kernel)
# ---------------------------------------------------------------------------
def masked_span_bert_like_forward(all_hidden_states, ck2tok_mask, packed_params,
                                  num_layers, num_heads,
                                  ctx2tok_mask=None, pair2tok_mask=None):
    # accept either a list of (B,S,H) states or a pre-stacked (>=L, B, S, H) bf16 array
    # (avoids the per-call stack + cast HBM copy when the upstream encoder cooperates)
    if isinstance(all_hidden_states, (list, tuple)):
        all_hs = list(all_hidden_states)[-(num_layers + 1):]
        hs_stacked = jnp.stack(all_hs[:num_layers], axis=0)
    else:
        hs_stacked = all_hidden_states[-(num_layers + 1):][:num_layers]
    hs_stacked = hs_stacked.astype(jnp.bfloat16)                 # (L, B, S, H)
    _, B, S, H = hs_stacked.shape

    # (name, init_mask, attention_mask) for each aggregation pass
    passes = [("span_query_state", ck2tok_mask, ck2tok_mask)]
    if ctx2tok_mask is not None:
        ctx_init = ck2tok_mask if pair2tok_mask is None else pair2tok_mask
        passes.append(("ctx_query_state", ctx_init, ctx2tok_mask))

    names, inits, attns, zeros, sizes = [], [], [], [], []
    for name, im, am in passes:
        # rows with no poolable / attendable token -> unmask now, replace with
        # zero_context afterwards (matches the torch zero_indic path)
        zero_indic = jnp.logical_or(jnp.all(im, axis=-1), jnp.all(am, axis=-1))  # (B, I)
        im = jnp.where(zero_indic[..., None], False, im)
        am = jnp.where(zero_indic[..., None], False, am)
        names.append(name)
        inits.append(im)
        attns.append(am)
        zeros.append(zero_indic)
        sizes.append(im.shape[1])

    outs = {}
    if sum(sizes) == 0:
        for name in names:
            outs[name] = jnp.zeros((B, 0, H), jnp.float32)
        return outs

    # span and ctx passes share weights & hidden states: run them fused along the
    # item axis (halves weight HBM traffic, doubles the matmul M dimension).
    init_cat = jnp.concatenate(inits, axis=1)
    attn_cat = jnp.concatenate(attns, axis=1)
    out_cat = _fused_query_encoder(hs_stacked, init_cat, attn_cat,
                                   packed_params, num_heads)

    off = 0
    for name, zero_indic, sz in zip(names, zeros, sizes):
        q = out_cat[:, off:off + sz, :]
        q = jnp.where(zero_indic[..., None],
                      packed_params["zero_context"][None, None, :], q)
        outs[name] = q
        off += sz
    return outs


# ---------------------------------------------------------------------------
# Parameter construction & one-time packing (kernel layouts, bf16 weights)
# ---------------------------------------------------------------------------
def init_params(key, num_layers, H, F):
    def nrm(k, shp, scale=0.02):
        return scale * jax.random.normal(k, shp, dtype=jnp.float32)

    layers = []
    for l in range(num_layers):
        k = jax.random.split(jax.random.fold_in(key, l), 8)
        layers.append(dict(
            wq=nrm(k[0], (H, H)), bq=nrm(k[1], (H,)),
            wk=nrm(k[2], (H, H)), bk=jnp.zeros((H,), jnp.float32),
            wv=nrm(k[3], (H, H)), bv=jnp.zeros((H,), jnp.float32),
            wo=nrm(k[4], (H, H)), bo=jnp.zeros((H,), jnp.float32),
            g1=jnp.ones((H,), jnp.float32), be1=jnp.zeros((H,), jnp.float32),
            wi=nrm(k[5], (H, F)), bi=jnp.zeros((F,), jnp.float32),
            wf=nrm(k[6], (F, H)), bf=jnp.zeros((H,), jnp.float32),
            g2=jnp.ones((H,), jnp.float32), be2=jnp.zeros((H,), jnp.float32),
        ))
    zero_context = jax.random.normal(jax.random.fold_in(key, 10**6), (H,),
                                     dtype=jnp.float32)
    return dict(layers=layers, zero_context=zero_context)


def pack_params(params):
    """Stack per-layer weights along a leading layer axis, pack K|V, cast matmul
    weights to bf16.  Called ONCE; results reused by every forward call."""
    layers = params["layers"]
    L = len(layers)

    def stk(name):
        return jnp.stack([layers[l][name] for l in range(L)], axis=0)

    def vec(name):
        return stk(name)[:, None, :]                     # (L, 1, *)

    return dict(
        wq=stk("wq").astype(jnp.bfloat16),                                            # (L,H,H)
        wkv=jnp.concatenate([stk("wk"), stk("wv")], axis=-1).astype(jnp.bfloat16),    # (L,H,2H)
        wo=stk("wo").astype(jnp.bfloat16),                                            # (L,H,H)
        wi=stk("wi").astype(jnp.bfloat16),                                            # (L,H,F)
        wf=stk("wf").astype(jnp.bfloat16),                                            # (L,F,H)
        bq=vec("bq"),
        bkv=jnp.concatenate([vec("bk"), vec("bv")], axis=-1),                         # (L,1,2H)
        bo=vec("bo"), g1=vec("g1"), be1=vec("be1"),
        bi=vec("bi"), bf=vec("bf"), g2=vec("g2"), be2=vec("be2"),
        zero_context=params["zero_context"],
    )


# ---------------------------------------------------------------------------
if __name__ == "__main__":
    B, S, H, NH, F = 2, 8, 32, 4, 64     # batch, tokens, hidden, heads, intermediate
    L = 2                                # num_layers
    I = 6                                # num span items (num_items)

    key = jax.random.PRNGKey(0)
    k_hs, k_mask, k_ctx = jax.random.split(key, 3)

    # L+1 hidden states (as BERT would emit for the last L layers + their input)
    all_hidden_states = [
        jax.random.normal(jax.random.fold_in(k_hs, l), (B, S, H), dtype=jnp.float32)
        for l in range(L + 1)
    ]

    # ck2tok_mask: True = token excluded from the span (eznlp convention)
    ck2tok_mask = jax.random.bernoulli(k_mask, 0.5, (B, I, S))
    # force one fully-masked item to exercise the zero_indic / zero_context path
    ck2tok_mask = ck2tok_mask.at[1, -1, :].set(True)

    ctx2tok_mask = jax.random.bernoulli(k_ctx, 0.5, (B, I, S))

    params = init_params(jax.random.PRNGKey(42), L, H, F)
    packed = pack_params(params)

    outs = masked_span_bert_like_forward(
        all_hidden_states, ck2tok_mask, packed,
        num_layers=L, num_heads=NH, ctx2tok_mask=ctx2tok_mask)

    outs = jax.block_until_ready(outs)
    assert outs["span_query_state"].shape == (B, I, H)
    assert outs["ctx_query_state"].shape == (B, I, H)
    assert bool(jnp.all(jnp.isfinite(outs["span_query_state"])))
    assert bool(jnp.all(jnp.isfinite(outs["ctx_query_state"])))
    print("KERNEL_OK")
</pallas_src>

<mosaic_0001>
module attributes {stable_mosaic.version = 11 : i64} {
  func.func @kernel(%arg0: i32, %arg1: i32, %arg2: memref<2x8x16xi8, #tpu.memory_space<vmem>>, %arg3: memref<2x16x8xi8, #tpu.memory_space<vmem>>, %arg4: memref<1x2x8x32xbf16, #tpu.memory_space<vmem>>, %arg5: memref<1x32x32xbf16, #tpu.memory_space<vmem>>, %arg6: memref<1x1x32xf32, #tpu.memory_space<vmem>>, %arg7: memref<1x32x64xbf16, #tpu.memory_space<vmem>>, %arg8: memref<1x1x64xf32, #tpu.memory_space<vmem>>, %arg9: memref<1x32x32xbf16, #tpu.memory_space<vmem>>, %arg10: memref<1x1x32xf32, #tpu.memory_space<vmem>>, %arg11: memref<1x1x32xf32, #tpu.memory_space<vmem>>, %arg12: memref<1x1x32xf32, #tpu.memory_space<vmem>>, %arg13: memref<1x32x64xbf16, #tpu.memory_space<vmem>>, %arg14: memref<1x1x64xf32, #tpu.memory_space<vmem>>, %arg15: memref<1x64x32xbf16, #tpu.memory_space<vmem>>, %arg16: memref<1x1x32xf32, #tpu.memory_space<vmem>>, %arg17: memref<1x1x32xf32, #tpu.memory_space<vmem>>, %arg18: memref<1x1x32xf32, #tpu.memory_space<vmem>>, %arg19: memref<2x16x32xf32, #tpu.memory_space<vmem>>, %arg20: memref<2x16x8xf32, #tpu.memory_space<vmem>>, %arg21: memref<32x32xf32, #tpu.memory_space<vmem>>) attributes {dimension_semantics = [#tpu.dimension_semantics<parallel>, #tpu.dimension_semantics<arbitrary>], iteration_bounds = array<i64: 1, 2>, scalar_prefetch = 0 : i64, scratch_operands = 2 : i64, tpu.core_type = #tpu.core_type<tc>, window_params = [{transform_indices = @transform_0, window_bounds = array<i64: 2, 8, 16>}, {transform_indices = @transform_1, window_bounds = array<i64: 2, 16, 8>}, {transform_indices = @transform_2, window_bounds = array<i64: 1, 2, 8, 32>}, {transform_indices = @transform_3, window_bounds = array<i64: 1, 32, 32>}, {transform_indices = @transform_4, window_bounds = array<i64: 1, 1, 32>}, {transform_indices = @transform_5, window_bounds = array<i64: 1, 32, 64>}, {transform_indices = @transform_6, window_bounds = array<i64: 1, 1, 64>}, {transform_indices = @transform_7, window_bounds = array<i64: 1, 32, 32>}, {transform_indices = @transform_8, window_bounds = array<i64: 1, 1, 32>}, {transform_indices = @transform_9, window_bounds = array<i64: 1, 1, 32>}, {transform_indices = @transform_10, window_bounds = array<i64: 1, 1, 32>}, {transform_indices = @transform_11, window_bounds = array<i64: 1, 32, 64>}, {transform_indices = @transform_12, window_bounds = array<i64: 1, 1, 64>}, {transform_indices = @transform_13, window_bounds = array<i64: 1, 64, 32>}, {transform_indices = @transform_14, window_bounds = array<i64: 1, 1, 32>}, {transform_indices = @transform_15, window_bounds = array<i64: 1, 1, 32>}, {transform_indices = @transform_16, window_bounds = array<i64: 1, 1, 32>}, {transform_indices = @transform_17, window_bounds = array<i64: 2, 16, 32>}]} {
    %c0 = arith.constant 0 : index
    %c0_0 = arith.constant 0 : index
    %c0_1 = arith.constant 0 : index
    %c0_2 = arith.constant 0 : index
    %0 = vector.load %arg4[%c0, %c0_0, %c0_1, %c0_2] : memref<1x2x8x32xbf16, #tpu.memory_space<vmem>>, vector<1x2x8x32xbf16>
    %1 = vector.shape_cast %0 : vector<1x2x8x32xbf16> to vector<2x8x32xbf16>
    %c0_i32 = arith.constant 0 : i32
    %2 = arith.cmpi eq, %arg1, %c0_i32 : i32
    %3 = arith.extui %2 : i1 to i32
    %c0_i32_3 = arith.constant 0 : i32
    %4 = arith.cmpi ne, %3, %c0_i32_3 : i32
    scf.if %4 {
      %c0_99 = arith.constant 0 : index
      %c0_100 = arith.constant 0 : index
      %c0_101 = arith.constant 0 : index
      %207 = vector.load %arg3[%c0_99, %c0_100, %c0_101] : memref<2x16x8xi8, #tpu.memory_space<vmem>>, vector<2x16x8xi8>
      %208 = arith.sitofp %207 : vector<2x16x8xi8> to vector<2x16x8xf32>
      %cst_102 = arith.constant -1.000000e+04 : f32
      %209 = vector.broadcast %cst_102 : f32 to vector<2x16x8xf32>
      %210 = arith.mulf %208, %209 : vector<2x16x8xf32>
      %c0_103 = arith.constant 0 : index
      %c0_104 = arith.constant 0 : index
      %c0_105 = arith.constant 0 : index
      %211 = vector.load %arg20[%c0_103, %c0_104, %c0_105] : memref<2x16x8xf32, #tpu.memory_space<vmem>>, vector<2x16x8xf32>
      tpu.vector_store %arg20[%c0_103, %c0_104, %c0_105], %210 {strides = array<i32>} : memref<2x16x8xf32, #tpu.memory_space<vmem>>, vector<2x16x8xf32>,
      %c0_106 = arith.constant 0 : index
      %c0_107 = arith.constant 0 : index
      %c0_108 = arith.constant 0 : index
      %c0_109 = arith.constant 0 : index
      %212 = vector.load %arg4[%c0_106, %c0_107, %c0_108, %c0_109] : memref<1x2x8x32xbf16, #tpu.memory_space<vmem>>, vector<1x2x8x32xbf16>
      %213 = vector.shape_cast %212 : vector<1x2x8x32xbf16> to vector<2x8x32xbf16>
      %214 = arith.extf %213 : vector<2x8x32xbf16> to vector<2x8x32xf32>
      %c0_110 = arith.constant 0 : index
      %c0_111 = arith.constant 0 : index
      %c0_112 = arith.constant 0 : index
      %215 = vector.load %arg2[%c0_110, %c0_111, %c0_112] : memref<2x8x16xi8, #tpu.memory_space<vmem>>, vector<2x8x16xi8>
      %216 = arith.sitofp %215 : vector<2x8x16xi8> to vector<2x8x16xf32>
      %cst_113 = arith.constant -1.000000e+30 : f32
      %217 = vector.broadcast %cst_113 : f32 to vector<2x8x16xf32>
      %218 = arith.mulf %216, %217 : vector<2x8x16xf32>
      %219 = vector.shape_cast %214 : vector<2x8x32xf32> to vector<2x8x1x32xf32>
      %220 = vector.shape_cast %218 : vector<2x8x16xf32> to vector<2x8x16x1xf32>
      %221 = vector.broadcast %219 : vector<2x8x1x32xf32> to vector<2x8x16x32xf32>
      %222 = vector.broadcast %220 : vector<2x8x16x1xf32> to vector<2x8x16x32xf32>
      %223 = arith.addf %221, %222 : vector<2x8x16x32xf32>
      %cst_114 = arith.constant dense<0xFF800000> : vector<2x16x32xf32>
      %224 = vector.multi_reduction <maximumf>, %223, %cst_114 [1] : vector<2x8x16x32xf32> to vector<2x16x32xf32>
      %c0_115 = arith.constant 0 : index
      %c0_116 = arith.constant 0 : index
      %c0_117 = arith.constant 0 : index
      %225 = vector.load %arg19[%c0_115, %c0_116, %c0_117] : memref<2x16x32xf32, #tpu.memory_space<vmem>>, vector<2x16x32xf32>
      tpu.vector_store %arg19[%c0_115, %c0_116, %c0_117], %224 {strides = array<i32>} : memref<2x16x32xf32, #tpu.memory_space<vmem>>, vector<2x16x32xf32>,
    } else {
    }
    %c0_4 = arith.constant 0 : index
    %c0_5 = arith.constant 0 : index
    %c0_6 = arith.constant 0 : index
    %5 = vector.load %arg19[%c0_4, %c0_5, %c0_6] : memref<2x16x32xf32, #tpu.memory_space<vmem>>, vector<2x16x32xf32>
    %6 = vector.shape_cast %5 : vector<2x16x32xf32> to vector<32x32xf32>
    %7 = arith.truncf %6 : vector<32x32xf32> to vector<32x32xbf16>
    %8 = vector.shape_cast %1 : vector<2x8x32xbf16> to vector<16x32xbf16>
    %c0_7 = arith.constant 0 : index
    %c0_8 = arith.constant 0 : index
    %c0_9 = arith.constant 0 : index
    %9 = vector.load %arg5[%c0_7, %c0_8, %c0_9] : memref<1x32x32xbf16, #tpu.memory_space<vmem>>, vector<1x32x32xbf16>
    %10 = vector.shape_cast %9 : vector<1x32x32xbf16> to vector<32x32xbf16>
    %cst = arith.constant dense<0.000000e+00> : vector<32x32xf32>
    %11 = tpu.matmul %7, %10, %cst {dimension_numbers = #tpu.dot_dimension_numbers<[1], [0], [0], [1], [0, 0, 1, 1], [], []>} : vector<32x32xbf16>, vector<32x32xbf16>, vector<32x32xf32> -> vector<32x32xf32>
    %c0_10 = arith.constant 0 : index
    %c0_11 = arith.constant 0 : index
    %c0_12 = arith.constant 0 : index
    %12 = vector.load %arg6[%c0_10, %c0_11, %c0_12] : memref<1x1x32xf32, #tpu.memory_space<vmem>>, vector<1x1x32xf32>
    %13 = vector.shape_cast %12 : vector<1x1x32xf32> to vector<1x32xf32>
    %14 = vector.broadcast %13 : vector<1x32xf32> to vector<32x32xf32>
    %15 = arith.addf %11, %14 : vector<32x32xf32>
    %16 = arith.truncf %15 : vector<32x32xf32> to vector<32x32xbf16>
    %c0_13 = arith.constant 0 : index
    %c0_14 = arith.constant 0 : index
    %c0_15 = arith.constant 0 : index
    %17 = vector.load %arg7[%c0_13, %c0_14, %c0_15] : memref<1x32x64xbf16, #tpu.memory_space<vmem>>, vector<1x32x64xbf16>
    %18 = vector.shape_cast %17 : vector<1x32x64xbf16> to vector<32x64xbf16>
    %cst_16 = arith.constant dense<0.000000e+00> : vector<16x64xf32>
    %19 = tpu.matmul %8, %18, %cst_16 {dimension_numbers = #tpu.dot_dimension_numbers<[1], [0], [0], [1], [0, 0, 1, 1], [], []>} : vector<16x32xbf16>, vector<32x64xbf16>, vector<16x64xf32> -> vector<16x64xf32>
    %c0_17 = arith.constant 0 : index
    %c0_18 = arith.constant 0 : index
    %c0_19 = arith.constant 0 : index
    %20 = vector.load %arg8[%c0_17, %c0_18, %c0_19] : memref<1x1x64xf32, #tpu.memory_space<vmem>>, vector<1x1x64xf32>
    %21 = vector.shape_cast %20 : vector<1x1x64xf32> to vector<1x64xf32>
    %22 = vector.broadcast %21 : vector<1x64xf32> to vector<16x64xf32>
    %23 = arith.addf %19, %22 : vector<16x64xf32>
    %24 = arith.truncf %23 : vector<16x64xf32> to vector<16x64xbf16>
    %c0_20 = arith.constant 0 : index
    %c0_21 = arith.constant 0 : index
    %c0_22 = arith.constant 0 : index
    %25 = vector.load %arg20[%c0_20, %c0_21, %c0_22] : memref<2x16x8xf32, #tpu.memory_space<vmem>>, vector<2x16x8xf32>
    %26 = vector.extract_strided_slice %16 {offsets = [0, 0], sizes = [32, 8], strides = [1, 1]} : vector<32x32xbf16> to vector<32x8xbf16>
    %27 = vector.shape_cast %26 : vector<32x8xbf16> to vector<2x16x8xbf16>
    %28 = vector.extract_strided_slice %24 {offsets = [0, 0], sizes = [16, 8], strides = [1, 1]} : vector<16x64xbf16> to vector<16x8xbf16>
    %29 = vector.shape_cast %28 : vector<16x8xbf16> to vector<2x8x8xbf16>
    %30 = vector.extract_strided_slice %24 {offsets = [0, 32], sizes = [16, 8], strides = [1, 1]} : vector<16x64xbf16> to vector<16x8xbf16>
    %31 = vector.shape_cast %30 : vector<16x8xbf16> to vector<2x8x8xbf16>
    "tpu.trace_start"() <{level = 10 : i32, message = "bid,bsd->bis"}> : () -> ()
    %cst_23 = arith.constant dense<0.000000e+00> : vector<2x16x8xf32>
    %32 = tpu.matmul %27, %29, %cst_23 {dimension_numbers = #tpu.dot_dimension_numbers<[2], [2], [1], [1], [0, 0, 0, 1, 1, 1], [0], [0]>} : vector<2x16x8xbf16>, vector<2x8x8xbf16>, vector<2x16x8xf32> -> vector<2x16x8xf32>
    "tpu.trace_stop"() : () -> ()
    %cst_24 = arith.constant 0.353553385 : f32
    %33 = vector.broadcast %cst_24 : f32 to vector<2x16x8xf32>
    %34 = arith.mulf %32, %33 : vector<2x16x8xf32>
    %35 = arith.addf %34, %25 : vector<2x16x8xf32>
    %cst_25 = arith.constant dense<0xFF800000> : vector<2x16xf32>
    %36 = vector.multi_reduction <maximumf>, %35, %cst_25 [2] : vector<2x16x8xf32> to vector<2x16xf32>
    %37 = vector.shape_cast %36 : vector<2x16xf32> to vector<2x16x1xf32>
    %38 = vector.broadcast %37 : vector<2x16x1xf32> to vector<2x16x8xf32>
    %39 = arith.subf %35, %38 : vector<2x16x8xf32>
    %40 = math.exp %39 : vector<2x16x8xf32>
    %cst_26 = arith.constant dense<0.000000e+00> : vector<2x16xf32>
    %41 = vector.multi_reduction <add>, %40, %cst_26 [2] : vector<2x16x8xf32> to vector<2x16xf32>
    %42 = vector.shape_cast %41 : vector<2x16xf32> to vector<2x16x1xf32>
    %43 = vector.broadcast %42 : vector<2x16x1xf32> to vector<2x16x8xf32>
    %44 = arith.divf %40, %43 : vector<2x16x8xf32>
    %45 = arith.truncf %44 : vector<2x16x8xf32> to vector<2x16x8xbf16>
    "tpu.trace_start"() <{level = 10 : i32, message = "bis,bsd->bid"}> : () -> ()
    %cst_27 = arith.constant dense<0.000000e+00> : vector<2x16x8xf32>
    %46 = tpu.matmul %45, %31, %cst_27 {dimension_numbers = #tpu.dot_dimension_numbers<[2], [1], [1], [2], [0, 0, 0, 1, 1, 2], [0], [0]>} : vector<2x16x8xbf16>, vector<2x8x8xbf16>, vector<2x16x8xf32> -> vector<2x16x8xf32>
    "tpu.trace_stop"() : () -> ()
    %47 = vector.shape_cast %46 : vector<2x16x8xf32> to vector<32x8xf32>
    %c0_28 = arith.constant 0 : index
    %c0_29 = arith.constant 0 : index
    %48 = vector.load %arg21[%c0_28, %c0_29] : memref<32x32xf32, #tpu.memory_space<vmem>>, vector<32x8xf32>
    tpu.vector_store %arg21[%c0_28, %c0_29], %47 {strides = array<i32>} : memref<32x32xf32, #tpu.memory_space<vmem>>, vector<32x8xf32>,
    %49 = vector.extract_strided_slice %16 {offsets = [0, 8], sizes = [32, 8], strides = [1, 1]} : vector<32x32xbf16> to vector<32x8xbf16>
    %50 = vector.shape_cast %49 : vector<32x8xbf16> to vector<2x16x8xbf16>
    %51 = vector.extract_strided_slice %24 {offsets = [0, 8], sizes = [16, 8], strides = [1, 1]} : vector<16x64xbf16> to vector<16x8xbf16>
    %52 = vector.shape_cast %51 : vector<16x8xbf16> to vector<2x8x8xbf16>
    %53 = vector.extract_strided_slice %24 {offsets = [0, 40], sizes = [16, 8], strides = [1, 1]} : vector<16x64xbf16> to vector<16x8xbf16>
    %54 = vector.shape_cast %53 : vector<16x8xbf16> to vector<2x8x8xbf16>
    "tpu.trace_start"() <{level = 10 : i32, message = "bid,bsd->bis"}> : () -> ()
    %cst_30 = arith.constant dense<0.000000e+00> : vector<2x16x8xf32>
    %55 = tpu.matmul %50, %52, %cst_30 {dimension_numbers = #tpu.dot_dimension_numbers<[2], [2], [1], [1], [0, 0, 0, 1, 1, 1], [0], [0]>} : vector<2x16x8xbf16>, vector<2x8x8xbf16>, vector<2x16x8xf32> -> vector<2x16x8xf32>
    "tpu.trace_stop"() : () -> ()
    %cst_31 = arith.constant 0.353553385 : f32
    %56 = vector.broadcast %cst_31 : f32 to vector<2x16x8xf32>
    %57 = arith.mulf %55, %56 : vector<2x16x8xf32>
    %58 = arith.addf %57, %25 : vector<2x16x8xf32>
    %cst_32 = arith.constant dense<0xFF800000> : vector<2x16xf32>
    %59 = vector.multi_reduction <maximumf>, %58, %cst_32 [2] : vector<2x16x8xf32> to vector<2x16xf32>
    %60 = vector.shape_cast %59 : vector<2x16xf32> to vector<2x16x1xf32>
    %61 = vector.broadcast %60 : vector<2x16x1xf32> to vector<2x16x8xf32>
    %62 = arith.subf %58, %61 : vector<2x16x8xf32>
    %63 = math.exp %62 : vector<2x16x8xf32>
    %cst_33 = arith.constant dense<0.000000e+00> : vector<2x16xf32>
    %64 = vector.multi_reduction <add>, %63, %cst_33 [2] : vector<2x16x8xf32> to vector<2x16xf32>
    %65 = vector.shape_cast %64 : vector<2x16xf32> to vector<2x16x1xf32>
    %66 = vector.broadcast %65 : vector<2x16x1xf32> to vector<2x16x8xf32>
    %67 = arith.divf %63, %66 : vector<2x16x8xf32>
    %68 = arith.truncf %67 : vector<2x16x8xf32> to vector<2x16x8xbf16>
    "tpu.trace_start"() <{level = 10 : i32, message = "bis,bsd->bid"}> : () -> ()
    %cst_34 = arith.constant dense<0.000000e+00> : vector<2x16x8xf32>
    %69 = tpu.matmul %68, %54, %cst_34 {dimension_numbers = #tpu.dot_dimension_numbers<[2], [1], [1], [2], [0, 0, 0, 1, 1, 2], [0], [0]>} : vector<2x16x8xbf16>, vector<2x8x8xbf16>, vector<2x16x8xf32> -> vector<2x16x8xf32>
    "tpu.trace_stop"() : () -> ()
    %70 = vector.shape_cast %69 : vector<2x16x8xf32> to vector<32x8xf32>
    %c0_35 = arith.constant 0 : index
    %c8 = arith.constant 8 : index
    %71 = vector.load %arg21[%c0_35, %c8] : memref<32x32xf32, #tpu.memory_space<vmem>>, vector<32x8xf32>
    tpu.vector_store %arg21[%c0_35, %c8], %70 {strides = array<i32>} : memref<32x32xf32, #tpu.memory_space<vmem>>, vector<32x8xf32>,
    %72 = vector.extract_strided_slice %16 {offsets = [0, 16], sizes = [32, 8], strides = [1, 1]} : vector<32x32xbf16> to vector<32x8xbf16>
    %73 = vector.shape_cast %72 : vector<32x8xbf16> to vector<2x16x8xbf16>
    %74 = vector.extract_strided_slice %24 {offsets = [0, 16], sizes = [16, 8], strides = [1, 1]} : vector<16x64xbf16> to vector<16x8xbf16>
    %75 = vector.shape_cast %74 : vector<16x8xbf16> to vector<2x8x8xbf16>
    %76 = vector.extract_strided_slice %24 {offsets = [0, 48], sizes = [16, 8], strides = [1, 1]} : vector<16x64xbf16> to vector<16x8xbf16>
    %77 = vector.shape_cast %76 : vector<16x8xbf16> to vector<2x8x8xbf16>
    "tpu.trace_start"() <{level = 10 : i32, message = "bid,bsd->bis"}> : () -> ()
    %cst_36 = arith.constant dense<0.000000e+00> : vector<2x16x8xf32>
    %78 = tpu.matmul %73, %75, %cst_36 {dimension_numbers = #tpu.dot_dimension_numbers<[2], [2], [1], [1], [0, 0, 0, 1, 1, 1], [0], [0]>} : vector<2x16x8xbf16>, vector<2x8x8xbf16>, vector<2x16x8xf32> -> vector<2x16x8xf32>
    "tpu.trace_stop"() : () -> ()
    %cst_37 = arith.constant 0.353553385 : f32
    %79 = vector.broadcast %cst_37 : f32 to vector<2x16x8xf32>
    %80 = arith.mulf %78, %79 : vector<2x16x8xf32>
    %81 = arith.addf %80, %25 : vector<2x16x8xf32>
    %cst_38 = arith.constant dense<0xFF800000> : vector<2x16xf32>
    %82 = vector.multi_reduction <maximumf>, %81, %cst_38 [2] : vector<2x16x8xf32> to vector<2x16xf32>
    %83 = vector.shape_cast %82 : vector<2x16xf32> to vector<2x16x1xf32>
    %84 = vector.broadcast %83 : vector<2x16x1xf32> to vector<2x16x8xf32>
    %85 = arith.subf %81, %84 : vector<2x16x8xf32>
    %86 = math.exp %85 : vector<2x16x8xf32>
    %cst_39 = arith.constant dense<0.000000e+00> : vector<2x16xf32>
    %87 = vector.multi_reduction <add>, %86, %cst_39 [2] : vector<2x16x8xf32> to vector<2x16xf32>
    %88 = vector.shape_cast %87 : vector<2x16xf32> to vector<2x16x1xf32>
    %89 = vector.broadcast %88 : vector<2x16x1xf32> to vector<2x16x8xf32>
    %90 = arith.divf %86, %89 : vector<2x16x8xf32>
    %91 = arith.truncf %90 : vector<2x16x8xf32> to vector<2x16x8xbf16>
    "tpu.trace_start"() <{level = 10 : i32, message = "bis,bsd->bid"}> : () -> ()
    %cst_40 = arith.constant dense<0.000000e+00> : vector<2x16x8xf32>
    %92 = tpu.matmul %91, %77, %cst_40 {dimension_numbers = #tpu.dot_dimension_numbers<[2], [1], [1], [2], [0, 0, 0, 1, 1, 2], [0], [0]>} : vector<2x16x8xbf16>, vector<2x8x8xbf16>, vector<2x16x8xf32> -> vector<2x16x8xf32>
    "tpu.trace_stop"() : () -> ()
    %93 = vector.shape_cast %92 : vector<2x16x8xf32> to vector<32x8xf32>
    %c0_41 = arith.constant 0 : index
    %c16 = arith.constant 16 : index
    %94 = vector.load %arg21[%c0_41, %c16] : memref<32x32xf32, #tpu.memory_space<vmem>>, vector<32x8xf32>
    tpu.vector_store %arg21[%c0_41, %c16], %93 {strides = array<i32>} : memref<32x32xf32, #tpu.memory_space<vmem>>, vector<32x8xf32>,
    %95 = vector.extract_strided_slice %16 {offsets = [0, 24], sizes = [32, 8], strides = [1, 1]} : vector<32x32xbf16> to vector<32x8xbf16>
    %96 = vector.shape_cast %95 : vector<32x8xbf16> to vector<2x16x8xbf16>
    %97 = vector.extract_strided_slice %24 {offsets = [0, 24], sizes = [16, 8], strides = [1, 1]} : vector<16x64xbf16> to vector<16x8xbf16>
    %98 = vector.shape_cast %97 : vector<16x8xbf16> to vector<2x8x8xbf16>
    %99 = vector.extract_strided_slice %24 {offsets = [0, 56], sizes = [16, 8], strides = [1, 1]} : vector<16x64xbf16> to vector<16x8xbf16>
    %100 = vector.shape_cast %99 : vector<16x8xbf16> to vector<2x8x8xbf16>
    "tpu.trace_start"() <{level = 10 : i32, message = "bid,bsd->bis"}> : () -> ()
    %cst_42 = arith.constant dense<0.000000e+00> : vector<2x16x8xf32>
    %101 = tpu.matmul %96, %98, %cst_42 {dimension_numbers = #tpu.dot_dimension_numbers<[2], [2], [1], [1], [0, 0, 0, 1, 1, 1], [0], [0]>} : vector<2x16x8xbf16>, vector<2x8x8xbf16>, vector<2x16x8xf32> -> vector<2x16x8xf32>
    "tpu.trace_stop"() : () -> ()
    %cst_43 = arith.constant 0.353553385 : f32
    %102 = vector.broadcast %cst_43 : f32 to vector<2x16x8xf32>
    %103 = arith.mulf %101, %102 : vector<2x16x8xf32>
    %104 = arith.addf %103, %25 : vector<2x16x8xf32>
    %cst_44 = arith.constant dense<0xFF800000> : vector<2x16xf32>
    %105 = vector.multi_reduction <maximumf>, %104, %cst_44 [2] : vector<2x16x8xf32> to vector<2x16xf32>
    %106 = vector.shape_cast %105 : vector<2x16xf32> to vector<2x16x1xf32>
    %107 = vector.broadcast %106 : vector<2x16x1xf32> to vector<2x16x8xf32>
    %108 = arith.subf %104, %107 : vector<2x16x8xf32>
    %109 = math.exp %108 : vector<2x16x8xf32>
    %cst_45 = arith.constant dense<0.000000e+00> : vector<2x16xf32>
    %110 = vector.multi_reduction <add>, %109, %cst_45 [2] : vector<2x16x8xf32> to vector<2x16xf32>
    %111 = vector.shape_cast %110 : vector<2x16xf32> to vector<2x16x1xf32>
    %112 = vector.broadcast %111 : vector<2x16x1xf32> to vector<2x16x8xf32>
    %113 = arith.divf %109, %112 : vector<2x16x8xf32>
    %114 = arith.truncf %113 : vector<2x16x8xf32> to vector<2x16x8xbf16>
    "tpu.trace_start"() <{level = 10 : i32, message = "bis,bsd->bid"}> : () -> ()
    %cst_46 = arith.constant dense<0.000000e+00> : vector<2x16x8xf32>
    %115 = tpu.matmul %114, %100, %cst_46 {dimension_numbers = #tpu.dot_dimension_numbers<[2], [1], [1], [2], [0, 0, 0, 1, 1, 2], [0], [0]>} : vector<2x16x8xbf16>, vector<2x8x8xbf16>, vector<2x16x8xf32> -> vector<2x16x8xf32>
    "tpu.trace_stop"() : () -> ()
    %116 = vector.shape_cast %115 : vector<2x16x8xf32> to vector<32x8xf32>
    %c0_47 = arith.constant 0 : index
    %c24 = arith.constant 24 : index
    %117 = vector.load %arg21[%c0_47, %c24] : memref<32x32xf32, #tpu.memory_space<vmem>>, vector<32x8xf32>
    tpu.vector_store %arg21[%c0_47, %c24], %116 {strides = array<i32>} : memref<32x32xf32, #tpu.memory_space<vmem>>, vector<32x8xf32>,
    %c0_48 = arith.constant 0 : index
    %c0_49 = arith.constant 0 : index
    %118 = vector.load %arg21[%c0_48, %c0_49] : memref<32x32xf32, #tpu.memory_space<vmem>>, vector<32x32xf32>
    %119 = arith.truncf %118 : vector<32x32xf32> to vector<32x32xbf16>
    %c0_50 = arith.constant 0 : index
    %c0_51 = arith.constant 0 : index
    %c0_52 = arith.constant 0 : index
    %120 = vector.load %arg9[%c0_50, %c0_51, %c0_52] : memref<1x32x32xbf16, #tpu.memory_space<vmem>>, vector<1x32x32xbf16>
    %121 = vector.shape_cast %120 : vector<1x32x32xbf16> to vector<32x32xbf16>
    %cst_53 = arith.constant dense<0.000000e+00> : vector<32x32xf32>
    %122 = tpu.matmul %119, %121, %cst_53 {dimension_numbers = #tpu.dot_dimension_numbers<[1], [0], [0], [1], [0, 0, 1, 1], [], []>} : vector<32x32xbf16>, vector<32x32xbf16>, vector<32x32xf32> -> vector<32x32xf32>
    %c0_54 = arith.constant 0 : index
    %c0_55 = arith.constant 0 : index
    %c0_56 = arith.constant 0 : index
    %123 = vector.load %arg10[%c0_54, %c0_55, %c0_56] : memref<1x1x32xf32, #tpu.memory_space<vmem>>, vector<1x1x32xf32>
    %124 = vector.shape_cast %123 : vector<1x1x32xf32> to vector<1x32xf32>
    %125 = vector.broadcast %124 : vector<1x32xf32> to vector<32x32xf32>
    %126 = arith.addf %122, %125 : vector<32x32xf32>
    %127 = arith.addf %126, %6 : vector<32x32xf32>
    %c0_57 = arith.constant 0 : index
    %c0_58 = arith.constant 0 : index
    %c0_59 = arith.constant 0 : index
    %128 = vector.load %arg11[%c0_57, %c0_58, %c0_59] : memref<1x1x32xf32, #tpu.memory_space<vmem>>, vector<1x1x32xf32>
    %129 = vector.shape_cast %128 : vector<1x1x32xf32> to vector<1x32xf32>
    %c0_60 = arith.constant 0 : index
    %c0_61 = arith.constant 0 : index
    %c0_62 = arith.constant 0 : index
    %130 = vector.load %arg12[%c0_60, %c0_61, %c0_62] : memref<1x1x32xf32, #tpu.memory_space<vmem>>, vector<1x1x32xf32>
    %131 = vector.shape_cast %130 : vector<1x1x32xf32> to vector<1x32xf32>
    %cst_63 = arith.constant dense<0.000000e+00> : vector<32xf32>
    %132 = vector.multi_reduction <add>, %127, %cst_63 [1] : vector<32x32xf32> to vector<32xf32>
    %133 = vector.shape_cast %132 : vector<32xf32> to vector<32x1xf32>
    %cst_64 = arith.constant 3.200000e+01 : f32
    %134 = vector.broadcast %cst_64 : f32 to vector<32x1xf32>
    %135 = arith.divf %133, %134 : vector<32x1xf32>
    %136 = vector.broadcast %135 : vector<32x1xf32> to vector<32x32xf32>
    %137 = arith.subf %127, %136 : vector<32x32xf32>
    %138 = arith.mulf %137, %137 : vector<32x32xf32>
    %cst_65 = arith.constant dense<0.000000e+00> : vector<32xf32>
    %139 = vector.multi_reduction <add>, %138, %cst_65 [1] : vector<32x32xf32> to vector<32xf32>
    %140 = vector.shape_cast %139 : vector<32xf32> to vector<32x1xf32>
    %cst_66 = arith.constant 3.200000e+01 : f32
    %141 = vector.broadcast %cst_66 : f32 to vector<32x1xf32>
    %142 = arith.divf %140, %141 : vector<32x1xf32>
    %143 = vector.broadcast %135 : vector<32x1xf32> to vector<32x32xf32>
    %144 = arith.subf %127, %143 : vector<32x32xf32>
    %cst_67 = arith.constant 9.99999996E-13 : f32
    %145 = vector.broadcast %cst_67 : f32 to vector<32x1xf32>
    %146 = arith.addf %142, %145 : vector<32x1xf32>
    %147 = math.rsqrt %146 : vector<32x1xf32>
    %148 = vector.broadcast %147 : vector<32x1xf32> to vector<32x32xf32>
    %149 = arith.mulf %144, %148 : vector<32x32xf32>
    %150 = vector.broadcast %129 : vector<1x32xf32> to vector<32x32xf32>
    %151 = arith.mulf %149, %150 : vector<32x32xf32>
    %152 = vector.broadcast %131 : vector<1x32xf32> to vector<32x32xf32>
    %153 = arith.addf %151, %152 : vector<32x32xf32>
    %154 = arith.truncf %153 : vector<32x32xf32> to vector<32x32xbf16>
    %c0_68 = arith.constant 0 : index
    %c0_69 = arith.constant 0 : index
    %c0_70 = arith.constant 0 : index
    %155 = vector.load %arg13[%c0_68, %c0_69, %c0_70] : memref<1x32x64xbf16, #tpu.memory_space<vmem>>, vector<1x32x64xbf16>
    %156 = vector.shape_cast %155 : vector<1x32x64xbf16> to vector<32x64xbf16>
    %cst_71 = arith.constant dense<0.000000e+00> : vector<32x64xf32>
    %157 = tpu.matmul %154, %156, %cst_71 {dimension_numbers = #tpu.dot_dimension_numbers<[1], [0], [0], [1], [0, 0, 1, 1], [], []>} : vector<32x32xbf16>, vector<32x64xbf16>, vector<32x64xf32> -> vector<32x64xf32>
    %c0_72 = arith.constant 0 : index
    %c0_73 = arith.constant 0 : index
    %c0_74 = arith.constant 0 : index
    %158 = vector.load %arg14[%c0_72, %c0_73, %c0_74] : memref<1x1x64xf32, #tpu.memory_space<vmem>>, vector<1x1x64xf32>
    %159 = vector.shape_cast %158 : vector<1x1x64xf32> to vector<1x64xf32>
    %160 = vector.broadcast %159 : vector<1x64xf32> to vector<32x64xf32>
    %161 = arith.addf %157, %160 : vector<32x64xf32>
    %cst_75 = arith.constant 5.000000e-01 : f32
    %162 = vector.broadcast %cst_75 : f32 to vector<32x64xf32>
    %163 = arith.mulf %162, %161 : vector<32x64xf32>
    %cst_76 = arith.constant 0.707106769 : f32
    %164 = vector.broadcast %cst_76 : f32 to vector<32x64xf32>
    %165 = arith.mulf %161, %164 : vector<32x64xf32>
    %166 = math.erf %165 : vector<32x64xf32>
    %cst_77 = arith.constant 1.000000e+00 : f32
    %167 = vector.broadcast %cst_77 : f32 to vector<32x64xf32>
    %168 = arith.addf %167, %166 : vector<32x64xf32>
    %169 = arith.mulf %163, %168 : vector<32x64xf32>
    %170 = arith.truncf %169 : vector<32x64xf32> to vector<32x64xbf16>
    %c0_78 = arith.constant 0 : index
    %c0_79 = arith.constant 0 : index
    %c0_80 = arith.constant 0 : index
    %171 = vector.load %arg15[%c0_78, %c0_79, %c0_80] : memref<1x64x32xbf16, #tpu.memory_space<vmem>>, vector<1x64x32xbf16>
    %172 = vector.shape_cast %171 : vector<1x64x32xbf16> to vector<64x32xbf16>
    %cst_81 = arith.constant dense<0.000000e+00> : vector<32x32xf32>
    %173 = tpu.matmul %170, %172, %cst_81 {dimension_numbers = #tpu.dot_dimension_numbers<[1], [0], [0], [1], [0, 0, 1, 1], [], []>} : vector<32x64xbf16>, vector<64x32xbf16>, vector<32x32xf32> -> vector<32x32xf32>
    %c0_82 = arith.constant 0 : index
    %c0_83 = arith.constant 0 : index
    %c0_84 = arith.constant 0 : index
    %174 = vector.load %arg16[%c0_82, %c0_83, %c0_84] : memref<1x1x32xf32, #tpu.memory_space<vmem>>, vector<1x1x32xf32>
    %175 = vector.shape_cast %174 : vector<1x1x32xf32> to vector<1x32xf32>
    %176 = vector.broadcast %175 : vector<1x32xf32> to vector<32x32xf32>
    %177 = arith.addf %173, %176 : vector<32x32xf32>
    %178 = arith.addf %177, %153 : vector<32x32xf32>
    %c0_85 = arith.constant 0 : index
    %c0_86 = arith.constant 0 : index
    %c0_87 = arith.constant 0 : index
    %179 = vector.load %arg17[%c0_85, %c0_86, %c0_87] : memref<1x1x32xf32, #tpu.memory_space<vmem>>, vector<1x1x32xf32>
    %180 = vector.shape_cast %179 : vector<1x1x32xf32> to vector<1x32xf32>
    %c0_88 = arith.constant 0 : index
    %c0_89 = arith.constant 0 : index
    %c0_90 = arith.constant 0 : index
    %181 = vector.load %arg18[%c0_88, %c0_89, %c0_90] : memref<1x1x32xf32, #tpu.memory_space<vmem>>, vector<1x1x32xf32>
    %182 = vector.shape_cast %181 : vector<1x1x32xf32> to vector<1x32xf32>
    %cst_91 = arith.constant dense<0.000000e+00> : vector<32xf32>
    %183 = vector.multi_reduction <add>, %178, %cst_91 [1] : vector<32x32xf32> to vector<32xf32>
    %184 = vector.shape_cast %183 : vector<32xf32> to vector<32x1xf32>
    %cst_92 = arith.constant 3.200000e+01 : f32
    %185 = vector.broadcast %cst_92 : f32 to vector<32x1xf32>
    %186 = arith.divf %184, %185 : vector<32x1xf32>
    %187 = vector.broadcast %186 : vector<32x1xf32> to vector<32x32xf32>
    %188 = arith.subf %178, %187 : vector<32x32xf32>
    %189 = arith.mulf %188, %188 : vector<32x32xf32>
    %cst_93 = arith.constant dense<0.000000e+00> : vector<32xf32>
    %190 = vector.multi_reduction <add>, %189, %cst_93 [1] : vector<32x32xf32> to vector<32xf32>
    %191 = vector.shape_cast %190 : vector<32xf32> to vector<32x1xf32>
    %cst_94 = arith.constant 3.200000e+01 : f32
    %192 = vector.broadcast %cst_94 : f32 to vector<32x1xf32>
    %193 = arith.divf %191, %192 : vector<32x1xf32>
    %194 = vector.broadcast %186 : vector<32x1xf32> to vector<32x32xf32>
    %195 = arith.subf %178, %194 : vector<32x32xf32>
    %cst_95 = arith.constant 9.99999996E-13 : f32
    %196 = vector.broadcast %cst_95 : f32 to vector<32x1xf32>
    %197 = arith.addf %193, %196 : vector<32x1xf32>
    %198 = math.rsqrt %197 : vector<32x1xf32>
    %199 = vector.broadcast %198 : vector<32x1xf32> to vector<32x32xf32>
    %200 = arith.mulf %195, %199 : vector<32x32xf32>
    %201 = vector.broadcast %180 : vector<1x32xf32> to vector<32x32xf32>
    %202 = arith.mulf %200, %201 : vector<32x32xf32>
    %203 = vector.broadcast %182 : vector<1x32xf32> to vector<32x32xf32>
    %204 = arith.addf %202, %203 : vector<32x32xf32>
    %205 = vector.shape_cast %204 : vector<32x32xf32> to vector<2x16x32xf32>
    %c0_96 = arith.constant 0 : index
    %c0_97 = arith.constant 0 : index
    %c0_98 = arith.constant 0 : index
    %206 = vector.load %arg19[%c0_96, %c0_97, %c0_98] : memref<2x16x32xf32, #tpu.memory_space<vmem>>, vector<2x16x32xf32>
    tpu.vector_store %arg19[%c0_96, %c0_97, %c0_98], %205 {strides = array<i32>} : memref<2x16x32xf32, #tpu.memory_space<vmem>>, vector<2x16x32xf32>,
    return
  }
  func.func @transform_0(%arg0: i32, %arg1: i32) -> (i32, i32, i32) {
    %c0_i32 = arith.constant 0 : i32
    %c0_i32_0 = arith.constant 0 : i32
    %c0_i32_1 = arith.constant 0 : i32
    return %arg0, %c0_i32, %c0_i32_0 : i32, i32, i32
  }
  func.func @transform_1(%arg0: i32, %arg1: i32) -> (i32, i32, i32) {
    %c0_i32 = arith.constant 0 : i32
    %c0_i32_0 = arith.constant 0 : i32
    %c0_i32_1 = arith.constant 0 : i32
    return %arg0, %c0_i32, %c0_i32_0 : i32, i32, i32
  }
  func.func @transform_2(%arg0: i32, %arg1: i32) -> (i32, i32, i32, i32) {
    %c0_i32 = arith.constant 0 : i32
    %c0_i32_0 = arith.constant 0 : i32
    %c0_i32_1 = arith.constant 0 : i32
    return %arg1, %arg0, %c0_i32, %c0_i32_0 : i32, i32, i32, i32
  }
  func.func @transform_3(%arg0: i32, %arg1: i32) -> (i32, i32, i32) {
    %c0_i32 = arith.constant 0 : i32
    %c0_i32_0 = arith.constant 0 : i32
    %c0_i32_1 = arith.constant 0 : i32
    return %arg1, %c0_i32, %c0_i32_0 : i32, i32, i32
  }
  func.func @transform_4(%arg0: i32, %arg1: i32) -> (i32, i32, i32) {
    %c0_i32 = arith.constant 0 : i32
    %c0_i32_0 = arith.constant 0 : i32
    %c0_i32_1 = arith.constant 0 : i32
    return %arg1, %c0_i32, %c0_i32_0 : i32, i32, i32
  }
  func.func @transform_5(%arg0: i32, %arg1: i32) -> (i32, i32, i32) {
    %c0_i32 = arith.constant 0 : i32
    %c0_i32_0 = arith.constant 0 : i32
    %c0_i32_1 = arith.constant 0 : i32
    return %arg1, %c0_i32, %c0_i32_0 : i32, i32, i32
  }
  func.func @transform_6(%arg0: i32, %arg1: i32) -> (i32, i32, i32) {
    %c0_i32 = arith.constant 0 : i32
    %c0_i32_0 = arith.constant 0 : i32
    %c0_i32_1 = arith.constant 0 : i32
    return %arg1, %c0_i32, %c0_i32_0 : i32, i32, i32
  }
  func.func @transform_7(%arg0: i32, %arg1: i32) -> (i32, i32, i32) {
    %c0_i32 = arith.constant 0 : i32
    %c0_i32_0 = arith.constant 0 : i32
    %c0_i32_1 = arith.constant 0 : i32
    return %arg1, %c0_i32, %c0_i32_0 : i32, i32, i32
  }
  func.func @transform_8(%arg0: i32, %arg1: i32) -> (i32, i32, i32) {
    %c0_i32 = arith.constant 0 : i32
    %c0_i32_0 = arith.constant 0 : i32
    %c0_i32_1 = arith.constant 0 : i32
    return %arg1, %c0_i32, %c0_i32_0 : i32, i32, i32
  }
  func.func @transform_9(%arg0: i32, %arg1: i32) -> (i32, i32, i32) {
    %c0_i32 = arith.constant 0 : i32
    %c0_i32_0 = arith.constant 0 : i32
    %c0_i32_1 = arith.constant 0 : i32
    return %arg1, %c0_i32, %c0_i32_0 : i32, i32, i32
  }
  func.func @transform_10(%arg0: i32, %arg1: i32) -> (i32, i32, i32) {
    %c0_i32 = arith.constant 0 : i32
    %c0_i32_0 = arith.constant 0 : i32
    %c0_i32_1 = arith.constant 0 : i32
    return %arg1, %c0_i32, %c0_i32_0 : i32, i32, i32
  }
  func.func @transform_11(%arg0: i32, %arg1: i32) -> (i32, i32, i32) {
    %c0_i32 = arith.constant 0 : i32
    %c0_i32_0 = arith.constant 0 : i32
    %c0_i32_1 = arith.constant 0 : i32
    return %arg1, %c0_i32, %c0_i32_0 : i32, i32, i32
  }
  func.func @transform_12(%arg0: i32, %arg1: i32) -> (i32, i32, i32) {
    %c0_i32 = arith.constant 0 : i32
    %c0_i32_0 = arith.constant 0 : i32
    %c0_i32_1 = arith.constant 0 : i32
    return %arg1, %c0_i32, %c0_i32_0 : i32, i32, i32
  }
  func.func @transform_13(%arg0: i32, %arg1: i32) -> (i32, i32, i32) {
    %c0_i32 = arith.constant 0 : i32
    %c0_i32_0 = arith.constant 0 : i32
    %c0_i32_1 = arith.constant 0 : i32
    return %arg1, %c0_i32, %c0_i32_0 : i32, i32, i32
  }
  func.func @transform_14(%arg0: i32, %arg1: i32) -> (i32, i32, i32) {
    %c0_i32 = arith.constant 0 : i32
    %c0_i32_0 = arith.constant 0 : i32
    %c0_i32_1 = arith.constant 0 : i32
    return %arg1, %c0_i32, %c0_i32_0 : i32, i32, i32
  }
  func.func @transform_15(%arg0: i32, %arg1: i32) -> (i32, i32, i32) {
    %c0_i32 = arith.constant 0 : i32
    %c0_i32_0 = arith.constant 0 : i32
    %c0_i32_1 = arith.constant 0 : i32
    return %arg1, %c0_i32, %c0_i32_0 : i32, i32, i32
  }
  func.func @transform_16(%arg0: i32, %arg1: i32) -> (i32, i32, i32) {
    %c0_i32 = arith.constant 0 : i32
    %c0_i32_0 = arith.constant 0 : i32
    %c0_i32_1 = arith.constant 0 : i32
    return %arg1, %c0_i32, %c0_i32_0 : i32, i32, i32
  }
  func.func @transform_17(%arg0: i32, %arg1: i32) -> (i32, i32, i32) {
    %c0_i32 = arith.constant 0 : i32
    %c0_i32_0 = arith.constant 0 : i32
    %c0_i32_1 = arith.constant 0 : i32
    return %arg0, %c0_i32, %c0_i32_0 : i32, i32, i32
  }
}

</mosaic_0001>

<bundles_post_ra>
// kernel: tpu_custom_call.1
= control target key start
LH: loop header
LB: loop body
LE: loop exit
PB: predicated region body
PF: predicated region fallthrough
CT: control target
= control target key end

     0   :  { %s4652_s0 = inlined_call_operand.vmem [shape: s8[2,8,16], index: 0, kind: input, shape index: {}]   ;;  %s4653_s1 = inlined_call_operand.vmem [shape: s8[2,16,8], index: 1, kind: input, shape index: {}]   ;;  %s4654_s2 = inlined_call_operand.hbm [shape: bf16[2,2,8,32], index: 2, kind: input, shape index: {}]   ;;  %s4655_s3 = inlined_call_operand.vmem [shape: bf16[2,32,32], index: 3, kind: input, shape index: {}]   ;;  %s4656_s4 = inlined_call_operand.vmem [shape: f32[2,1,32], index: 4, kind: input, shape index: {}]   ;;  %s4657_s5 = inlined_call_operand.vmem [shape: bf16[2,32,64], index: 5, kind: input, shape index: {}]   ;;  %s4658_s6 = inlined_call_operand.vmem [shape: f32[2,1,64], index: 6, kind: input, shape index: {}]   ;;  %s4659_s7 = inlined_call_operand.vmem [shape: bf16[2,32,32], index: 7, kind: input, shape index: {}]   ;;  %s4660_s8 = inlined_call_operand.vmem [shape: f32[2,1,32], index: 8, kind: input, shape index: {}]   ;;  %s4661_s9 = inlined_call_operand.vmem [shape: f32[2,1,32], index: 9, kind: input, shape index: {}]   ;;  %s4662_s10 = inlined_call_operand.vmem [shape: f32[2,1,32], index: 10, kind: input, shape index: {}]   ;;  %s4663_s11 = inlined_call_operand.hbm [shape: bf16[2,32,64], index: 11, kind: input, shape index: {}]   ;;  %s4664_s12 = inlined_call_operand.vmem [shape: f32[2,1,64], index: 12, kind: input, shape index: {}]   ;;  %s4665_s13 = inlined_call_operand.vmem [shape: bf16[2,64,32], index: 13, kind: input, shape index: {}]   ;;  %s4666_s14 = inlined_call_operand.vmem [shape: f32[2,1,32], index: 14, kind: input, shape index: {}]   ;;  %s4667_s15 = inlined_call_operand.vmem [shape: f32[2,1,32], index: 15, kind: input, shape index: {}]   ;;  %s4668_s16 = inlined_call_operand.vmem [shape: f32[2,1,32], index: 16, kind: input, shape index: {}]   ;;  %s4669_s17 = inlined_call_operand.hbm [shape: f32[2,16,32], index: 17, kind: output, shape index: {}]  }
   0x1   :  { %4676 = sst [smem:[#allocation19_spill]] %s4652_s0 }
   0x2   :  { %4677 = sst [smem:[#allocation20_spill]] %s4653_s1 }
   0x3   :  { %4678 = sst [smem:[#allocation21_spill]] %s4654_s2 }
   0x4   :  { %4679 = sst [smem:[#allocation22_spill]] %s4655_s3 }
   0x5   :  { %4680 = sst [smem:[#allocation23_spill]] %s4657_s5 }
   0x6   :  { %4681 = sst [smem:[#allocation24_spill]] %s4659_s7 }
   0x7   :  { %4682 = sst [smem:[#allocation25_spill]] %s4661_s9 }
   0x8   :  { %4683 = sst [smem:[#allocation26_spill]] %s4662_s10 }
   0x9   :  { %4684 = sst [smem:[#allocation27_spill]] %s4663_s11 }
   0xa   :  { %4685 = sst [smem:[#allocation28_spill]] %s4665_s13 }
   0xb   :  { %4686 = sst [smem:[#allocation29_spill]] %s4666_s14 }
   0xc   :  { %4687 = sst [smem:[#allocation30_spill]] %s4667_s15 }
   0xd   :  { %4688 = sst [smem:[#allocation31_spill]] %s4668_s16 }
   0xe   :  { %4689 = sst [smem:[#allocation32_spill]] %s4669_s17 }
   0xf   :  { %22 = vsyncpa [#allocation5], 0 }
  0x10   :  { %24 = vsyncpa [#allocation5 + $0x1], 0 }
  0x11   :  { %25 = vsyncpa [#allocation8], 0 }
  0x12   :  { %27 = vsyncpa [#allocation8 + $0x1], 0 }
  0x13   :  { %28 = vsyncpa [#allocation6], 0  ;;  %s3717_s24 = smov 0   ;;  %s3719_s25 = smov 0  }
  0x14   :  { %s3721_s26 = smov 0   ;;  %s3723_s27 = smov 0  }
  0x15   :  { %s3725_s28 = smov 0   ;;  %s3727_s29 = smov 0  }
  0x16 LB: > { %4690 = sst [smem:[#allocation13_spill]] %s3594_s25  ;;  %s4671_s0 = sadd.s32 4294967295, %s3610_s29   ;;  %s3610_s29 = sphi %s3727_s29, %s34_s29   ;;  %s3606_s28 = sphi %s3725_s28, %s4744_s28   ;;  %s3602_s27 = sphi %s3723_s27, %s4743_s27   ;;  %s3598_s26 = sphi %s3721_s26, %s4742_s26   ;;  %s3594_s25 = sphi %s3719_s25, %s4741_s25   ;;  %s3590_s24 = sphi %s3717_s24, %s4740_s24  }
  0x17   : > { %4691 = sst [smem:[#allocation14_spill]] %s3598_s26  ;;  %s43_s30 = sadd.s32 1, %s3606_s28 }
  0x18   : > { %4692 = sst [smem:[#allocation15_spill]] %s3606_s28  ;;  %p44_p0 = scmp.ge.s32.totalorder %s43_s30, 2 }
  0x19   : > { %4693 = sst [smem:[#allocation16_spill]] %s3610_s29  ;;  %s107_s18 = sadd.s32 1, %s3598_s26 }
  0x1a   : > { %p114_p1 = scmp.ne.s32.totalorder %s3598_s26, %s3594_s25  ;;  %p115_p2 = scmp.eq.s32.totalorder %s3610_s29, 0 }
  0x1b   : > { %s4746_s30 = smov (%p44_p0, %s43_s30), 0  ;;  %p120_p4 = scmp.ne.s32.totalorder %s3594_s25, %s3590_s24 }
  0x1c   : > { %4694 = sst [smem:[#allocation17_spill]] %s4746_s30  ;;  %p3753_p3 = por %p115_p2, %p114_p1 }
  0x1d   : > { %s102_s1 = ssub.s32 %s3606_s28, %s4746_s30  ;;  %p121_p5 = scmp.eq.s32.totalorder %s4671_s0, 0 }
  0x1e   : > { %p105_p6 = scmp.eq.s32.totalorder %s102_s1, 0  ;;  %p3276_p8 = scmp.lt.s32.totalorder %s3610_s29, 2 }
  0x1f   : > { %p3762_p7 = por %p121_p5, %p120_p4  ;;  %s3771_s22 = sand.u32 1, %s3598_s26  }
  0x20   : > { %s3768_s21 = scalar_select %p105_p6, %s3598_s26, %s107_s18  }
  0x21   : > { %s3223_s23 = sshll.u32 %s3606_s28, 3  ;;  %s3120_s24 = sshll.u32 %s3771_s22, 3 }
  0x22   : > { %4697 = sst [smem:[#allocation18_spill]] %s3768_s21  ;;  %s557_s16 = scalar_lea.vmem [#allocation4], %s3120_s24 }
  0x23   : > { %s4698_s2 = sld [smem:[#allocation21_spill]]  ;;  %s567_s15 = sshll.u32 %s557_s16, 4  ;;  %s568_s15 = int_to_ptr.vmem [resolvable:$true] %s567_s15 }
  0x24   : > { %p3780_p9 = pnand %p3276_p8, %p3753_p3  ;;  %p3126_p10 = scmp.ge.s32.totalorder %s3610_s29, 1 }
  0x25   : > { %p683_p11 = scmp.lt.s32.totalorder %s3610_s29, 3  ;;  %s554_s21 = scalar_lea.sflag [#allocation5], %s3771_s22 }
  0x26   : > { %s3612_s26 = smov 64   ;;  %s3613_s17 = smov 4  }
  0x27   : > { %p684_p12 = pnand %p3126_p10, %p683_p11  ;;  %s3224_s16 = sshll.u32 %s3606_s28, 4 }
  0x28   : > { %s4700_s11 = sld [smem:[#allocation27_spill]]  ;;  %s632_s14 = scalar_lea.sflag [#allocation8], %s3771_s22 }
  0x29   : > { %s564_s0 = scalar_lea.hbm %s4698_s2, %s3223_s23  ;;  %s689_s29 = sand.u32 (!%p684_p12), 1, %s3594_s25  }
  0x2a   : > { %s565_s1 = sshll.u32 %s564_s0, 4  ;;  %s3123_s0 = sshll.u32 %s3771_s22, 4  ;;  %s566_s1 = int_to_ptr.hbm [resolvable:$true] %s565_s1 }
  0x2b   : > { %3272 = dma.hbm_to_vmem [thread:$0]  (!%p3780_p9), %s566_s1, 128, %s568_s15, %s554_s21, %s3612_s26, %s3612_s26, %s3613_s17  }
  0x2c   : > { %s635_s2 = scalar_lea.vmem [#allocation7], %s3123_s0  ;;  %687 = sbr.rel (%p684_p12) target bundleno = 2411 (0x96b), region = 88 }
  0x2d   : > { %s643_s13 = sshll.u32 %s635_s2, 4  ;;  %s3127_s15 = sshll.u32 (!%p684_p12), %s689_s29, 3  ;;  %s644_s13 = int_to_ptr.vmem [resolvable:$true] %s643_s13 }
  0x2e   : > { %s640_s19 = scalar_lea.hbm %s4700_s11, %s3224_s16  ;;  %s690_s21 = scalar_lea.sflag (!%p684_p12), [#allocation5], %s689_s29 }
  0x2f   : > { %s641_s24 = sshll.u32 %s640_s19, 4  ;;  %s3798_s1 = scalar_lea.vmem (!%p684_p12), [#allocation4], %s3127_s15  ;;  %s642_s24 = int_to_ptr.hbm [resolvable:$true] %s641_s24 }
  0x30   : > { %3275 = dma.hbm_to_vmem [thread:$0]  (!%p3780_p9), %s642_s24, 256, %s644_s13, %s632_s14, %s3612_s26, %s3612_s26, %s3613_s17  }
  0x31   : > { %3577 = dma.done.wait (%p3762_p7), %s690_s21, 128  }
  0x32   : > { %3579 = vsyncadd (%p3762_p7), %s690_s21, 4294967168  ;;  %s3128_s2 = sshll.u32 %s689_s29, 4  ;;  %s700_s0 = scalar_lea.sflag [#allocation8], %s689_s29 }
  0x33   : > { %s3804_s16 = scalar_lea.vmem [#allocation7], %s3128_s2 }
  0x34   : > { %3581 = dma.done.wait (%p3762_p7), %s700_s0, 256  }
  0x35   : > { %3583 = vsyncadd (%p3762_p7), %s700_s0, 4294967040  ;;  %p827_p13 = scmp.lt.s32.totalorder %s3602_s27, 1  ;;  %s4701_s3 = sld [smem:[#allocation22_spill]]  ;;  %v3839_v0 = vld [vmem:[%s3798_s1] sm:$0xf] }
  0x36   : > { %s4702_s5 = sld [smem:[#allocation23_spill]]  ;;  %v3842_v1 = vld [vmem:[%s3798_s1] sm:$0xf0]  ;;  %p3137_p0 = scmp.ne.s32.totalorder %s3602_s27, 0 }
  0x37   : > { %s3812_s13 = scalar_select %p827_p13, %s3602_s27, 1 }
  0x38   : > { %s4703_s7 = sld [smem:[#allocation24_spill]] }
  0x39   : > { %s3225_s14 = sshll.u32 %s3812_s13, 4  ;;  %s3228_s0 = sshll.u32 %s3812_s13, 5 }
  0x3a   : > { %s4706_s11 = sld [smem:[#allocation29_spill]] }
  0x3b   : > { %s3822_s17 = scalar_lea.vmem %s4701_s3, %s3225_s14  ;;  %s4707_s22 = sld [smem:[#allocation28_spill]] }
  0x3c   : > { %s3827_s19 = scalar_lea.vmem %s4702_s5, %s3225_s14  ;;  %s4708_s20 = sld [smem:[#allocation30_spill]] }
  0x3d   : > { %s4709_s15 = sld [smem:[#allocation31_spill]] }
  0x3e   : > { %s3836_s26 = scalar_lea.vmem %s4703_s7, %s3225_s14  ;;  %s859_s14 = scalar_lea.vmem %s4664_s12, %s3812_s13 }
  0x3f   : > { %881 = sbr.rel (%p3137_p0) target bundleno = 353 (0x161), region = 100  ;;  %s4710_s7 = sld [smem:[#allocation19_spill]] (!%p3137_p0) }
  0x40   : > { %s867_s28 = scalar_lea.vmem %s4706_s11, %s3812_s13  ;;  %s4711_s27 = sld [smem:[#allocation20_spill]] (!%p3137_p0) }
  0x41   : > { %s3868_s18 = scalar_lea.vmem %s4707_s22, %s3228_s0 }
  0x42   : > { %s870_s9 = scalar_lea.vmem %s4708_s20, %s3812_s13 }
  0x43   : > { %s873_s10 = scalar_lea.vmem %s4709_s15, %s3812_s13 }
  0x44   : > { %v932_v2 = vlaneseq  ;;  %v3243_v28 = vld [vmem:[%s3798_s1] sm:$0xff]   ;;  %vm1203_vm0 = vcmask 261120   ;;  %vm898_vm1 = vcmask 64512  }
  0x45   : > { %v3255_v3 = vld [vmem:[%s4710_s7] sm:$0xf]   ;;  %v3914_v30 = vunpack.c.h.bf16 %v3243_v28  ;;  %v3244_v42 = vunpack.c.l.bf16 %v3243_v28 }
  0x46   : > { %v3256_v4 = vunpack.c.0.s8 %v3255_v3  ;;  %v3882_v5 = vshrl.u32 %v932_v2, 7  ;;  %v3257_v11 = vunpack.c.1.s8 %v3255_v3 }
  0x47   : > { %v924_v32 = vrot.slane %v3914_v30, 1  ;;  %v917_v43 = vrot.slane %v3244_v42, 1  ;;  %v1139_v45 = vperm.slane %v3244_v42, 0  ;;  %v918_v49 = vrot.slane %v3244_v42, 2 }
  0x48   : > { %v911_v6 = vcvt.s32.f32 %v3256_v4  ;;  %3343 = vset.pattern.permute.xlu1 %v3882_v5  ;;  %3342 = vset.pattern.permute.xlu0 %v3882_v5  ;;  %v3888_v12 = vadd.s32 8, %v3882_v5  ;;  %v912_v14 = vcvt.s32.f32 %v3257_v11  ;;  %v919_v52 = vrot.slane %v3244_v42, 3 }
  0x49   : > { %3344 = vset.pattern.permute.xlu2 %v3882_v5  ;;  %v3919_v34 = vperm.slane %v924_v32, 0  ;;  %v1140_v48 = vperm.slane %v917_v43, 0  ;;  %v920_v53 = vrot.slane %v3244_v42, 4  ;;  %v1141_v54 = vperm.slane %v918_v49, 0 }
  0x4a   : > { %v913_v7 = vmul.f32 -1e+30, %v911_v6  ;;  %v3891_v15 = vmul.f32 -1e+30, %v912_v14  ;;  %v1142_v58 = vperm.slane %v919_v52, 0  ;;  %v922_v3 = vrot.slane %v3244_v42, 6 }
  0x4b   : > { %v1143_v59 = vperm.slane %v920_v53, 0  ;;  %v923_v4 = vrot.slane %v3244_v42, 7  ;;  %v925_v52 = vrot.slane %v3914_v30, 2 }
  0x4c   : > { %v944_v8 = vperm.slane %v913_v7, 1  ;;  %v931_v9 = vperm.slane %v913_v7, 0  ;;  %v957_v10 = vperm.slane %v913_v7, 2  ;;  %v983_v13 = vperm.slane %v913_v7, 4 }
  0x4d   : > { %v1048_v16 = vperm.slane %v3891_v15, 1  ;;  %v970_v17 = vperm.slane %v913_v7, 3  ;;  %v1009_v18 = vperm.slane %v913_v7, 6  ;;  %v996_v19 = vperm.slane %v913_v7, 5 }
  0x4e   : > { %v1022_v20 = vperm.slane %v913_v7, 7  ;;  %v1035_v21 = vperm.slane %v3891_v15, 0  ;;  %v1074_v22 = vperm.slane %v3891_v15, 3  ;;  %v1061_v23 = vperm.slane %v3891_v15, 2 }
  0x4f   : > { %v1113_v24 = vperm.slane %v3891_v15, 6  ;;  %v1087_v25 = vperm.slane %v3891_v15, 4  ;;  %v1100_v29 = vperm.slane %v3891_v15, 5  ;;  %v1126_v38 = vperm.slane %v3891_v15, 7 }
  0x50   : > { %949 = vperm.xlu1 %3343, %v944_v8   ;;  %936 = vperm.xlu0 %3342, %v931_v9   ;;  %v1145_v14 = vperm.slane %v922_v3, 0  ;;  %v1146_v15 = vperm.slane %v923_v4, 0 }
  0x51   : > { %962 = vperm.xlu2 %3344, %v957_v10  }
  0x58   : > { %3345 = vset.pattern.permute.xlu1 %v3888_v12  ;;  %988 = vperm.xlu0 %3342, %v983_v13  }
  0x59   : > { %3347 = vset.pattern.permute.xlu2 %v3888_v12 }
  0x60   : > { %955 = vperm.xlu1 %3345, %v944_v8   ;;  %1053 = vperm.xlu0 %3342, %v1048_v16  }
  0x61   : > { %968 = vperm.xlu2 %3347, %v957_v10  }
  0x68   : > { %3346 = vset.pattern.permute.xlu1 %v3882_v5  ;;  %3352 = vset.pattern.permute.xlu0 %v3888_v12 }
  0x69   : > { %981 = vperm.xlu2 %3347, %v970_v17  }
  0x70   : > { %975 = vperm.xlu1 %3346, %v970_v17   ;;  %942 = vperm.xlu0 %3352, %v931_v9  }
  0x71   : > { %3349 = vset.pattern.permute.xlu2 %v3882_v5 }
  0x78   : > { %3348 = vset.pattern.permute.xlu1 %v3888_v12  ;;  %1020 = vperm.xlu0 %3352, %v1009_v18  }
  0x79   : > { %1001 = vperm.xlu2 %3349, %v996_v19  }
  0x80   : > { %994 = vperm.xlu1 %3348, %v983_v13   ;;  %1085 = vperm.xlu0 %3352, %v1074_v22  }
  0x81   : > { %1014 = vperm.xlu2 %3349, %v1009_v18  }
  0x88   : > { %1007 = vperm.xlu1 %3348, %v996_v19   ;;  %3357 = vset.pattern.permute.xlu0 %v3882_v5 }
  0x89   : > { %3351 = vset.pattern.permute.xlu2 %v3888_v12 }
  0x90   : > { %3350 = vset.pattern.permute.xlu1 %v3882_v5  ;;  %1118 = vperm.xlu0 %3357, %v1113_v24  }
  0x91   : > { %1033 = vperm.xlu2 %3351, %v1022_v20  }
  0x98   : > { %1027 = vperm.xlu1 %3350, %v1022_v20   ;;  %3360 = vset.pattern.permute.xlu0 %v3888_v12 }
  0x99   : > { %1046 = vperm.xlu2 %3351, %v1035_v21  }
  0xa0   : > { %1040 = vperm.xlu1 %3350, %v1035_v21  }
  0xa1   : > { %3354 = vset.pattern.permute.xlu2 %v3882_v5 }
  0xa8   : > { %3353 = vset.pattern.permute.xlu1 %v3888_v12 }
  0xa9   : > { %1066 = vperm.xlu2 %3354, %v1061_v23  }
  0xab   : > { %v963_v27 = vpop.permute.xlu2 %962 }
  0xac   : > { %v1175_v9 = vadd.f32 %v1141_v54, %v963_v27 }
  0xb0   : > { %1059 = vperm.xlu1 %3353, %v1048_v16  }
  0xb1   : > { %1079 = vperm.xlu2 %3354, %v1074_v22  }
  0xb8   : > { %1072 = vperm.xlu1 %3353, %v1061_v23  }
  0xb9   : > { %3356 = vset.pattern.permute.xlu2 %v3888_v12 }
  0xbb   : > { %v969_v33 = vpop.permute.xlu2 %968 }
  0xbc   : > { %v1176_v56 = vadd.f32 %v1141_v54, %v969_v33 }
  0xbe   : > { %v1222_v6 = vsel %vm1203_vm0, %v1176_v56, -inf }
  0xc0   : > { %3355 = vset.pattern.permute.xlu1 %v3882_v5 }
  0xc1   : > { %1098 = vperm.xlu2 %3356, %v1087_v25  }
  0xc2   : > { %v937_v26 = vpop.permute.xlu0 %936  ;;  %v950_v39 = vpop.permute.xlu1 %949 }
  0xc3   : > { %v982_v37 = vpop.permute.xlu2 %981  ;;  %v1173_v63 = vadd.f32 %v1140_v48, %v950_v39  ;;  %v1171_v2 = vadd.f32 %v1139_v45, %v937_v26 }
  0xc4   : > { %v1178_v7 = vadd.f32 %v1142_v58, %v982_v37 }
  0xc5   : > { %v1204_v13 = vsel %vm1203_vm0, %v1171_v2, -inf }
  0xc6   : > { %v1224_v17 = vsel %vm1203_vm0, %v1178_v7, -inf }
  0xc8   : > { %1092 = vperm.xlu1 %3355, %v1087_v25  }
  0xc9   : > { %1111 = vperm.xlu2 %3356, %v1100_v29  }
  0xca   : > { %v3916_v31 = vpop.permute.xlu0 %988 }
  0xd0   : > { %1105 = vperm.xlu1 %3355, %v1100_v29   ;;  %v1179_v29 = vadd.f32 %v1143_v59, %v3916_v31 }
  0xd1   : > { %3359 = vset.pattern.permute.xlu2 %v3882_v5  ;;  %v921_v5 = vrot.slane %v3244_v42, 5 }
  0xd2   : > { %v1054_v35 = vpop.permute.xlu0 %1053  ;;  %v956_v41 = vpop.permute.xlu1 %955  ;;  %v1211_v43 = vsel %vm1203_vm0, %v1179_v29, -inf }
  0xd3   : > { %v3923_v36 = vadd.f32 %v3919_v34, %v1054_v35  ;;  %v3927_v40 = vpop.permute.xlu2 %1001  ;;  %v1174_v51 = vadd.f32 %v1140_v48, %v956_v41  ;;  %v1144_v16 = vperm.slane %v921_v5, 0 }
  0xd5   : > { %v1220_v57 = vsel %vm1203_vm0, %v1174_v51, -inf }
  0xd8   : > { %3358 = vset.pattern.permute.xlu1 %v3888_v12  ;;  %v1205_v12 = vsel %vm1203_vm0, %v1173_v63, -inf  ;;  %v1235_v63 = vsel %vm1203_vm0, %v3923_v36, -inf }
  0xd9   : > { %1131 = vperm.xlu2 %3359, %v1126_v38   ;;  %v1206_v21 = vmax.f32 %v1204_v13, %v1205_v12  ;;  %v927_v13 = vrot.slane %v3914_v30, 4 }
  0xdb   : > { %v1015_v47 = vpop.permute.xlu2 %1014  ;;  %v1151_v36 = vperm.slane %v927_v13, 0 }
  0xdc   : > { %v1183_v48 = vadd.f32 %v1145_v14, %v1015_v47 }
  0xde   : > { %v1215_v51 = vsel %vm1203_vm0, %v1183_v48, -inf }
  0xe0   : > { %1124 = vperm.xlu1 %3358, %v1113_v24   ;;  %v1207_v24 = vsel %vm1203_vm0, %v1175_v9, -inf }
  0xe1   : > { %v1208_v37 = vmax.f32 %v1206_v21, %v1207_v24  ;;  %v930_v24 = vrot.slane %v3914_v30, 7 }
  0xe2   : > { %v943_v44 = vpop.permute.xlu0 %942  ;;  %v976_v46 = vpop.permute.xlu1 %975 }
  0xe3   : > { %v1172_v50 = vadd.f32 %v1139_v45, %v943_v44  ;;  %v1177_v18 = vadd.f32 %v1142_v58, %v976_v46  ;;  %v1181_v44 = vadd.f32 %v1144_v16, %v3927_v40 }
  0xe5   : > { %v1219_v55 = vsel %vm1203_vm0, %v1172_v50, -inf  ;;  %v1209_v32 = vsel %vm1203_vm0, %v1177_v18, -inf  ;;  %v1213_v31 = vsel %vm1203_vm0, %v1181_v44, -inf }
  0xe6   : > { %v1221_v60 = vmax.f32 %v1219_v55, %v1220_v57  ;;  %v1210_v41 = vmax.f32 %v1208_v37, %v1209_v32  ;;  %v926_v55 = vrot.slane %v3914_v30, 3  ;;  %v3952_v57 = vperm.slane %v925_v52, 0 }
  0xe7   : > { %v928_v32 = vrot.slane %v3914_v30, 5 }
  0xe8   : > { %1137 = vperm.xlu1 %3358, %v1126_v38   ;;  %v1223_v10 = vmax.f32 %v1221_v60, %v1222_v6  ;;  %v1212_v46 = vmax.f32 %v1210_v41, %v1211_v43  ;;  %v3955_v60 = vperm.slane %v926_v55, 0  ;;  %v1154_v43 = vperm.slane %v930_v24, 0 }
  0xea   : > { %v1021_v11 = vpop.permute.xlu0 %1020  ;;  %v1225_v22 = vmax.f32 %v1223_v10, %v1224_v17  ;;  %v1214_v50 = vmax.f32 %v1212_v46, %v1213_v31  ;;  %v3247_v17 = vld [vmem:[%s4711_s27] sm:$0xff]   ;;  %v1152_v46 = vperm.slane %v928_v32, 0 }
  0xeb   : > { %v1034_v62 = vpop.permute.xlu2 %1033  ;;  %v1184_v20 = vadd.f32 %v1145_v14, %v1021_v11  ;;  %v3252_v21 = vunpack.c.2.s8 %v3247_v17 }
  0xec   : > { %v1186_v26 = vadd.f32 %v1146_v15, %v1034_v62  ;;  %v1216_v56 = vmax.f32 %v1214_v50, %v1215_v51 }
  0xed   : > { %v1230_v35 = vsel %vm1203_vm0, %v1184_v20, -inf  ;;  %v3249_v20 = vunpack.c.1.s8 %v3247_v17 }
  0xee   : > { %v1232_v39 = vsel %vm1203_vm0, %v1186_v26, -inf }
  0xef   : > { %v891_v26 = vcvt.s32.f32 %v3249_v20 }
  0xf1   : > { %v895_v41 = vmul.f32 -10000.0, %v891_v26 }
  0xf2   : > { %v995_v61 = vpop.permute.xlu1 %994  ;;  %v1086_v14 = vpop.permute.xlu0 %1085 }
  0xf3   : > { %v1180_v8 = vadd.f32 %v1143_v59, %v995_v61  ;;  %v3937_v28 = vpop.permute.xlu2 %1046  ;;  %v1147_v59 = vperm.slane %v3914_v30, 0  ;;  %900 = vst.msk [vmem:[#allocation2 + $0x8] sm:$0xff] %vm898_vm1, %v895_v41 }
  0xf5   : > { %v1226_v19 = vsel %vm1203_vm0, %v1180_v8, -inf }
  0xf6   : > { %v1227_v27 = vmax.f32 %v1225_v22, %v1226_v19  ;;  %v3248_v19 = vunpack.c.0.s8 %v3247_v17  ;;  %v3253_v22 = vunpack.c.3.s8 %v3247_v17 }
  0xf8   : > { %v893_v29 = vcvt.s32.f32 %v3253_v22 }
  0xfa   : > { %v1008_v23 = vpop.permute.xlu1 %1007  ;;  %v897_v44 = vmul.f32 -10000.0, %v893_v29 }
  0xfb   : > { %v1182_v25 = vadd.f32 %v1144_v16, %v1008_v23  ;;  %v929_v16 = vrot.slane %v3914_v30, 6 }
  0xfc   : > { %902 = vst.msk [vmem:[#allocation2 + $0x18] sm:$0xff] %vm898_vm1, %v897_v44 }
  0xfd   : > { %v1228_v33 = vsel %vm1203_vm0, %v1182_v25, -inf  ;;  %v890_v25 = vcvt.s32.f32 %v3248_v19 }
  0xfe   : > { %v1229_v38 = vmax.f32 %v1227_v27, %v1228_v33  ;;  %v892_v27 = vcvt.s32.f32 %v3252_v21 }
 0x100   : > { %v1231_v42 = vmax.f32 %v1229_v38, %v1230_v35  ;;  %v1153_v35 = vperm.slane %v929_v16, 0 }
 0x102   : > { %v1233_v45 = vmax.f32 %v1231_v42, %v1232_v39  ;;  %v1119_v38 = vpop.permute.xlu0 %1118  ;;  %v894_v39 = vmul.f32 -10000.0, %v890_v25  ;;  %v896_v42 = vmul.f32 -10000.0, %v892_v27 }
 0x103   : > { %v1067_v49 = vpop.permute.xlu2 %1066  ;;  %v1199_v31 = vadd.f32 %v1153_v35, %v1119_v38 }
 0x104   : > { %1265 = vst.msk [vmem:[#allocation9 + $0x8] sm:$0xff] %vm1203_vm0, %v1233_v45  ;;  %v1191_v61 = vadd.f32 %v3952_v57, %v1067_v49 }
 0x105   : > { %899 = vst.msk [vmem:[#allocation2] sm:$0xff] %vm898_vm1, %v894_v39  ;;  %v1245_v52 = vsel %vm1203_vm0, %v1199_v31, -inf }
 0x106   : > { %v1237_v4 = vsel %vm1203_vm0, %v1191_v61, -inf  ;;  %901 = vst.msk [vmem:[#allocation2 + $0x10] sm:$0xff] %vm898_vm1, %v896_v42 }
 0x10a   : > { %v1028_v53 = vpop.permute.xlu1 %1027 }
 0x10b   : > { %v1185_v54 = vadd.f32 %v1146_v15, %v1028_v53  ;;  %v1080_v47 = vpop.permute.xlu2 %1079 }
 0x10c   : > { %v1193_v3 = vadd.f32 %v3955_v60, %v1080_v47 }
 0x10d   : > { %v1217_v40 = vsel %vm1203_vm0, %v1185_v54, -inf  ;;  %v1188_v54 = vadd.f32 %v1147_v59, %v3937_v28 }
 0x10e   : > { %v1218_v58 = vmax.f32 %v1216_v56, %v1217_v40  ;;  %v1239_v7 = vsel %vm1203_vm0, %v1193_v3, -inf }
 0x10f   : > { %v1249_v61 = vsel %vm1203_vm0, %v1188_v54, -inf }
 0x110   : > { %1264 = vst.msk [vmem:[#allocation9] sm:$0xff] %vm1203_vm0, %v1218_v58 }
 0x112   : > { %v1041_v62 = vpop.permute.xlu1 %1040 }
 0x113   : > { %v1187_v2 = vadd.f32 %v1147_v59, %v1041_v62 }
 0x115   : > { %v1234_v5 = vsel %vm1203_vm0, %v1187_v2, -inf }
 0x116   : > { %v1236_v6 = vmax.f32 %v1234_v5, %v1235_v63 }
 0x118   : > { %v1238_v8 = vmax.f32 %v1236_v6, %v1237_v4 }
 0x11a   : > { %v1240_v9 = vmax.f32 %v1238_v8, %v1239_v7 }
 0x11b   : > { %v1099_v11 = vpop.permute.xlu2 %1098 }
 0x11c   : > { %v1196_v3 = vadd.f32 %v1151_v36, %v1099_v11 }
 0x11e   : > { %v1256_v4 = vsel %vm1203_vm0, %v1196_v3, -inf }
 0x122   : > { %v1060_v10 = vpop.permute.xlu1 %1059 }
 0x123   : > { %v1112_v15 = vpop.permute.xlu2 %1111  ;;  %v1190_v50 = vadd.f32 %v3919_v34, %v1060_v10  ;;  %v1194_v34 = vadd.f32 %v3955_v60, %v1086_v14 }
 0x124   : > { %v1198_v5 = vadd.f32 %v1152_v46, %v1112_v15 }
 0x125   : > { %v1250_v58 = vsel %vm1203_vm0, %v1190_v50, -inf  ;;  %v1254_v28 = vsel %vm1203_vm0, %v1194_v34, -inf }
 0x126   : > { %v1251_v63 = vmax.f32 %v1249_v61, %v1250_v58  ;;  %v1258_v8 = vsel %vm1203_vm0, %v1198_v5, -inf }
 0x12a   : > { %v1073_v12 = vpop.permute.xlu1 %1072 }
 0x12b   : > { %v1192_v55 = vadd.f32 %v3952_v57, %v1073_v12 }
 0x12d   : > { %v1252_v62 = vsel %vm1203_vm0, %v1192_v55, -inf }
 0x12e   : > { %v1253_v2 = vmax.f32 %v1251_v63, %v1252_v62 }
 0x130   : > { %v1255_v57 = vmax.f32 %v1253_v2, %v1254_v28 }
 0x132   : > { %v1257_v7 = vmax.f32 %v1255_v57, %v1256_v4 }
 0x133   : > { %v1132_v45 = vpop.permute.xlu2 %1131 }
 0x134   : > { %v1201_v30 = vadd.f32 %v1154_v43, %v1132_v45  ;;  %v1259_v10 = vmax.f32 %v1257_v7, %v1258_v8 }
 0x136   : > { %v1247_v56 = vsel %vm1203_vm0, %v1201_v30, -inf }
 0x13a   : > { %v1093_v18 = vpop.permute.xlu1 %1092 }
 0x13b   : > { %v1195_v23 = vadd.f32 %v1151_v36, %v1093_v18 }
 0x13d   : > { %v1241_v33 = vsel %vm1203_vm0, %v1195_v23, -inf }
 0x13e   : > { %v1242_v37 = vmax.f32 %v1240_v9, %v1241_v33 }
 0x142   : > { %v1106_v48 = vpop.permute.xlu1 %1105 }
 0x143   : > { %v1197_v49 = vadd.f32 %v1152_v46, %v1106_v48 }
 0x145   : > { %v1243_v51 = vsel %vm1203_vm0, %v1197_v49, -inf }
 0x146   : > { %v1244_v53 = vmax.f32 %v1242_v37, %v1243_v51 }
 0x148   : > { %v1246_v40 = vmax.f32 %v1244_v53, %v1245_v52 }
 0x14a   : > { %v1248_v47 = vmax.f32 %v1246_v40, %v1247_v56 }
 0x14c   : > { %1266 = vst.msk [vmem:[#allocation9 + $0x10] sm:$0xff] %vm1203_vm0, %v1248_v47 }
 0x152   : > { %v1125_v59 = vpop.permute.xlu1 %1124 }
 0x153   : > { %v1200_v6 = vadd.f32 %v1153_v35, %v1125_v59 }
 0x155   : > { %v1260_v9 = vsel %vm1203_vm0, %v1200_v6, -inf }
 0x156   : > { %v1261_v13 = vmax.f32 %v1259_v10, %v1260_v9 }
 0x15a   : > { %v1138_v60 = vpop.permute.xlu1 %1137 }
 0x15b   : > { %v1202_v12 = vadd.f32 %v1154_v43, %v1138_v60 }
 0x15d   : > { %v1262_v14 = vsel %vm1203_vm0, %v1202_v12, -inf }
 0x15e   : > { %v1263_v11 = vmax.f32 %v1261_v13, %v1262_v14 }
 0x160   : > { %1267 = vst.msk [vmem:[#allocation9 + $0x18] sm:$0xff] %vm1203_vm0, %v1263_v11 }
 0x161 PF: > { %v3231_v15 = vld [vmem:[%s3822_s17 + $0x8] sm:$0xff]  ;;  %v3230_v16 = vld [vmem:[%s3822_s17] sm:$0xff]  ;;  %v1268_v17 = vld [vmem:[#allocation9] sm:$0xff]  ;;  %vm1294_vm2 = vcmask 261120   ;;  %v3151_v24 = vor.u32 %v3842_v1, %v3839_v0  ;;  %s4712_s17 = scalar_lea.vmem %s4658_s6, %s3812_s13  ;;  %s4713_s2 = scalar_lea.vmem %s4656_s4, %s3812_s13  ;;  %vm1377_vm3 = vcmask 64512   ;;  %vm1544_vm4 = vcmask 1043456  }
 0x162   : > { %v3233_v36 = vld [vmem:[%s3827_s19 + $0x8] sm:$0xff]  ;;  %v1269_v18 = vld [vmem:[#allocation9 + $0x8] sm:$0xff]  ;;  %1307 = vmatpush.bf16.msra.mxu0 %v3231_v15  ;;  %3258 = vmatpush.bf16.msra.mxu2 %v3231_v15  ;;  %v1270_v19 = vld [vmem:[#allocation9 + $0x10] sm:$0xff]  ;;  %s3614_s0 = smov 120   ;;  %s3615_s29 = smov 112  }
 0x163   : > { %1358 = vmatpush.bf16.msra.mxu1 %v3233_v36  ;;  %v3232_v21 = vld [vmem:[%s3827_s19] sm:$0xff]  ;;  %v1272_v22 = vpack.c.bf16 %v1269_v18, %v1268_v17  ;;  %s3616_s22 = smov 104   ;;  %s3617_s30 = smov 96   ;;  %v4039_v36 = vld [vmem:[#allocation2 + $0x10] sm:$0xff] }
 0x164   : > { %v3362_v25 = vld [vmem:[%s4712_s17] ss:$0 sm:$0xff]  ;;  %s3618_s23 = smov 88   ;;  %s3619_s3 = smov 80  }
 0x165   : > { %v3361_v27 = vld [vmem:[%s4713_s2] ss:$0 sm:$0xff]  ;;  %s3620_s24 = smov 72   ;;  %s3621_s21 = smov 8  }
 0x166   : > { %1308 = vmatpush.bf16.msra.mxu0 %v3230_v16  ;;  %3259 = vmatpush.bf16.msra.mxu2 %v3230_v16  ;;  %v4035_v12 = vld [vmem:[#allocation2] sm:$0xff]  ;;  %s3622_s5 = smov 16   ;;  %s3623_s7 = smov 24  }
 0x167   : > { %v1271_v20 = vld [vmem:[#allocation9 + $0x18] sm:$0xff]  ;;  %1359 = vmatpush.bf16.msra.mxu1 %v3232_v21  ;;  %s4728_s25 = scalar_lea.vmem %s4660_s8, %s3812_s13  ;;  %s4729_s1 = sld [smem:[#allocation25_spill]] }
 0x168   : > { %v1273_v23 = vpack.c.bf16 %v1271_v20, %v1270_v19  ;;  %s4731_s15 = sld [smem:[#allocation26_spill]]  ;;  %s3626_s27 = smov 128  }
 0x169   : > { %3146 = vmatmul.msk.bf16.vlgmr.msra.gmra.mxu0 %vm1294_vm2, %v1272_v22  ;;  %s4737_s11 = sld [smem:[#allocation32_spill]] }
 0x16a   : > { %3147 = vmatmul.msk.bf16.vlgmr.msra.gmra.mxu2 %vm1294_vm2, %v1273_v23  ;;  %3160 = vmatmul.msk.bf16.vlgmr.msra.gmra.mxu1 %vm1294_vm2, %v3151_v24  ;;  %v4045_v24 = vld [vmem:[#allocation2 + $0x8] sm:$0xff] }
 0x16d   : > { %s4730_s20 = scalar_lea.vmem %s4729_s1, %s3812_s13 }
 0x16e   : > { %s4732_s2 = scalar_lea.vmem %s4731_s15, %s3812_s13 }
 0x1e6   : > { %v1310_v26 = vpop.f32.mrf.mxu0 }
 0x1e7   : > { %v1361_v29 = vpop.f32.mrf.mxu1  ;;  %v1311_v32 = vadd.f32 %v3361_v27, %v1310_v26 }
 0x1e8   : > { %v1362_v0 = vadd.f32 %v3362_v25, %v1361_v29 }
 0x1e9   : > { %v1320_v41 = vpack.c.bf16 %v1311_v32, %v1311_v32  ;;  %v4051_v32 = vld [vmem:[#allocation2 + $0x18] sm:$0xff] }
 0x1ea   : > { %v1366_v1 = vpack.c.bf16 %v1362_v0, %v1362_v0 }
 0x1eb   : > { %v1374_v48 = vunpack.c.l.b16 %v1320_v41 }
 0x1ec   : > { %v1537_v33 = vunpack.c.l.b16 %v1366_v1  ;;  %v1382_v37 = vsel %vm1377_vm3, %v1366_v1, 0 }
 0x1ed   : > { %v1315_v35 = vpop.f32.mrf.mxu2  ;;  %1391 = vmatpush.bf16.xpose.msrb.mxu2 %v1382_v37 }
 0x1ee   : > { %v4010_v38 = vpack.c.b16 %v1537_v33, %v1537_v33  ;;  %v1312_v39 = vpop.f32.mrf.mxu0  ;;  %v1316_v45 = vadd.f32 %v3361_v27, %v1315_v35 }
 0x1ef   : > { %v1313_v42 = vadd.f32 %v3361_v27, %v1312_v39  ;;  %v1363_v43 = vpop.f32.mrf.mxu1 }
 0x1f0   : > { %v1364_v44 = vadd.f32 %v3362_v25, %v1363_v43  ;;  %1598 = vrot.lane.b32.xlu0 %v4010_v38, %s3614_s0  ;;  %v1322_v52 = vpack.c.bf16 %v1316_v45, %v1316_v45 }
 0x1f1   : > { %v1321_v46 = vpack.c.bf16 %v1313_v42, %v1313_v42 }
 0x1f2   : > { %v1367_v31 = vpack.c.bf16 %v1364_v44, %v1364_v44  ;;  %v1400_v40 = vunpack.c.l.b16 %v1322_v52 }
 0x1f3   : > { %v1375_v49 = vunpack.c.l.b16 %v1321_v46 }
 0x1f4   : > { %v1568_v30 = vunpack.c.l.b16 %v1367_v31  ;;  %v1407_v51 = vsel %vm1377_vm3, %v1367_v31, 0 }
 0x1f5   : > { %v1317_v50 = vpop.f32.mrf.mxu2  ;;  %v1376_v53 = vpack.c.b16 %v1375_v49, %v1374_v48  ;;  %1416 = vmatpush.bf16.xpose.msra.mxu3 %v1407_v51 }
 0x1f6   : > { %v1318_v54 = vadd.f32 %v3361_v27, %v1317_v50  ;;  %v4014_v55 = vpack.c.b16 %v1568_v30, %v1568_v30 }
 0x1f7   : > { %3161 = vmatmul.msk.bf16.vlgmr.msrb.gmra.mxu2 %vm1377_vm3, %v1376_v53 }
 0x1f8   : > { %v1323_v56 = vpack.c.bf16 %v1318_v54, %v1318_v54  ;;  %1622 = vrot.lane.b32.xlu1 %v4014_v55, %s3614_s0  ;;  %1596 = vrot.lane.b32.xlu0 %v1376_v53, %s3614_s0 }
 0x1fa   : > { %v1401_v58 = vunpack.c.l.b16 %v1323_v56 }
 0x1fc   : > { %v1402_v47 = vpack.c.b16 %v1401_v58, %v1400_v40 }
 0x1fe   : > { %1620 = vrot.lane.b32.xlu2 %v1402_v47, %s3614_s0  ;;  %3162 = vmatmul.msk.bf16.vlgmr.msra.gmra.mxu3 %vm1377_vm3, %v1402_v47 }
 0x200   : > { %1829 = vrot.lane.b32.xlu1 %v4010_v38, %s3615_s29  ;;  %1853 = vrot.lane.b32.xlu0 %v4014_v55, %s3615_s29 }
 0x206   : > { %1827 = vrot.lane.b32.xlu2 %v1376_v53, %s3615_s29 }
 0x208   : > { %2060 = vrot.lane.b32.xlu1 %v4010_v38, %s3616_s22  ;;  %2058 = vrot.lane.b32.xlu0 %v1376_v53, %s3616_s22 }
 0x20e   : > { %1851 = vrot.lane.b32.xlu2 %v1402_v47, %s3615_s29 }
 0x210   : > { %2084 = vrot.lane.b32.xlu1 %v4014_v55, %s3616_s22  ;;  %1539 = vrot.lane.b32.xlu0 %v4010_v38, %s3617_s30 }
 0x216   : > { %2082 = vrot.lane.b32.xlu2 %v1402_v47, %s3616_s22 }
 0x218   : > { %1570 = vrot.lane.b32.xlu1 %v4014_v55, %s3617_s30 }
 0x21e   : > { %1757 = vrot.lane.b32.xlu2 %v4010_v38, %s3618_s23 }
 0x258   : > { %v1621_v61 = vpop.permute.xlu2 %1620 }
 0x260   : > { %v1828_v34 = vpop.permute.xlu2 %1827 }
 0x262   : > { %v1599_v62 = vpop.permute.xlu0 %1598 }
 0x263   : > { %v1604_v63 = vsel %vm1377_vm3, %v1599_v62, 0 }
 0x264   : > { %1613 = vmatpush.bf16.xpose.msrb.mxu3 %v1604_v63 }
 0x268   : > { %v1852_v57 = vpop.permute.xlu2 %1851 }
 0x26a   : > { %v1623_v2 = vpop.permute.xlu1 %1622  ;;  %v1597_v3 = vpop.permute.xlu0 %1596 }
 0x26b   : > { %3165 = vmatmul.msk.bf16.vlgmr.msrb.gmra.mxu3 %vm1377_vm3, %v1597_v3  ;;  %v1628_v28 = vsel %vm1377_vm3, %v1623_v2, 0 }
 0x26c   : > { %1637 = vmatpush.bf16.xpose.msrb.mxu0 %v1628_v28 }
 0x270   : > { %v2083_v7 = vpop.permute.xlu2 %2082 }
 0x272   : > { %v1830_v59 = vpop.permute.xlu1 %1829  ;;  %v1854_v4 = vpop.permute.xlu0 %1853 }
 0x273   : > { %v1835_v5 = vsel %vm1377_vm3, %v1830_v59, 0  ;;  %v1859_v6 = vsel %vm1377_vm3, %v1854_v4, 0  ;;  %3166 = vmatmul.msk.bf16.vlgmr.msrb.gmra.mxu0 %vm1377_vm3, %v1621_v61 }
 0x274   : > { %1844 = vmatpush.bf16.xpose.msra.mxu3 %v1835_v5  ;;  %1868 = vmatpush.bf16.xpose.msra.mxu0 %v1859_v6 }
 0x278   : > { %v1758_v16 = vpop.permute.xlu2 %1757 }
 0x279   : > { %v1763_v25 = vsel %vm1544_vm4, %v1758_v16, 0 }
 0x27a   : > { %v2061_v8 = vpop.permute.xlu1 %2060  ;;  %v2059_v9 = vpop.permute.xlu0 %2058 }
 0x27b   : > { %v2066_v10 = vsel %vm1377_vm3, %v2061_v8, 0  ;;  %v1393_v60 = vpop.f32.mrf.mxu2  ;;  %3169 = vmatmul.msk.bf16.vlgmr.msra.gmra.mxu3 %vm1377_vm3, %v1828_v34 }
 0x27c   : > { %v1423_v13 = vmul.f32 0.35355338, %v1393_v60  ;;  %2075 = vmatpush.bf16.xpose.msrb.mxu3 %v2066_v10 }
 0x27e   : > { %v1427_v14 = vadd.f32 %v1423_v13, %v4035_v12 }
 0x280   : > { %v1431_v15 = vsel %vm1377_vm3, %v1427_v14, -inf }
 0x281   : > { %v1418_v11 = vpop.f32.mrf.mxu3  ;;  %1432 = vmax.xlane.f32.xlu0 %v1431_v15 }
 0x282   : > { %v1425_v17 = vmul.f32 0.35355338, %v1418_v11  ;;  %v2085_v18 = vpop.permute.xlu1 %2084  ;;  %v1540_v19 = vpop.permute.xlu0 %1539 }
 0x283   : > { %v2090_v20 = vsel %vm1377_vm3, %v2085_v18, 0  ;;  %v1395_v21 = vpop.f32.mrf.mxu2  ;;  %3170 = vmatmul.msk.bf16.vlgmr.msra.gmra.mxu0 %vm1377_vm3, %v1852_v57  ;;  %v1546_v22 = vsel %vm1544_vm4, %v1540_v19, 0 }
 0x284   : > { %v1429_v23 = vadd.f32 %v1425_v17, %v4039_v36  ;;  %v1424_v26 = vmul.f32 0.35355338, %v1395_v21  ;;  %1555 = vmatpush.bf16.msrb.mxu1 %v1546_v22  ;;  %2099 = vmatpush.bf16.xpose.msrb.mxu0 %v2090_v20 }
 0x286   : > { %v1437_v27 = vsel %vm1377_vm3, %v1429_v23, -inf  ;;  %v1428_v29 = vadd.f32 %v1424_v26, %v4045_v24 }
 0x287   : > { %1438 = vmax.xlane.f32.xlu2 %v1437_v27 }
 0x288   : > { %1772 = vmatpush.bf16.msra.mxu1 %v1763_v25  ;;  %v1434_v1 = vsel %vm1377_vm3, %v1428_v29, -inf }
 0x289   : > { %v1420_v0 = vpop.f32.mrf.mxu3  ;;  %1435 = vmax.xlane.f32.xlu1 %v1434_v1 }
 0x28a   : > { %v1426_v33 = vmul.f32 0.35355338, %v1420_v0  ;;  %v1571_v35 = vpop.permute.xlu1 %1570 }
 0x28b   : > { %v1576_v37 = vsel %vm1544_vm4, %v1571_v35, 0  ;;  %3173 = vmatmul.msk.bf16.vlgmr.msrb.gmra.mxu3 %vm1377_vm3, %v2059_v9 }
 0x28c   : > { %v1430_v39 = vadd.f32 %v1426_v33, %v4051_v32  ;;  %1585 = vmatpush.bf16.msra.mxu2 %v1576_v37 }
 0x28e   : > { %v1440_v41 = vsel %vm1377_vm3, %v1430_v39, -inf }
 0x28f   : > { %1441 = vmax.xlane.f32.xlu2 %v1440_v41 }
 0x293   : > { %3174 = vmatmul.msk.bf16.vlgmr.msrb.gmra.mxu0 %vm1377_vm3, %v2083_v7 }
 0x2ee   : > { %v1615_v42 = vpop.f32.mrf.mxu3 }
 0x2ef   : > { %v1644_v43 = vmul.f32 0.35355338, %v1615_v42 }
 0x2f0   : > { %v1639_v44 = vpop.f32.mrf.mxu0 }
 0x2f1   : > { %v1646_v45 = vmul.f32 0.35355338, %v1639_v44  ;;  %v4059_v46 = vadd.f32 %v1644_v43, %v4035_v12 }
 0x2f3   : > { %v1652_v31 = vsel %vm1377_vm3, %v4059_v46, -inf  ;;  %v4064_v48 = vadd.f32 %v1646_v45, %v4039_v36 }
 0x2f4   : > { %1653 = vmax.xlane.f32.xlu0 %v1652_v31  ;;  %v1433_v49 = vpop.xlane.xlu0 %1432 }
 0x2f5   : > { %v1443_v30 = vsub.f32 %v1427_v14, %v1433_v49  ;;  %v1658_v50 = vsel %vm1377_vm3, %v4064_v48, -inf }
 0x2f6   : > { %1659 = vmax.xlane.f32.xlu2 %v1658_v50  ;;  %v1617_v51 = vpop.f32.mrf.mxu3 }
 0x2f7   : > { %v1447_v52 = vmul.f32 1.442695, %v1443_v30  ;;  %v1645_v53 = vmul.f32 0.35355338, %v1617_v51 }
 0x2f8   : > { %v1641_v54 = vpop.f32.mrf.mxu0 }
 0x2f9   : > { %v1647_v56 = vmul.f32 0.35355338, %v1641_v54  ;;  %v4069_v58 = vadd.f32 %v1645_v53, %v4045_v24  ;;  %3370 = vpow2.f32 %v1447_v52 }
 0x2fa   : > { %v1439_v40 = vpop.xlane.xlu2 %1438 }
 0x2fb   : > { %v1445_v47 = vsub.f32 %v1429_v23, %v1439_v40  ;;  %v1655_v61 = vsel %vm1377_vm3, %v4069_v58, -inf  ;;  %v4074_v62 = vadd.f32 %v1647_v56, %v4051_v32 }
 0x2fc   : > { %1656 = vmax.xlane.f32.xlu1 %v1655_v61  ;;  %v1436_v63 = vpop.xlane.xlu1 %1435 }
 0x2fd   : > { %v1451_v34 = vmul.f32 1.442695, %v1445_v47  ;;  %v1444_v2 = vsub.f32 %v1428_v29, %v1436_v63  ;;  %v1661_v3 = vsel %vm1377_vm3, %v4074_v62, -inf }
 0x2fe   : > { %v1846_v28 = vpop.f32.mrf.mxu3  ;;  %1662 = vmax.xlane.f32.xlu0 %v1661_v3 }
 0x2ff   : > { %3372 = vpow2.f32 %v1451_v34  ;;  %v4078_v57 = vpop.eup %3370  ;;  %v1449_v59 = vmul.f32 1.442695, %v1444_v2  ;;  %v1875_v8 = vmul.f32 0.35355338, %v1846_v28 }
 0x300   : > { %v1870_v4 = vpop.f32.mrf.mxu0  ;;  %v1455_v9 = vsel %vm1377_vm3, %v4078_v57, 0.0 }
 0x301   : > { %v1877_v5 = vmul.f32 0.35355338, %v1870_v4  ;;  %3374 = vpow2.f32 %v1449_v59  ;;  %v4092_v16 = vadd.f32 %v1875_v8, %v4035_v12 }
 0x302   : > { %v1442_v6 = vpop.xlane.xlu2 %1441 }
 0x303   : > { %v1446_v7 = vsub.f32 %v1430_v39, %v1442_v6  ;;  %v4083_v10 = vadd.f32 %v1877_v5, %v4039_v36  ;;  %v1883_v20 = vsel %vm1377_vm3, %v4092_v16, -inf }
 0x304   : > { %1456 = vadd.xlane.f32.xlu1 %v1455_v9 }
 0x305   : > { %v4085_v60 = vpop.eup %3372  ;;  %v1453_v13 = vmul.f32 1.442695, %v1446_v7  ;;  %v1889_v14 = vsel %vm1377_vm3, %v4083_v10, -inf }
 0x306   : > { %v1461_v11 = vsel %vm1377_vm3, %v4085_v60, 0.0  ;;  %v1848_v15 = vpop.f32.mrf.mxu3  ;;  %1890 = vmax.xlane.f32.xlu0 %v1889_v14 }
 0x307   : > { %3376 = vpow2.f32 %v1453_v13  ;;  %1462 = vadd.xlane.f32.xlu2 %v1461_v11  ;;  %v4094_v18 = vpop.eup %3374  ;;  %v1876_v22 = vmul.f32 0.35355338, %v1848_v15 }
 0x308   : > { %v1872_v17 = vpop.f32.mrf.mxu0  ;;  %v1458_v25 = vsel %vm1377_vm3, %v4094_v18, 0.0 }
 0x309   : > { %v1878_v19 = vmul.f32 0.35355338, %v1872_v17  ;;  %v4108_v1 = vadd.f32 %v1876_v22, %v4045_v24 }
 0x30b   : > { %v4105_v27 = vadd.f32 %v1878_v19, %v4051_v32  ;;  %v1886_v39 = vsel %vm1377_vm3, %v4108_v1, -inf }
 0x30c   : > { %1884 = vmax.xlane.f32.xlu1 %v1883_v20 }
 0x30d   : > { %v4098_v21 = vpop.eup %3376  ;;  %v1892_v33 = vsel %vm1377_vm3, %v4105_v27, -inf }
 0x30e   : > { %v1464_v23 = vsel %vm1377_vm3, %v4098_v21, 0.0  ;;  %v2077_v26 = vpop.f32.mrf.mxu3 }
 0x30f   : > { %1465 = vadd.xlane.f32.xlu0 %v1464_v23  ;;  %1459 = vadd.xlane.f32.xlu2 %v1458_v25  ;;  %v2106_v41 = vmul.f32 0.35355338, %v2077_v26 }
 0x310   : > { %v2101_v29 = vpop.f32.mrf.mxu0 }
 0x311   : > { %v2108_v0 = vmul.f32 0.35355338, %v2101_v29 }
 0x313   : > { %v4113_v35 = vadd.f32 %v2108_v0, %v4039_v36  ;;  %v4123_v36 = vadd.f32 %v2106_v41, %v4035_v12 }
 0x314   : > { %1893 = vmax.xlane.f32.xlu1 %v1892_v33 }
 0x315   : > { %v2120_v37 = vsel %vm1377_vm3, %v4113_v35, -inf  ;;  %v2114_v51 = vsel %vm1377_vm3, %v4123_v36, -inf }
 0x316   : > { %v2079_v42 = vpop.f32.mrf.mxu3 }
 0x317   : > { %2121 = vmax.xlane.f32.xlu0 %v2120_v37  ;;  %1887 = vmax.xlane.f32.xlu2 %v1886_v39  ;;  %v2107_v43 = vmul.f32 0.35355338, %v2079_v42 }
 0x318   : > { %v2103_v44 = vpop.f32.mrf.mxu0 }
 0x319   : > { %v2109_v45 = vmul.f32 0.35355338, %v2103_v44  ;;  %v4120_v31 = vadd.f32 %v2107_v43, %v4045_v24 }
 0x31b   : > { %v4126_v49 = vadd.f32 %v2109_v45, %v4051_v32  ;;  %v2117_v50 = vsel %vm1377_vm3, %v4120_v31, -inf }
 0x31d   : > { %v2123_v30 = vsel %vm1377_vm3, %v4126_v49, -inf }
 0x31e   : > { %2124 = vmax.xlane.f32.xlu1 %v2123_v30 }
 0x31f   : > { %2118 = vmax.xlane.f32.xlu0 %v2117_v50  ;;  %2115 = vmax.xlane.f32.xlu2 %v2114_v51 }
 0x367   : > { %v1654_v24 = vpop.xlane.xlu0 %1653 }
 0x368   : > { %v1664_v52 = vsub.f32 %v4059_v46, %v1654_v24 }
 0x369   : > { %v1660_v12 = vpop.xlane.xlu2 %1659 }
 0x36a   : > { %v1668_v53 = vmul.f32 1.442695, %v1664_v52  ;;  %v1666_v32 = vsub.f32 %v4064_v48, %v1660_v12 }
 0x36c   : > { %3378 = vpow2.f32 %v1668_v53  ;;  %v1672_v54 = vmul.f32 1.442695, %v1666_v32 }
 0x36e   : > { %3380 = vpow2.f32 %v1672_v54 }
 0x36f   : > { %v1657_v56 = vpop.xlane.xlu1 %1656 }
 0x370   : > { %v1665_v40 = vsub.f32 %v4069_v58, %v1657_v56 }
 0x371   : > { %v1663_v47 = vpop.xlane.xlu0 %1662 }
 0x372   : > { %v4137_v61 = vpop.eup %3378  ;;  %v1670_v34 = vmul.f32 1.442695, %v1665_v40  ;;  %v1667_v63 = vsub.f32 %v4074_v62, %v1663_v47 }
 0x373   : > { %v1676_v2 = vsel %vm1377_vm3, %v4137_v61, 0.0 }
 0x374   : > { %3382 = vpow2.f32 %v1670_v34  ;;  %1677 = vadd.xlane.f32.xlu1 %v1676_v2  ;;  %v1674_v46 = vmul.f32 1.442695, %v1667_v63  ;;  %v4142_v48 = vpop.eup %3380 }
 0x375   : > { %v1682_v62 = vsel %vm1377_vm3, %v4142_v48, 0.0 }
 0x377   : > { %v1457_v3 = vpop.xlane.xlu1 %1456 }
 0x378   : > { %3384 = vrcp.f32 %v1457_v3  ;;  %v1476_v20 = vand.u32 2147483647, %v1457_v3  ;;  %v1478_v22 = vand.u32 2147483648, %v1457_v3  ;;  %vm1472_vm7 = vweird.f32 %v1457_v3 }
 0x379   : > { %3386 = vpow2.f32 %v1674_v46  ;;  %v1891_v28 = vpop.xlane.xlu0 %1890 }
 0x37a   : > { %v1463_v58 = vpop.xlane.xlu2 %1462  ;;  %v4144_v59 = vpop.eup %3382  ;;  %v1897_v4 = vsub.f32 %v4083_v10, %v1891_v28  ;;  %vm4170_vm9 = vcmp.eq.f32.partialorder %v1476_v20, 8.507059e+37  ;;  %v1479_v44 = vor.u32 1.1754944e-38, %v1478_v22 }
 0x37b   : > { %3388 = vrcp.f32 %v1463_v58  ;;  %v1679_v5 = vsel %vm1377_vm3, %v4144_v59, 0.0  ;;  %v1508_v33 = vand.u32 2147483648, %v1463_v58  ;;  %vm1502_vm10 = vweird.f32 %v1463_v58 }
 0x37c   : > { %v1903_v6 = vmul.f32 1.442695, %v1897_v4  ;;  %1683 = vadd.xlane.f32.xlu1 %v1682_v62  ;;  %1680 = vadd.xlane.f32.xlu2 %v1679_v5 }
 0x37d   : > { %v1509_v51 = vor.u32 1.1754944e-38, %v1508_v33 }
 0x37e   : > { %v3385_v7 = vpop.eup %3384  ;;  %3390 = vpow2.f32 %v1903_v6 }
 0x37f   : > { %v4151_v8 = vpop.eup %3386  ;;  %v1468_v9 = vmul.f32 %v3385_v7, %v1457_v3  ;;  %v1885_v13 = vpop.xlane.xlu1 %1884  ;;  %vm1473_vm5 = vweird.f32 %v3385_v7 }
 0x380   : > { %v1895_v11 = vsub.f32 %v4092_v16, %v1885_v13  ;;  %v1685_v29 = vsel %vm1377_vm3, %v4151_v8, 0.0  ;;  %v1506_v16 = vand.u32 2147483647, %v1463_v58  ;;  %vm4166_vm8 = vmor %vm1472_vm7, %vm1473_vm5 }
 0x381   : > { %v3389_v14 = vpop.eup %3388  ;;  %v1469_v10 = vsub.f32 1.0, %v1468_v9 }
 0x382   : > { %v1498_v15 = vmul.f32 %v3389_v14, %v1463_v58  ;;  %v4154_v17 = vpop.xlane.xlu0 %1465  ;;  %v4156_v19 = vpop.xlane.xlu2 %1459  ;;  %v1899_v23 = vmul.f32 1.442695, %v1895_v11  ;;  %vm1503_vm6 = vweird.f32 %v3389_v14  ;;  %vm1507_vm12 = vcmp.eq.f32.partialorder %v1506_v16, 8.507059e+37 }
 0x383   : > { %3392 = vrcp.f32 %v4154_v17  ;;  %v1470_v25 = vmul.f32 %v3385_v7, %v1469_v10  ;;  %vm1504_vm11 = vmor %vm1502_vm10, %vm1503_vm6  ;;  %v1521_v24 = vand.u32 2147483647, %v4154_v17  ;;  %v1523_v56 = vand.u32 2147483648, %v4154_v17 }
 0x384   : > { %v1499_v26 = vsub.f32 1.0, %v1498_v15  ;;  %3394 = vrcp.f32 %v4156_v19  ;;  %v4162_v0 = vpop.eup %3390  ;;  %1686 = vadd.xlane.f32.xlu2 %v1685_v29  ;;  %v1491_v46 = vand.u32 2147483647, %v4156_v19  ;;  %v1493_v28 = vand.u32 2147483648, %v4156_v19 }
 0x385   : > { %3396 = vpow2.f32 %v1899_v23  ;;  %v1471_v37 = vadd.f32 %v3385_v7, %v1470_v25  ;;  %v1913_v41 = vsel %vm1377_vm3, %v4162_v0, 0.0  ;;  %vm1517_vm15 = vweird.f32 %v4154_v17 }
 0x386   : > { %v1500_v39 = vmul.f32 %v3389_v14, %v1499_v26  ;;  %1914 = vadd.xlane.f32.xlu1 %v1913_v41  ;;  %vm1522_vm0 = vcmp.eq.f32.partialorder %v1521_v24, 8.507059e+37  ;;  %vm1487_vm1 = vweird.f32 %v4156_v19  ;;  %vm1492_vm7 = vcmp.eq.f32.partialorder %v1491_v46, 8.507059e+37 }
 0x387   : > { %v1894_v30 = vpop.xlane.xlu1 %1893  ;;  %v1475_v53 = vsel %vm4166_vm8, %v3385_v7, %v1471_v37  ;;  %v1494_v22 = vor.u32 1.1754944e-38, %v1493_v28 }
 0x388   : > { %v1501_v45 = vadd.f32 %v3389_v14, %v1500_v39  ;;  %v1898_v52 = vsub.f32 %v4105_v27, %v1894_v30  ;;  %v1480_v62 = vsel %vm4170_vm9, %v1479_v44, %v1475_v53 }
 0x389   : > { %v3393_v50 = vpop.eup %3392  ;;  %v1481_v15 = vmul.f32 %v4078_v57, %v1480_v62 }
 0x38a   : > { %v3395_v12 = vpop.eup %3394  ;;  %v1505_v32 = vsel %vm1504_vm11, %v3389_v14, %v1501_v45  ;;  %v1513_v54 = vmul.f32 %v3393_v50, %v4154_v17  ;;  %v2122_v40 = vpop.xlane.xlu0 %2121  ;;  %v1905_v3 = vmul.f32 1.442695, %v1898_v52  ;;  %vm1518_vm13 = vweird.f32 %v3393_v50 }
 0x38b   : > { %v1888_v47 = vpop.xlane.xlu2 %1887  ;;  %v4180_v34 = vpop.eup %3396  ;;  %v1510_v63 = vsel %vm1507_vm12, %v1509_v51, %v1505_v32  ;;  %v1483_v2 = vmul.f32 %v3395_v12, %v4156_v19  ;;  %v2128_v58 = vsub.f32 %v4113_v35, %v2122_v40  ;;  %vm1488_vm14 = vweird.f32 %v3395_v12  ;;  %vm1519_vm5 = vmor %vm1517_vm15, %vm1518_vm13 }
 0x38c   : > { %v1514_v27 = vsub.f32 1.0, %v1513_v54  ;;  %v1896_v4 = vsub.f32 %v4108_v1, %v1888_v47  ;;  %3398 = vpow2.f32 %v1905_v3  ;;  %v1907_v6 = vsel %vm1377_vm3, %v4180_v34, 0.0  ;;  %vm1489_vm6 = vmor %vm1487_vm1, %vm1488_vm14 }
 0x38d   : > { %v1484_v5 = vsub.f32 1.0, %v1483_v2  ;;  %v1511_v7 = vmul.f32 %v4085_v60, %v1510_v63  ;;  %1908 = vadd.xlane.f32.xlu2 %v1907_v6  ;;  %v2134_v11 = vmul.f32 1.442695, %v2128_v58  ;;  %v1524_v1 = vor.u32 1.1754944e-38, %v1523_v56 }
 0x38e   : > { %v1515_v9 = vmul.f32 %v3393_v50, %v1514_v27  ;;  %v1901_v13 = vmul.f32 1.442695, %v1896_v4  ;;  %v1527_v41 = vpack.c.bf16 %v1481_v15, %v1481_v15 }
 0x38f   : > { %v1485_v14 = vmul.f32 %v3395_v12, %v1484_v5  ;;  %v1529_v60 = vpack.c.bf16 %v1511_v7, %v1511_v7 }
 0x390   : > { %v1516_v35 = vadd.f32 %v3393_v50, %v1515_v9  ;;  %3400 = vpow2.f32 %v1901_v13 }
 0x391   : > { %v1486_v10 = vadd.f32 %v3395_v12, %v1485_v14  ;;  %v2125_v23 = vpop.xlane.xlu1 %2124  ;;  %3402 = vpow2.f32 %v2134_v11  ;;  %v1564_v30 = vunpack.c.l.b16 %v1529_v60 }
 0x392   : > { %v1520_v20 = vsel %vm1519_vm5, %v3393_v50, %v1516_v35  ;;  %v4195_v25 = vpop.eup %3398  ;;  %v2129_v17 = vsub.f32 %v4126_v49, %v2125_v23  ;;  %v2119_v40 = vpop.xlane.xlu0 %2118 }
 0x393   : > { %v1525_v26 = vsel %vm1522_vm0, %v1524_v1, %v1520_v20  ;;  %v1490_v29 = vsel %vm1489_vm6, %v3395_v12, %v1486_v10  ;;  %v2116_v19 = vpop.xlane.xlu2 %2115  ;;  %v1916_v57 = vsel %vm1377_vm3, %v4195_v25, 0.0  ;;  %v2127_v47 = vsub.f32 %v4120_v31, %v2119_v40 }
 0x394   : > { %v1526_v16 = vmul.f32 %v4098_v21, %v1525_v26  ;;  %v1495_v33 = vsel %vm1492_vm7, %v1494_v22, %v1490_v29  ;;  %v2126_v37 = vsub.f32 %v4123_v36, %v2116_v19  ;;  %v2136_v50 = vmul.f32 1.442695, %v2129_v17 }
 0x395   : > { %v1496_v39 = vmul.f32 %v4094_v18, %v1495_v33  ;;  %1917 = vadd.xlane.f32.xlu2 %v1916_v57  ;;  %v1533_v36 = vunpack.c.l.b16 %v1527_v41  ;;  %v2132_v63 = vmul.f32 1.442695, %v2127_v47 }
 0x396   : > { %v1530_v42 = vpack.c.bf16 %v1526_v16, %v1526_v16  ;;  %v2130_v43 = vmul.f32 1.442695, %v2126_v37  ;;  %v4203_v44 = vpop.eup %3400 }
 0x397   : > { %v1528_v45 = vpack.c.bf16 %v1496_v39, %v1496_v39  ;;  %v1910_v21 = vsel %vm1377_vm3, %v4203_v44, 0.0  ;;  %v4207_v51 = vpop.eup %3402 }
 0x398   : > { %v1565_v49 = vunpack.c.l.b16 %v1530_v42  ;;  %3404 = vpow2.f32 %v2130_v43  ;;  %1911 = vadd.xlane.f32.xlu0 %v1910_v21  ;;  %v2144_v12 = vsel %vm1377_vm3, %v4207_v51, 0.0 }
 0x399   : > { %v1534_v24 = vunpack.c.l.b16 %v1528_v45  ;;  %3406 = vpow2.f32 %v2136_v50 }
 0x39a   : > { %v1566_v18 = vpack.c.b16 %v1565_v49, %v1564_v30  ;;  %3408 = vpow2.f32 %v2132_v63 }
 0x39b   : > { %v1535_v52 = vpack.c.b16 %v1534_v24, %v1533_v36 }
 0x39c   : > { %3164 = vmatmul.msk.bf16.vlgmr.msra.gmra.mxu2 %vm1377_vm3, %v1566_v18 }
 0x39d   : > { %3163 = vmatmul.msk.bf16.vlgmr.msrb.gmra.mxu1 %vm1377_vm3, %v1535_v52  ;;  %2145 = vadd.xlane.f32.xlu2 %v2144_v12 }
 0x39e   : > { %v4213_v53 = vpop.eup %3404 }
 0x39f   : > { %v2138_v32 = vsel %vm1377_vm3, %v4213_v53, 0.0  ;;  %v4217_v54 = vpop.eup %3406 }
 0x3a0   : > { %2139 = vadd.xlane.f32.xlu1 %v2138_v32  ;;  %v2147_v56 = vsel %vm1377_vm3, %v4217_v54, 0.0  ;;  %v4228_v2 = vpop.eup %3408 }
 0x3a1   : > { %v2141_v46 = vsel %vm1377_vm3, %v4228_v2, 0.0 }
 0x3a5   : > { %2148 = vadd.xlane.f32.xlu2 %v2147_v56 }
 0x3ac   : > { %1784 = vrot.lane.b32.xlu0 %v4014_v55, %s3618_s23 }
 0x3b9   : > { %1988 = vrot.lane.b32.xlu1 %v4010_v38, %s3619_s3 }
 0x3bd   : > { %2015 = vrot.lane.b32.xlu2 %v4014_v55, %s3619_s3 }
 0x3c1   : > { %2219 = vrot.lane.b32.xlu1 %v4010_v38, %s3620_s24 }
 0x3c9   : > { %2246 = vrot.lane.b32.xlu1 %v4014_v55, %s3620_s24 }
 0x3d6   : > { %2142 = vadd.xlane.f32.xlu0 %v2141_v46 }
 0x3e7   : > { %v1678_v3 = vpop.xlane.xlu1 %1677 }
 0x3e8   : > { %3410 = vrcp.f32 %v1678_v3  ;;  %v1699_v31 = vand.u32 2147483648, %v1678_v3  ;;  %vm1693_vm9 = vweird.f32 %v1678_v3  ;;  %v1697_v5 = vand.u32 2147483647, %v1678_v3 }
 0x3ea   : > { %v1700_v14 = vor.u32 1.1754944e-38, %v1699_v31  ;;  %vm1698_vm11 = vcmp.eq.f32.partialorder %v1697_v5, 8.507059e+37 }
 0x3ee   : > { %v3411_v27 = vpop.eup %3410 }
 0x3ef   : > { %v1689_v28 = vmul.f32 %v3411_v27, %v1678_v3  ;;  %v1681_v58 = vpop.xlane.xlu2 %1680  ;;  %vm1694_vm8 = vweird.f32 %v3411_v27  ;;  %v4232_v62 = vpop.xlane.xlu1 %1683 }
 0x3f0   : > { %3412 = vrcp.f32 %v1681_v58  ;;  %vm1695_vm10 = vmor %vm1693_vm9, %vm1694_vm8  ;;  %v1714_v1 = vand.u32 2147483648, %v1681_v58  ;;  %v1712_v15 = vand.u32 2147483647, %v1681_v58  ;;  %vm1708_vm13 = vweird.f32 %v1681_v58 }
 0x3f1   : > { %v1690_v4 = vsub.f32 1.0, %v1689_v28  ;;  %3414 = vrcp.f32 %v4232_v62  ;;  %v1729_v32 = vand.u32 2147483648, %v4232_v62  ;;  %vm1723_vm6 = vweird.f32 %v4232_v62 }
 0x3f2   : > { %v1715_v26 = vor.u32 1.1754944e-38, %v1714_v1  ;;  %vm1713_vm15 = vcmp.eq.f32.partialorder %v1712_v15, 8.507059e+37  ;;  %v1727_v40 = vand.u32 2147483647, %v4232_v62 }
 0x3f3   : > { %v1691_v38 = vmul.f32 %v3411_v27, %v1690_v4 }
 0x3f5   : > { %v1692_v55 = vadd.f32 %v3411_v27, %v1691_v38  ;;  %v1730_v38 = vor.u32 1.1754944e-38, %v1729_v32 }
 0x3f6   : > { %v3413_v6 = vpop.eup %3412 }
 0x3f7   : > { %v1696_v7 = vsel %vm1695_vm10, %v3411_v27, %v1692_v55  ;;  %v1704_v9 = vmul.f32 %v3413_v6, %v1681_v58  ;;  %v4235_v13 = vpop.xlane.xlu2 %1686  ;;  %vm1709_vm12 = vweird.f32 %v3413_v6  ;;  %v3415_v60 = vpop.eup %3414  ;;  %vm1728_vm10 = vcmp.eq.f32.partialorder %v1727_v40, 8.507059e+37 }
 0x3f8   : > { %3416 = vrcp.f32 %v4235_v13  ;;  %v1701_v35 = vsel %vm1698_vm11, %v1700_v14, %v1696_v7  ;;  %vm1710_vm14 = vmor %vm1708_vm13, %vm1709_vm12  ;;  %v1719_v16 = vmul.f32 %v3415_v60, %v4232_v62  ;;  %vm1724_vm1 = vweird.f32 %v3415_v60 }
 0x3f9   : > { %v1705_v11 = vsub.f32 1.0, %v1704_v9  ;;  %v1702_v20 = vmul.f32 %v4137_v61, %v1701_v35  ;;  %v4244_v42 = vpop.xlane.xlu1 %1914  ;;  %v1744_v52 = vand.u32 2147483648, %v4235_v13  ;;  %vm1738_vm5 = vweird.f32 %v4235_v13  ;;  %vm1725_vm8 = vmor %vm1723_vm6, %vm1724_vm1 }
 0x3fa   : > { %v1720_v61 = vsub.f32 1.0, %v1719_v16  ;;  %v1742_v56 = vand.u32 2147483647, %v4235_v13  ;;  %vm1954_vm11 = vweird.f32 %v4244_v42  ;;  %v1958_v35 = vand.u32 2147483647, %v4244_v42 }
 0x3fb   : > { %v1706_v10 = vmul.f32 %v3413_v6, %v1705_v11  ;;  %v1748_v37 = vpack.c.bf16 %v1702_v20, %v1702_v20  ;;  %v1745_v27 = vor.u32 1.1754944e-38, %v1744_v52 }
 0x3fc   : > { %v1721_v50 = vmul.f32 %v3415_v60, %v1720_v61  ;;  %vm1743_vm9 = vcmp.eq.f32.partialorder %v1742_v56, 8.507059e+37 }
 0x3fd   : > { %v1707_v22 = vadd.f32 %v3413_v6, %v1706_v10  ;;  %v1754_v43 = vunpack.c.l.b16 %v1748_v37 }
 0x3fe   : > { %v3417_v23 = vpop.eup %3416  ;;  %v1722_v18 = vadd.f32 %v3415_v60, %v1721_v50 }
 0x3ff   : > { %v1711_v29 = vsel %vm1710_vm14, %v3413_v6, %v1707_v22  ;;  %v1734_v17 = vmul.f32 %v3417_v23, %v4235_v13  ;;  %vm1739_vm0 = vweird.f32 %v3417_v23 }
 0x400   : > { %v1716_v19 = vsel %vm1713_vm15, %v1715_v26, %v1711_v29  ;;  %v4241_v33 = vpop.xlane.xlu2 %1908  ;;  %vm1740_vm7 = vmor %vm1738_vm5, %vm1739_vm0  ;;  %v1726_v3 = vsel %vm1725_vm8, %v3415_v60, %v1722_v18 }
 0x401   : > { %v1717_v57 = vmul.f32 %v4144_v59, %v1716_v19  ;;  %v1735_v41 = vsub.f32 1.0, %v1734_v17  ;;  %3418 = vrcp.f32 %v4241_v33  ;;  %v1731_v5 = vsel %vm1728_vm10, %v1730_v38, %v1726_v3 }
 0x402   : > { %3420 = vrcp.f32 %v4244_v42  ;;  %v1732_v11 = vmul.f32 %v4142_v48, %v1731_v5  ;;  %v1928_v10 = vand.u32 2147483647, %v4241_v33  ;;  %vm1924_vm0 = vweird.f32 %v4241_v33 }
 0x403   : > { %v1749_v39 = vpack.c.bf16 %v1717_v57, %v1717_v57  ;;  %v1736_v30 = vmul.f32 %v3417_v23, %v1735_v41 }
 0x404   : > { %v1750_v16 = vpack.c.bf16 %v1732_v11, %v1732_v11  ;;  %vm4322_vm8 = vcmp.eq.f32.partialorder %v1928_v10, 8.507059e+37 }
 0x405   : > { %v1755_v45 = vunpack.c.l.b16 %v1749_v39  ;;  %v1737_v36 = vadd.f32 %v3417_v23, %v1736_v30 }
 0x406   : > { %v1781_v40 = vunpack.c.l.b16 %v1750_v16 }
 0x407   : > { %v1756_v49 = vpack.c.b16 %v1755_v45, %v1754_v43  ;;  %v4252_v59 = vpop.eup %3418  ;;  %v1741_v46 = vsel %vm1740_vm7, %v3417_v23, %v1737_v36 }
 0x408   : > { %v4248_v21 = vpop.xlane.xlu2 %1917  ;;  %v4258_v12 = vpop.eup %3420  ;;  %v1920_v47 = vmul.f32 %v4252_v59, %v4241_v33  ;;  %v1746_v62 = vsel %vm1743_vm9, %v1745_v27, %v1741_v46  ;;  %vm1925_vm14 = vweird.f32 %v4252_v59 }
 0x409   : > { %3422 = vrcp.f32 %v4248_v21  ;;  %3167 = vmatmul.msk.bf16.vlgmr.msra.gmra.mxu1 %vm1377_vm3, %v1756_v49  ;;  %v1950_v28 = vmul.f32 %v4258_v12, %v4244_v42  ;;  %v1747_v13 = vmul.f32 %v4151_v8, %v1746_v62  ;;  %vm1955_vm12 = vweird.f32 %v4258_v12  ;;  %vm4312_vm6 = vmor %vm1924_vm0, %vm1925_vm14 }
 0x40a   : > { %v1921_v55 = vsub.f32 1.0, %v1920_v47  ;;  %v1930_v8 = vand.u32 2147483648, %v4241_v33  ;;  %v1973_v41 = vand.u32 2147483647, %v4248_v21  ;;  %v1975_v61 = vand.u32 2147483648, %v4248_v21 }
 0x40b   : > { %v4254_v24 = vpop.xlane.xlu0 %1911  ;;  %v1951_v9 = vsub.f32 1.0, %v1950_v28  ;;  %v1751_v22 = vpack.c.bf16 %v1747_v13, %v1747_v13  ;;  %v1960_v33 = vand.u32 2147483648, %v4244_v42  ;;  %vm1969_vm7 = vweird.f32 %v4248_v21 }
 0x40c   : > { %3424 = vrcp.f32 %v4254_v24  ;;  %v1922_v1 = vmul.f32 %v4252_v59, %v1921_v55  ;;  %v1945_v26 = vand.u32 2147483648, %v4254_v24  ;;  %vm1939_vm15 = vweird.f32 %v4254_v24 }
 0x40d   : > { %v1952_v20 = vmul.f32 %v4258_v12, %v1951_v9  ;;  %v1943_v19 = vand.u32 2147483647, %v4254_v24  ;;  %v1782_v45 = vunpack.c.l.b16 %v1751_v22  ;;  %v1931_v18 = vor.u32 1.1754944e-38, %v1930_v8 }
 0x40e   : > { %v1923_v17 = vadd.f32 %v4252_v59, %v1922_v1  ;;  %v1946_v49 = vor.u32 1.1754944e-38, %v1945_v26  ;;  %vm1974_vm14 = vcmp.eq.f32.partialorder %v1973_v41, 8.507059e+37  ;;  %v1976_v28 = vor.u32 1.1754944e-38, %v1975_v61 }
 0x40f   : > { %v4267_v63 = vpop.eup %3422  ;;  %v1953_v39 = vadd.f32 %v4258_v12, %v1952_v20  ;;  %vm1944_vm10 = vcmp.eq.f32.partialorder %v1943_v19, 8.507059e+37  ;;  %v1783_v5 = vpack.c.b16 %v1782_v45, %v1781_v40 }
 0x410   : > { %v1965_v58 = vmul.f32 %v4267_v63, %v4248_v21  ;;  %v4273_v4 = vpop.xlane.xlu2 %2145  ;;  %vm1970_vm1 = vweird.f32 %v4267_v63  ;;  %v1927_v36 = vsel %vm4312_vm6, %v4252_v59, %v1923_v17 }
 0x411   : > { %3426 = vrcp.f32 %v4273_v4  ;;  %vm4328_vm9 = vmor %vm1969_vm7, %vm1970_vm1  ;;  %v2189_v41 = vand.u32 2147483647, %v4273_v4 }
 0x412   : > { %v3425_v31 = vpop.eup %3424  ;;  %v1966_v6 = vsub.f32 1.0, %v1965_v58 }
 0x413   : > { %v1935_v7 = vmul.f32 %v3425_v31, %v4254_v24  ;;  %vm1940_vm13 = vweird.f32 %v3425_v31  ;;  %v4361_v9 = vpop.xlane.xlu1 %2139 }
 0x414   : > { %v1967_v15 = vmul.f32 %v4267_v63, %v1966_v6  ;;  %vm4300_vm5 = vmor %vm1939_vm15, %vm1940_vm13  ;;  %v1961_v6 = vor.u32 1.1754944e-38, %v1960_v33 }
 0x415   : > { %v1936_v14 = vsub.f32 1.0, %v1935_v7  ;;  %vm4338_vm13 = vmor %vm1954_vm11, %vm1955_vm12  ;;  %vm1959_vm11 = vcmp.eq.f32.partialorder %v1958_v35, 8.507059e+37 }
 0x416   : > { %v1968_v37 = vadd.f32 %v4267_v63, %v1967_v15  ;;  %v1957_v27 = vsel %vm4338_vm13, %v4258_v12, %v1953_v39 }
 0x417   : > { %v1937_v60 = vmul.f32 %v3425_v31, %v1936_v14  ;;  %v4317_v50 = vpop.eup %3426  ;;  %v1962_v14 = vsel %vm1959_vm11, %v1961_v6, %v1957_v27 }
 0x418   : > { %v4287_v48 = vpop.xlane.xlu2 %2148  ;;  %v1972_v47 = vsel %vm4328_vm9, %v4267_v63, %v1968_v37  ;;  %v2181_v63 = vmul.f32 %v4317_v50, %v4273_v4  ;;  %vm2186_vm15 = vweird.f32 %v4317_v50  ;;  %v2191_v37 = vand.u32 2147483648, %v4273_v4 }
 0x419   : > { %v1938_v23 = vadd.f32 %v3425_v31, %v1937_v60  ;;  %3428 = vrcp.f32 %v4287_v48  ;;  %v1977_v7 = vsel %vm1974_vm14, %v1976_v28, %v1972_v47  ;;  %vm2200_vm0 = vweird.f32 %v4287_v48 }
 0x41a   : > { %v1557_v29 = vpop.f32.mrf.mxu1  ;;  %v1978_v1 = vmul.f32 %v4195_v25, %v1977_v7  ;;  %v2182_v10 = vsub.f32 1.0, %v2181_v63  ;;  %v2204_v16 = vand.u32 2147483647, %v4287_v48  ;;  %v2192_v33 = vor.u32 1.1754944e-38, %v2191_v37 }
 0x41b   : > { %1592 = vst.msk [vmem:[#allocation3] sm:$0xff] %vm1377_vm3, %v1557_v29  ;;  %v1942_v43 = vsel %vm4300_vm5, %v3425_v31, %v1938_v23  ;;  %v1932_v31 = vsel %vm4322_vm8, %v1931_v18, %v1927_v36  ;;  %vm2185_vm5 = vweird.f32 %v4273_v4  ;;  %vm2190_vm8 = vcmp.eq.f32.partialorder %v2189_v41, 8.507059e+37  ;;  %v3235_v41 = vld [vmem:[%s3836_s26 + $0x8] sm:$0xff] }
 0x41c   : > { %v1947_v46 = vsel %vm1944_vm10, %v1946_v49, %v1942_v43  ;;  %v1933_v11 = vmul.f32 %v4180_v34, %v1932_v31  ;;  %v1982_v35 = vpack.c.bf16 %v1978_v1, %v1978_v1  ;;  %v2183_v8 = vmul.f32 %v4317_v50, %v2182_v10  ;;  %vm2187_vm6 = vmor %vm2185_vm5, %vm2186_vm15  ;;  %2327 = vmatpush.bf16.msra.mxu3 %v3235_v41  ;;  %v3237_v41 = vld [vmem:[%s3804_s16 + $0x8] sm:$0xff] }
 0x41d   : > { %v1948_v12 = vmul.f32 %v4203_v44, %v1947_v46  ;;  %v1963_v44 = vmul.f32 %v4162_v0, %v1962_v14  ;;  %v2206_v0 = vand.u32 2147483648, %v4287_v48  ;;  %vm2205_vm7 = vcmp.eq.f32.partialorder %v2204_v16, 8.507059e+37  ;;  %2489 = vmatpush.bf16.msra.mxu0 %v3237_v41 }
 0x41e   : > { %v1785_v21 = vpop.permute.xlu0 %1784  ;;  %v1979_v42 = vpack.c.bf16 %v1933_v11, %v1933_v11  ;;  %v2013_v17 = vunpack.c.l.b16 %v1982_v35  ;;  %v2184_v19 = vadd.f32 %v4317_v50, %v2183_v8  ;;  %3430 = vrcp.f32 %v4361_v9 }
 0x41f   : > { %v1587_v32 = vpop.f32.mrf.mxu2  ;;  %v4332_v56 = vpop.eup %3428  ;;  %v1790_v3 = vsel %vm1544_vm4, %v1785_v21, 0  ;;  %v1980_v15 = vpack.c.bf16 %v1948_v12, %v1948_v12  ;;  %v1981_v23 = vpack.c.bf16 %v1963_v44, %v1963_v44  ;;  %v2207_v43 = vor.u32 1.1754944e-38, %v2206_v0 }
 0x420   : > { %1594 = vst.msk [vmem:[#allocation3 + $0x10] sm:$0xff] %vm1377_vm3, %v1587_v32  ;;  %v2196_v58 = vmul.f32 %v4332_v56, %v4287_v48  ;;  %1799 = vmatpush.bf16.msrb.mxu2 %v1790_v3  ;;  %v2016_v38 = vpop.permute.xlu2 %2015  ;;  %vm2201_vm12 = vweird.f32 %v4332_v56  ;;  %v1985_v25 = vunpack.c.l.b16 %v1979_v42  ;;  %v2188_v48 = vsel %vm2187_vm6, %v4317_v50, %v2184_v19 }
 0x421   : > { %v2021_v62 = vsel %vm1544_vm4, %v2016_v38, 0  ;;  %v1986_v22 = vunpack.c.l.b16 %v1980_v15  ;;  %vm2202_vm1 = vmor %vm2200_vm0, %vm2201_vm12  ;;  %v2012_v39 = vunpack.c.l.b16 %v1981_v23  ;;  %v2193_v36 = vsel %vm2190_vm8, %v2192_v33, %v2188_v48 }
 0x422   : > { %v1559_v55 = vpop.f32.mrf.mxu1  ;;  %v2197_v13 = vsub.f32 1.0, %v2196_v58  ;;  %v2194_v18 = vmul.f32 %v4207_v51, %v2193_v36  ;;  %v2161_v28 = vand.u32 2147483648, %v4361_v9  ;;  %vm2155_vm10 = vweird.f32 %v4361_v9 }
 0x423   : > { %1593 = vst.msk [vmem:[#allocation3 + $0x8] sm:$0xff] %vm1377_vm3, %v1559_v55  ;;  %3168 = vmatmul.msk.bf16.vlgmr.msrb.gmra.mxu2 %vm1377_vm3, %v1783_v5  ;;  %v1987_v57 = vpack.c.b16 %v1986_v22, %v1985_v25  ;;  %v2014_v45 = vpack.c.b16 %v2013_v17, %v2012_v39  ;;  %v2159_v58 = vand.u32 2147483647, %v4361_v9  ;;  %vm2053_vm0 = vcmask 195712  }
 0x424   : > { %2030 = vmatpush.bf16.msra.mxu2 %v2021_v62  ;;  %v2198_v20 = vmul.f32 %v4332_v56, %v2197_v13  ;;  %v2212_v50 = vpack.c.bf16 %v2194_v18, %v2194_v18  ;;  %v3431_v40 = vpop.eup %3430  ;;  %v2162_v62 = vor.u32 1.1754944e-38, %v2161_v28 }
 0x425   : > { %v2151_v47 = vmul.f32 %v3431_v40, %v4361_v9  ;;  %vm2156_vm9 = vweird.f32 %v3431_v40  ;;  %vm2160_vm13 = vcmp.eq.f32.partialorder %v2159_v58, 8.507059e+37 }
 0x426   : > { %v2199_v26 = vadd.f32 %v4332_v56, %v2198_v20  ;;  %v2243_v59 = vunpack.c.l.b16 %v2212_v50 }
 0x427   : > { %v1589_v60 = vpop.f32.mrf.mxu2 }
 0x428   : > { %1595 = vst.msk [vmem:[#allocation3 + $0x18] sm:$0xff] %vm1377_vm3, %v1589_v60  ;;  %v2203_v61 = vsel %vm2202_vm1, %v4332_v56, %v2199_v26  ;;  %vm2284_vm1 = vcmask 261312  }
 0x429   : > { %v2208_v30 = vsel %vm2205_vm7, %v2207_v43, %v2203_v61  ;;  %v3234_v43 = vld [vmem:[%s3836_s26] sm:$0xff] }
 0x42a   : > { %v2209_v24 = vmul.f32 %v4217_v54, %v2208_v30  ;;  %v2152_v54 = vsub.f32 1.0, %v2151_v47  ;;  %2328 = vmatpush.bf16.msra.mxu3 %v3234_v43 }
 0x42b   : > { %v1989_v34 = vpop.permute.xlu1 %1988 }
 0x42c   : > { %v1994_v29 = vsel %vm1544_vm4, %v1989_v34, 0  ;;  %v2213_v52 = vpack.c.bf16 %v2209_v24, %v2209_v24  ;;  %v2153_v3 = vmul.f32 %v3431_v40, %v2152_v54 }
 0x42d   : > { %2003 = vmatpush.bf16.msrb.mxu1 %v1994_v29 }
 0x42e   : > { %v2244_v56 = vunpack.c.l.b16 %v2213_v52  ;;  %v2154_v51 = vadd.f32 %v3431_v40, %v2153_v3 }
 0x430   : > { %3171 = vmatmul.msk.bf16.vlgmr.msrb.gmra.mxu1 %vm1377_vm3, %v1987_v57  ;;  %v2245_v46 = vpack.c.b16 %v2244_v56, %v2243_v59  ;;  %v3460_v59 = vld [vmem:[#allocation9] sm:$0xff] }
 0x433   : > { %3172 = vmatmul.msk.bf16.vlgmr.msra.gmra.mxu2 %vm1377_vm3, %v2014_v45  ;;  %v2220_v49 = vpop.permute.xlu1 %2219 }
 0x434   : > { %v2225_v4 = vsel %vm1544_vm4, %v2220_v49, 0 }
 0x435   : > { %2234 = vmatpush.bf16.msra.mxu1 %v2225_v4 }
 0x43b   : > { %v2247_v21 = vpop.permute.xlu1 %2246 }
 0x43c   : > { %v2252_v32 = vsel %vm1544_vm4, %v2247_v21, 0  ;;  %vm2157_vm4 = vmor %vm2155_vm10, %vm2156_vm9 }
 0x43d   : > { %2261 = vmatpush.bf16.msrb.mxu2 %v2252_v32  ;;  %v2158_v31 = vsel %vm2157_vm4, %v3431_v40, %v2154_v51  ;;  %v3363_v32 = vld [vmem:[%s4728_s25] ss:$0 sm:$0xff]  ;;  %s2865_s25 = sshll.u32 %s4737_s11, 4  ;;  %s2866_s25 = int_to_ptr.hbm [resolvable:$true] %s2865_s25 }
 0x43e   : > { %v2163_v5 = vsel %vm2160_vm13, %v2162_v62, %v2158_v31  ;;  %v3462_v31 = vld [vmem:[#allocation9 + $0x10] sm:$0xff] }
 0x43f   : > { %v2164_v13 = vmul.f32 %v4213_v53, %v2163_v5 }
 0x441   : > { %v2210_v10 = vpack.c.bf16 %v2164_v13, %v2164_v13  ;;  %v3624_v13 = vmov 32.0  }
 0x443   : > { %3176 = vmatmul.msk.bf16.vlgmr.msrb.gmra.mxu2 %vm1377_vm3, %v2245_v46  ;;  %v2216_v44 = vunpack.c.l.b16 %v2210_v10 }
 0x449   : > { %v2143_v27 = vpop.xlane.xlu0 %2142 }
 0x44a   : > { %3432 = vrcp.f32 %v2143_v27  ;;  %v2176_v6 = vand.u32 2147483648, %v2143_v27  ;;  %v2174_v12 = vand.u32 2147483647, %v2143_v27  ;;  %vm2170_vm11 = vweird.f32 %v2143_v27 }
 0x44b   : > { %3434 = vrcp.f32 %v3624_v13 }
 0x44c   : > { %v2177_v11 = vor.u32 1.1754944e-38, %v2176_v6  ;;  %vm2175_vm15 = vcmp.eq.f32.partialorder %v2174_v12, 8.507059e+37  ;;  %v3463_v6 = vld [vmem:[#allocation9 + $0x18] sm:$0xff] }
 0x450   : > { %v3433_v38 = vpop.eup %3432 }
 0x451   : > { %v2166_v63 = vmul.f32 %v3433_v38, %v2143_v27  ;;  %vm2171_vm14 = vweird.f32 %v3433_v38  ;;  %v3461_v27 = vld [vmem:[#allocation9 + $0x8] sm:$0xff] }
 0x452   : > { %vm2172_vm12 = vmor %vm2170_vm11, %vm2171_vm14 }
 0x453   : > { %v2167_v55 = vsub.f32 1.0, %v2166_v63 }
 0x455   : > { %v2168_v7 = vmul.f32 %v3433_v38, %v2167_v55 }
 0x457   : > { %v2169_v14 = vadd.f32 %v3433_v38, %v2168_v7 }
 0x459   : > { %v2173_v1 = vsel %vm2172_vm12, %v3433_v38, %v2169_v14  ;;  %v3435_v14 = vpop.eup %3434 }
 0x45a   : > { %v2178_v9 = vsel %vm2175_vm15, %v2177_v11, %v2173_v1  ;;  %v2359_v11 = vmul.f32 32.0, %v3435_v14  ;;  %vm2363_vm5 = vweird.f32 %v3435_v14 }
 0x45b   : > { %v2179_v15 = vmul.f32 %v4228_v2, %v2178_v9 }
 0x45c   : > { %v2360_v1 = vsub.f32 1.0, %v2359_v11 }
 0x45d   : > { %v2211_v60 = vpack.c.bf16 %v2179_v15, %v2179_v15 }
 0x45e   : > { %v2361_v9 = vmul.f32 %v3435_v14, %v2360_v1 }
 0x45f   : > { %v2217_v20 = vunpack.c.l.b16 %v2211_v60 }
 0x460   : > { %v2362_v10 = vadd.f32 %v3435_v14, %v2361_v9 }
 0x461   : > { %v2218_v42 = vpack.c.b16 %v2217_v20, %v2216_v44 }
 0x462   : > { %v4429_v15 = vsel %vm2363_vm5, %v3435_v14, %v2362_v10 }
 0x463   : > { %3175 = vmatmul.msk.bf16.vlgmr.msra.gmra.mxu1 %vm1377_vm3, %v2218_v42  ;;  %vm1822_vm3 = vcmask 130112  }
 0x486   : > { %v1774_v35 = vpop.f32.mrf.mxu1 }
 0x487   : > { %1810 = vrot.lane.b32.xlu0 %v1774_v35, %s3621_s21 }
 0x48e   : > { %v1776_v53 = vpop.f32.mrf.mxu1 }
 0x48f   : > { %1812 = vrot.lane.b32.xlu1 %v1776_v53, %s3621_s21 }
 0x4a6   : > { %v1801_v8 = vpop.f32.mrf.mxu2 }
 0x4a7   : > { %1814 = vrot.lane.b32.xlu0 %v1801_v8, %s3621_s21 }
 0x4ad   : > { %v2005_v22 = vpop.f32.mrf.mxu1 }
 0x4ae   : > { %v1803_v23 = vpop.f32.mrf.mxu2  ;;  %2041 = vrot.lane.b32.xlu2 %v2005_v22, %s3622_s5 }
 0x4b5   : > { %v2007_v2 = vpop.f32.mrf.mxu1 }
 0x4b6   : > { %v2032_v26 = vpop.f32.mrf.mxu2  ;;  %2043 = vrot.lane.b32.xlu1 %v2007_v2, %s3622_s5 }
 0x4be   : > { %v2034_v34 = vpop.f32.mrf.mxu2 }
 0x4bf   : > { %2047 = vrot.lane.b32.xlu0 %v2034_v34, %s3622_s5 }
 0x4c6   : > { %v2263_v29 = vpop.f32.mrf.mxu2 }
 0x4ce   : > { %v2265_v17 = vpop.f32.mrf.mxu2 }
 0x4e0   : > { %v2236_v25 = vpop.f32.mrf.mxu1 }
 0x4e1   : > { %2272 = vrot.lane.b32.xlu2 %v2236_v25, %s3623_s7 }
 0x4e8   : > { %v2238_v0 = vpop.f32.mrf.mxu1 }
 0x4e9   : > { %1816 = vrot.lane.b32.xlu2 %v1803_v23, %s3621_s21  ;;  %2274 = vrot.lane.b32.xlu1 %v2238_v0, %s3623_s7 }
 0x4f1   : > { %2045 = vrot.lane.b32.xlu1 %v2032_v26, %s3622_s5  ;;  %2276 = vrot.lane.b32.xlu2 %v2263_v29, %s3623_s7 }
 0x4f9   : > { %2278 = vrot.lane.b32.xlu1 %v2265_v17, %s3623_s7  ;;  %v1811_v19 = vpop.permute.xlu0 %1810 }
 0x4fa   : > { %1823 = vst.msk [vmem:[#allocation3] sm:$0xff] %vm1822_vm3, %v1811_v19 }
 0x501   : > { %v1813_v16 = vpop.permute.xlu1 %1812 }
 0x502   : > { %1824 = vst.msk [vmem:[#allocation3 + $0x8] sm:$0xff] %vm1822_vm3, %v1813_v16 }
 0x508   : > { %v2042_v37 = vpop.permute.xlu2 %2041 }
 0x509   : > { %2054 = vst.msk [vmem:[#allocation3] sm:$0xff] %vm2053_vm0, %v2042_v37 }
 0x519   : > { %v1815_v57 = vpop.permute.xlu0 %1814 }
 0x51a   : > { %1825 = vst.msk [vmem:[#allocation3 + $0x10] sm:$0xff] %vm1822_vm3, %v1815_v57 }
 0x528   : > { %v2044_v39 = vpop.permute.xlu1 %2043 }
 0x529   : > { %2055 = vst.msk [vmem:[#allocation3 + $0x8] sm:$0xff] %vm2053_vm0, %v2044_v39 }
 0x531   : > { %v2048_v45 = vpop.permute.xlu0 %2047 }
 0x53b   : > { %v2273_v61 = vpop.permute.xlu2 %2272 }
 0x53c   : > { %2285 = vst.msk [vmem:[#allocation3] sm:$0xff] %vm2284_vm1, %v2273_v61 }
 0x543   : > { %v1817_v48 = vpop.permute.xlu2 %1816  ;;  %v2289_v49 = vld [vmem:[#allocation3] sm:$0xff] }
 0x544   : > { %1826 = vst.msk [vmem:[#allocation3 + $0x18] sm:$0xff] %vm1822_vm3, %v1817_v48  ;;  %v3236_v48 = vld [vmem:[%s3804_s16] sm:$0xff] }
 0x545   : > { %2057 = vst.msk [vmem:[#allocation3 + $0x18] sm:$0xff] %vm2053_vm0, %v2048_v45  ;;  %2490 = vmatpush.bf16.msra.mxu0 %v3236_v48 }
 0x54b   : > { %v2277_v4 = vpop.permute.xlu2 %2276 }
 0x55b   : > { %v2275_v33 = vpop.permute.xlu1 %2274 }
 0x55c   : > { %2286 = vst.msk [vmem:[#allocation3 + $0x8] sm:$0xff] %vm2284_vm1, %v2275_v33 }
 0x563   : > { %v2046_v30 = vpop.permute.xlu1 %2045  ;;  %v2290_v36 = vld [vmem:[#allocation3 + $0x8] sm:$0xff] }
 0x564   : > { %2056 = vst.msk [vmem:[#allocation3 + $0x10] sm:$0xff] %vm2053_vm0, %v2046_v30  ;;  %v2293_v24 = vpack.c.bf16 %v2290_v36, %v2289_v49 }
 0x565   : > { %2287 = vst.msk [vmem:[#allocation3 + $0x10] sm:$0xff] %vm2284_vm1, %v2277_v4 }
 0x566   : > { %3185 = vmatmul.msk.bf16.vlgmr.msra.gmra.mxu3 %vm1294_vm2, %v2293_v24 }
 0x56b   : > { %v2279_v18 = vpop.permute.xlu1 %2278 }
 0x56c   : > { %2288 = vst.msk [vmem:[#allocation3 + $0x18] sm:$0xff] %vm2284_vm1, %v2279_v18  ;;  %v2291_v52 = vld [vmem:[#allocation3 + $0x10] sm:$0xff] }
 0x573   : > { %v2292_v50 = vld [vmem:[#allocation3 + $0x18] sm:$0xff] }
 0x574   : > { %v2294_v21 = vpack.c.bf16 %v2292_v50, %v2291_v52 }
 0x576   : > { %3186 = vmatmul.msk.bf16.gmra.mxu3 %vm1294_vm2, %v2294_v21 }
 0x5e9   : > { %v2330_v56 = vpop.f32.mrf.mxu3 }
 0x5ea   : > { %v2331_v40 = vadd.f32 %v3363_v32, %v2330_v56 }
 0x5ec   : > { %v2340_v47 = vadd.f32 %v3460_v59, %v2331_v40 }
 0x5ee   : > { %v2346_v46 = vsel %vm1294_vm2, %v2340_v47, 0.0 }
 0x5ef   : > { %2347 = vadd.xlane.f32.xlu0 %v2346_v46 }
 0x5f1   : > { %v2332_v54 = vpop.f32.mrf.mxu3 }
 0x5f2   : > { %v2333_v3 = vadd.f32 %v3363_v32, %v2332_v54 }
 0x5f4   : > { %v2341_v51 = vadd.f32 %v3461_v27, %v2333_v3 }
 0x5f6   : > { %v2349_v28 = vsel %vm1294_vm2, %v2341_v51, 0.0 }
 0x5f7   : > { %2350 = vadd.xlane.f32.xlu2 %v2349_v28  ;;  %v3364_v28 = vld [vmem:[%s4730_s20] ss:$0 sm:$0xff] }
 0x5f9   : > { %v2335_v58 = vpop.f32.mrf.mxu3 }
 0x5fa   : > { %v2336_v38 = vadd.f32 %v3363_v32, %v2335_v58 }
 0x5fc   : > { %v2342_v63 = vadd.f32 %v3462_v31, %v2336_v38 }
 0x5fe   : > { %v2352_v62 = vsel %vm1294_vm2, %v2342_v63, 0.0 }
 0x5ff   : > { %2353 = vadd.xlane.f32.xlu1 %v2352_v62 }
 0x601   : > { %v2337_v55 = vpop.f32.mrf.mxu3 }
 0x602   : > { %v2338_v5 = vadd.f32 %v3363_v32, %v2337_v55 }
 0x604   : > { %v2343_v7 = vadd.f32 %v3463_v6, %v2338_v5  ;;  %v3365_v5 = vld [vmem:[%s4732_s2] ss:$0 sm:$0xff] }
 0x606   : > { %v2355_v12 = vsel %vm1294_vm2, %v2343_v7, 0.0 }
 0x607   : > { %2356 = vadd.xlane.f32.xlu2 %v2355_v12 }
 0x662   : > { %v2348_v60 = vpop.xlane.xlu0 %2347 }
 0x663   : > { %v2365_v44 = vmul.f32 %v4429_v15, %v2348_v60 }
 0x665   : > { %v2369_v20 = vsub.f32 %v2340_v47, %v2365_v44 }
 0x667   : > { %v2373_v42 = vmul.f32 %v2369_v20, %v2369_v20 }
 0x669   : > { %v2377_v35 = vsel %vm1294_vm2, %v2373_v42, 0.0 }
 0x66a   : > { %v2351_v53 = vpop.xlane.xlu2 %2350  ;;  %2378 = vadd.xlane.f32.xlu0 %v2377_v35 }
 0x66b   : > { %v2366_v8 = vmul.f32 %v4429_v15, %v2351_v53 }
 0x66d   : > { %v4434_v22 = vsub.f32 %v2341_v51, %v2366_v8 }
 0x66f   : > { %v2374_v23 = vmul.f32 %v4434_v22, %v4434_v22 }
 0x671   : > { %v2380_v2 = vsel %vm1294_vm2, %v2374_v23, 0.0 }
 0x672   : > { %2381 = vadd.xlane.f32.xlu1 %v2380_v2  ;;  %v2354_v26 = vpop.xlane.xlu1 %2353 }
 0x673   : > { %v2367_v34 = vmul.f32 %v4429_v15, %v2354_v26 }
 0x675   : > { %v4440_v25 = vsub.f32 %v2342_v63, %v2367_v34 }
 0x677   : > { %v2375_v0 = vmul.f32 %v4440_v25, %v4440_v25 }
 0x679   : > { %v2383_v29 = vsel %vm1294_vm2, %v2375_v0, 0.0 }
 0x67a   : > { %v2357_v17 = vpop.xlane.xlu2 %2356  ;;  %2384 = vadd.xlane.f32.xlu2 %v2383_v29 }
 0x67b   : > { %v2368_v19 = vmul.f32 %v4429_v15, %v2357_v17 }
 0x67d   : > { %v4446_v16 = vsub.f32 %v2343_v7, %v2368_v19 }
 0x67f   : > { %v2376_v37 = vmul.f32 %v4446_v16, %v4446_v16 }
 0x681   : > { %v2386_v57 = vsel %vm1294_vm2, %v2376_v37, 0.0 }
 0x682   : > { %2387 = vadd.xlane.f32.xlu0 %v2386_v57 }
 0x6dd   : > { %v2379_v39 = vpop.xlane.xlu0 %2378 }
 0x6de   : > { %v2389_v61 = vmul.f32 %v2379_v39, %v4429_v15 }
 0x6e0   : > { %v2393_v43 = vadd.f32 1e-12, %v2389_v61 }
 0x6e2   : > { %3436 = vrsqrt.f32 %v2393_v43  ;;  %vm2403_vm7 = vweird.f32 %v2393_v43 }
 0x6e5   : > { %v2382_v45 = vpop.xlane.xlu1 %2381 }
 0x6e6   : > { %v2390_v33 = vmul.f32 %v2382_v45, %v4429_v15 }
 0x6e8   : > { %v3437_v30 = vpop.eup %3436  ;;  %v2394_v49 = vadd.f32 1e-12, %v2390_v33 }
 0x6e9   : > { %v2398_v36 = vmul.f32 %v3437_v30, %v2393_v43  ;;  %vm2404_vm6 = vweird.f32 %v3437_v30 }
 0x6ea   : > { %3438 = vrsqrt.f32 %v2394_v49  ;;  %vm2405_vm8 = vmor %vm2403_vm7, %vm2404_vm6  ;;  %vm2413_vm10 = vweird.f32 %v2394_v49 }
 0x6eb   : > { %v2399_v4 = vmul.f32 %v3437_v30, %v2398_v36 }
 0x6ed   : > { %v2400_v24 = vmul.f32 0.5, %v2399_v4  ;;  %v2385_v18 = vpop.xlane.xlu2 %2384 }
 0x6ee   : > { %v2391_v52 = vmul.f32 %v2385_v18, %v4429_v15 }
 0x6ef   : > { %v2401_v50 = vsub.f32 1.5, %v2400_v24 }
 0x6f0   : > { %v3439_v21 = vpop.eup %3438  ;;  %v2395_v32 = vadd.f32 1e-12, %v2391_v52 }
 0x6f1   : > { %v2402_v56 = vmul.f32 %v3437_v30, %v2401_v50  ;;  %v2408_v40 = vmul.f32 %v3439_v21, %v2394_v49  ;;  %vm2414_vm9 = vweird.f32 %v3439_v21 }
 0x6f2   : > { %3440 = vrsqrt.f32 %v2395_v32  ;;  %vm2415_vm4 = vmor %vm2413_vm10, %vm2414_vm9  ;;  %vm2423_vm14 = vweird.f32 %v2395_v32 }
 0x6f3   : > { %v2409_v59 = vmul.f32 %v3439_v21, %v2408_v40  ;;  %v2406_v47 = vsel %vm2405_vm8, %v3437_v30, %v2402_v56 }
 0x6f4   : > { %v2437_v58 = vmul.f32 %v2406_v47, %v2369_v20 }
 0x6f5   : > { %v2410_v46 = vmul.f32 0.5, %v2409_v59  ;;  %v2388_v54 = vpop.xlane.xlu0 %2387 }
 0x6f6   : > { %v2392_v3 = vmul.f32 %v2388_v54, %v4429_v15  ;;  %v2444_v6 = vmul.f32 %v3364_v28, %v2437_v58 }
 0x6f7   : > { %v2411_v27 = vsub.f32 1.5, %v2410_v46 }
 0x6f8   : > { %v3441_v51 = vpop.eup %3440  ;;  %v2396_v38 = vadd.f32 1e-12, %v2392_v3  ;;  %v4468_v1 = vadd.f32 %v3365_v5, %v2444_v6 }
 0x6f9   : > { %v2412_v31 = vmul.f32 %v3439_v21, %v2411_v27  ;;  %v2418_v63 = vmul.f32 %v3441_v51, %v2395_v32  ;;  %vm2424_vm13 = vweird.f32 %v3441_v51  ;;  %v3241_v27 = vld [vmem:[%s3868_s18 + $0x18] sm:$0xff] }
 0x6fa   : > { %3442 = vrsqrt.f32 %v2396_v38  ;;  %vm2425_vm11 = vmor %vm2423_vm14, %vm2424_vm13  ;;  %vm2433_vm15 = vweird.f32 %v2396_v38  ;;  %2727 = vmatpush.bf16.msrb.mxu1 %v3241_v27  ;;  %vm2716_vm13 = vcmask 523264  }
 0x6fb   : > { %v2416_v62 = vsel %vm2415_vm4, %v3439_v21, %v2412_v31  ;;  %v2419_v55 = vmul.f32 %v3441_v51, %v2418_v63 }
 0x6fc   : > { %v2438_v7 = vmul.f32 %v2416_v62, %v4434_v22 }
 0x6fd   : > { %v2420_v12 = vmul.f32 0.5, %v2419_v55 }
 0x6fe   : > { %v2445_v13 = vmul.f32 %v3364_v28, %v2438_v7 }
 0x6ff   : > { %v2421_v14 = vsub.f32 1.5, %v2420_v12  ;;  %v3240_v12 = vld [vmem:[%s3868_s18 + $0x10] sm:$0xff] }
 0x700   : > { %v3443_v11 = vpop.eup %3442  ;;  %v4470_v9 = vadd.f32 %v3365_v5, %v2445_v13  ;;  %2728 = vmatpush.bf16.msrb.mxu1 %v3240_v12 }
 0x701   : > { %v2422_v10 = vmul.f32 %v3441_v51, %v2421_v14  ;;  %v2428_v60 = vmul.f32 %v3443_v11, %v2396_v38  ;;  %vm2434_vm12 = vweird.f32 %v3443_v11 }
 0x702   : > { %v2455_v44 = vpack.c.bf16 %v4470_v9, %v4468_v1  ;;  %vm2435_vm3 = vmor %vm2433_vm15, %vm2434_vm12 }
 0x703   : > { %v2429_v20 = vmul.f32 %v3443_v11, %v2428_v60  ;;  %v2426_v42 = vsel %vm2425_vm11, %v3441_v51, %v2422_v10 }
 0x704   : > { %3195 = vmatmul.msk.bf16.vlgmr.msra.gmra.mxu0 %vm1294_vm2, %v2455_v44  ;;  %v2439_v8 = vmul.f32 %v2426_v42, %v4440_v25  ;;  %v3366_v25 = vld [vmem:[%s859_s14] ss:$0 sm:$0xff] }
 0x705   : > { %v2430_v35 = vmul.f32 0.5, %v2429_v20 }
 0x706   : > { %v2446_v26 = vmul.f32 %v3364_v28, %v2439_v8 }
 0x707   : > { %v2431_v53 = vsub.f32 1.5, %v2430_v35  ;;  %v3239_v35 = vld [vmem:[%s3868_s18 + $0x8] sm:$0xff] }
 0x708   : > { %v4477_v0 = vadd.f32 %v3365_v5, %v2446_v26  ;;  %2729 = vmatpush.bf16.msrb.mxu1 %v3239_v35 }
 0x709   : > { %v2432_v22 = vmul.f32 %v3443_v11, %v2431_v53 }
 0x70b   : > { %v2436_v23 = vsel %vm2435_vm3, %v3443_v11, %v2432_v22 }
 0x70c   : > { %v2440_v2 = vmul.f32 %v2436_v23, %v4446_v16 }
 0x70e   : > { %v2447_v34 = vmul.f32 %v3364_v28, %v2440_v2 }
 0x710   : > { %v4479_v29 = vadd.f32 %v3365_v5, %v2447_v34 }
 0x712   : > { %v2456_v17 = vpack.c.bf16 %v4479_v29, %v4477_v0 }
 0x714   : > { %3196 = vmatmul.msk.bf16.gmra.mxu0 %vm1294_vm2, %v2456_v17 }
 0x781   : > { %v2492_v19 = vpop.f32.mrf.mxu0 }
 0x782   : > { %v4489_v37 = vadd.f32 %v3366_v25, %v2492_v19  ;;  %v3238_v19 = vld [vmem:[%s3868_s18] sm:$0xff] }
 0x783   : > { %2730 = vmatpush.bf16.msrb.mxu1 %v3238_v19 }
 0x784   : > { %v4492_v16 = vmul.f32 0.70710677, %v4489_v37 }
 0x786   : > { %v2510_v57 = vmul.f32 %v4492_v16, %v4492_v16 }
 0x788   : > { %v4496_v39 = vmin.f32 %v2510_v57, 16.0 }
 0x789   : > { %v2494_v41 = vpop.f32.mrf.mxu0 }
 0x78a   : > { %v2512_v61 = vmul.f32 2.1237322e-06, %v4496_v39  ;;  %v2523_v43 = vmul.f32 3.8918573e-05, %v4496_v39  ;;  %v4500_v48 = vadd.f32 %v3366_v25, %v2494_v41 }
 0x78c   : > { %v2513_v45 = vadd.f32 0.00028619796, %v2512_v61  ;;  %v2524_v33 = vadd.f32 0.001143296, %v2523_v43  ;;  %v4503_v30 = vmul.f32 0.70710677, %v4500_v48 }
 0x78e   : > { %v2525_v49 = vmul.f32 %v2524_v33, %v4496_v39  ;;  %v2514_v36 = vmul.f32 %v2513_v45, %v4496_v39  ;;  %v2550_v4 = vmul.f32 %v4503_v30, %v4503_v30 }
 0x790   : > { %v2526_v24 = vadd.f32 0.014752088, %v2525_v49  ;;  %v4509_v18 = vmin.f32 %v2550_v4, 16.0  ;;  %v2515_v32 = vadd.f32 0.0036580483, %v2514_v36 }
 0x791   : > { %v2497_v52 = vpop.f32.mrf.mxu0 }
 0x792   : > { %v2527_v50 = vmul.f32 %v2526_v24, %v4496_v39  ;;  %v4512_v21 = vadd.f32 %v3366_v25, %v2497_v52  ;;  %v2552_v56 = vmul.f32 2.1237322e-06, %v4509_v18  ;;  %v2563_v40 = vmul.f32 3.8918573e-05, %v4509_v18 }
 0x793   : > { %v2516_v51 = vmul.f32 %v2515_v32, %v4496_v39 }
 0x794   : > { %v2528_v59 = vadd.f32 0.112945676, %v2527_v50  ;;  %v2553_v47 = vadd.f32 0.00028619796, %v2552_v56  ;;  %v2564_v46 = vadd.f32 0.001143296, %v2563_v40 }
 0x795   : > { %v4517_v54 = vmul.f32 0.70710677, %v4512_v21  ;;  %v2517_v13 = vadd.f32 0.05243302, %v2516_v51 }
 0x796   : > { %v2529_v3 = vmul.f32 %v2528_v59, %v4496_v39  ;;  %v2554_v28 = vmul.f32 %v2553_v47, %v4509_v18  ;;  %v2565_v58 = vmul.f32 %v2564_v46, %v4509_v18 }
 0x797   : > { %v2590_v38 = vmul.f32 %v4517_v54, %v4517_v54  ;;  %v2518_v53 = vmul.f32 %v2517_v13, %v4496_v39 }
 0x798   : > { %v2530_v31 = vadd.f32 0.4994258, %v2529_v3  ;;  %v2555_v63 = vadd.f32 0.0036580483, %v2554_v28  ;;  %v2566_v62 = vadd.f32 0.014752088, %v2565_v58 }
 0x799   : > { %v4526_v55 = vmin.f32 %v2590_v38, 16.0  ;;  %v2499_v5 = vpop.f32.mrf.mxu0  ;;  %v2519_v57 = vadd.f32 0.18741608, %v2518_v53 }
 0x79a   : > { %v2531_v6 = vmul.f32 %v2530_v31, %v4496_v39  ;;  %v4529_v7 = vadd.f32 %v3366_v25, %v2499_v5  ;;  %v2556_v14 = vmul.f32 %v2555_v63, %v4509_v18  ;;  %v2567_v11 = vmul.f32 %v2566_v62, %v4509_v18 }
 0x79b   : > { %v2592_v10 = vmul.f32 2.1237322e-06, %v4526_v55  ;;  %v2603_v44 = vmul.f32 3.8918573e-05, %v4526_v55  ;;  %v2520_v59 = vmul.f32 %v2519_v57, %v4496_v39 }
 0x79c   : > { %v2532_v60 = vadd.f32 1.0, %v2531_v6  ;;  %v4537_v20 = vmul.f32 0.70710677, %v4529_v7  ;;  %v2568_v42 = vadd.f32 0.112945676, %v2567_v11 }
 0x79d   : > { %v2557_v8 = vadd.f32 0.05243302, %v2556_v14  ;;  %v2593_v23 = vadd.f32 0.00028619796, %v2592_v10  ;;  %v2604_v2 = vadd.f32 0.001143296, %v2603_v44 }
 0x79e   : > { %3444 = vrcp.f32 %v2532_v60  ;;  %v2569_v22 = vmul.f32 %v2568_v42, %v4509_v18  ;;  %v2630_v26 = vmul.f32 %v4537_v20, %v4537_v20  ;;  %v2544_v40 = vand.u32 2147483648, %v2532_v60 }
 0x79f   : > { %v2605_v17 = vmul.f32 %v2604_v2, %v4526_v55  ;;  %v2558_v41 = vmul.f32 %v2557_v8, %v4509_v18  ;;  %v2594_v45 = vmul.f32 %v2593_v23, %v4526_v55  ;;  %v2542_v58 = vand.u32 2147483647, %v2532_v60 }
 0x7a0   : > { %v2570_v34 = vadd.f32 0.4994258, %v2569_v22  ;;  %v4545_v25 = vmin.f32 %v2630_v26, 16.0  ;;  %vm2538_vm1 = vweird.f32 %v2532_v60  ;;  %v2521_v62 = vadd.f32 1.1283791, %v2520_v59 }
 0x7a1   : > { %v2606_v33 = vadd.f32 0.014752088, %v2605_v17  ;;  %v2559_v47 = vadd.f32 0.18741608, %v2558_v41  ;;  %v2595_v46 = vadd.f32 0.0036580483, %v2594_v45 }
 0x7a2   : > { %v2571_v61 = vmul.f32 %v2570_v34, %v4509_v18  ;;  %v2632_v49 = vmul.f32 2.1237322e-06, %v4545_v25  ;;  %v2643_v36 = vmul.f32 3.8918573e-05, %v4545_v25  ;;  %v2545_v14 = vor.u32 1.1754944e-38, %v2544_v40 }
 0x7a3   : > { %v2607_v52 = vmul.f32 %v2606_v33, %v4526_v55  ;;  %v2560_v5 = vmul.f32 %v2559_v47, %v4509_v18  ;;  %v2596_v39 = vmul.f32 %v2595_v46, %v4526_v55  ;;  %vm2543_vm6 = vcmp.eq.f32.partialorder %v2542_v58, 8.507059e+37 }
 0x7a4   : > { %v3445_v43 = vpop.eup %3444  ;;  %v2572_v24 = vadd.f32 1.0, %v2571_v61  ;;  %v2633_v50 = vadd.f32 0.00028619796, %v2632_v49  ;;  %v2644_v32 = vadd.f32 0.001143296, %v2643_v36  ;;  %v2522_v53 = vmul.f32 %v2521_v62, %v4492_v16 }
 0x7a5   : > { %v2534_v4 = vmul.f32 %v3445_v43, %v2532_v60  ;;  %v2608_v3 = vadd.f32 0.112945676, %v2607_v52  ;;  %vm2539_vm0 = vweird.f32 %v3445_v43  ;;  %v2561_v8 = vadd.f32 1.1283791, %v2560_v5 }
 0x7a6   : > { %3446 = vrcp.f32 %v2572_v24  ;;  %v2634_v51 = vmul.f32 %v2633_v50, %v4545_v25  ;;  %v2645_v28 = vmul.f32 %v2644_v32, %v4545_v25  ;;  %vm2540_vm5 = vmor %vm2538_vm1, %vm2539_vm0  ;;  %v2597_v18 = vadd.f32 0.05243302, %v2596_v39 }
 0x7a7   : > { %v2535_v56 = vsub.f32 1.0, %v2534_v4  ;;  %v2609_v38 = vmul.f32 %v2608_v3, %v4526_v55  ;;  %v2584_v23 = vand.u32 2147483648, %v2572_v24  ;;  %v2582_v57 = vand.u32 2147483647, %v2572_v24 }
 0x7a8   : > { %v2646_v63 = vadd.f32 0.014752088, %v2645_v28  ;;  %v2635_v11 = vadd.f32 0.0036580483, %v2634_v51  ;;  %vm2578_vm8 = vweird.f32 %v2572_v24  ;;  %v2598_v61 = vmul.f32 %v2597_v18, %v4526_v55 }
 0x7a9   : > { %v2536_v27 = vmul.f32 %v3445_v43, %v2535_v56  ;;  %v2610_v6 = vadd.f32 0.4994258, %v2609_v38  ;;  %v2562_v16 = vmul.f32 %v2561_v8, %v4503_v30  ;;  %v2585_v45 = vor.u32 1.1754944e-38, %v2584_v23 }
 0x7aa   : > { %v2647_v10 = vmul.f32 %v2646_v63, %v4545_v25  ;;  %v2636_v26 = vmul.f32 %v2635_v11, %v4545_v25  ;;  %vm2583_vm10 = vcmp.eq.f32.partialorder %v2582_v57, 8.507059e+37  ;;  %v2599_v32 = vadd.f32 0.18741608, %v2598_v61 }
 0x7ab   : > { %v2537_v31 = vadd.f32 %v3445_v43, %v2536_v27  ;;  %v2611_v35 = vmul.f32 %v2610_v6, %v4526_v55  ;;  %v2502_v30 = vmul.f32 0.5, %v4489_v37  ;;  %v2503_v3 = vmul.f32 0.5, %v4500_v48 }
 0x7ac   : > { %v3447_v12 = vpop.eup %3446  ;;  %v2648_v60 = vadd.f32 0.112945676, %v2647_v10  ;;  %v2637_v33 = vadd.f32 0.05243302, %v2636_v26  ;;  %v2600_v51 = vmul.f32 %v2599_v32, %v4526_v55  ;;  %v2505_v57 = vmul.f32 0.5, %v4529_v7 }
 0x7ad   : > { %v2541_v13 = vsel %vm2540_vm5, %v3445_v43, %v2537_v31  ;;  %v2574_v44 = vmul.f32 %v3447_v12, %v2572_v24  ;;  %v2612_v2 = vadd.f32 1.0, %v2611_v35  ;;  %vm2579_vm7 = vweird.f32 %v3447_v12 }
 0x7ae   : > { %v2546_v42 = vsel %vm2543_vm6, %v2545_v14, %v2541_v13  ;;  %v2649_v34 = vmul.f32 %v2648_v60, %v4545_v25  ;;  %vm2580_vm9 = vmor %vm2578_vm8, %vm2579_vm7  ;;  %v2638_v24 = vmul.f32 %v2637_v33, %v4545_v25  ;;  %v2601_v6 = vadd.f32 1.1283791, %v2600_v51 }
 0x7af   : > { %v2575_v22 = vsub.f32 1.0, %v2574_v44  ;;  %v2547_v17 = vmul.f32 %v2546_v42, %v2522_v53  ;;  %3448 = vrcp.f32 %v2612_v2  ;;  %v2622_v58 = vand.u32 2147483647, %v2612_v2 }
 0x7b0   : > { %v2650_v43 = vadd.f32 0.4994258, %v2649_v34  ;;  %v2624_v38 = vand.u32 2147483648, %v2612_v2  ;;  %v2639_v31 = vadd.f32 0.18741608, %v2638_v24  ;;  %vm2618_vm14 = vweird.f32 %v2612_v2 }
 0x7b1   : > { %v2576_v19 = vmul.f32 %v3447_v12, %v2575_v22  ;;  %v3197_v49 = vclamps-f32 %v2547_v17, 1.0  ;;  %vm2623_vm12 = vcmp.eq.f32.partialorder %v2622_v58, 8.507059e+37  ;;  %v2602_v10 = vmul.f32 %v2601_v6, %v4517_v54 }
 0x7b2   : > { %v2651_v4 = vmul.f32 %v2650_v43, %v4545_v25  ;;  %v2625_v13 = vor.u32 1.1754944e-38, %v2624_v38  ;;  %v2640_v48 = vmul.f32 %v2639_v31, %v4545_v25 }
 0x7b3   : > { %v2577_v41 = vadd.f32 %v3447_v12, %v2576_v19  ;;  %v2670_v59 = vadd.f32 1.0, %v3197_v49  ;;  %v2504_v19 = vmul.f32 0.5, %v4512_v21 }
 0x7b4   : > { %v2652_v56 = vadd.f32 1.0, %v2651_v4  ;;  %v2641_v42 = vadd.f32 1.1283791, %v2640_v48 }
 0x7b5   : > { %v2581_v36 = vsel %vm2580_vm9, %v3447_v12, %v2577_v41  ;;  %v3449_v40 = vpop.eup %3448  ;;  %v2674_v63 = vmul.f32 %v2670_v59, %v2502_v30 }
 0x7b6   : > { %v2586_v52 = vsel %vm2583_vm10, %v2585_v45, %v2581_v36  ;;  %v2614_v46 = vmul.f32 %v3449_v40, %v2612_v2  ;;  %3450 = vrcp.f32 %v2652_v56  ;;  %vm2619_vm4 = vweird.f32 %v3449_v40 }
 0x7b7   : > { %v2587_v50 = vmul.f32 %v2586_v52, %v2562_v16  ;;  %vm2620_vm11 = vmor %vm2618_vm14, %vm2619_vm4  ;;  %v2664_v35 = vand.u32 2147483648, %v2652_v56  ;;  %v2662_v8 = vand.u32 2147483647, %v2652_v56  ;;  %vm2658_vm3 = vweird.f32 %v2652_v56 }
 0x7b8   : > { %v2615_v28 = vsub.f32 1.0, %v2614_v46  ;;  %v2642_v23 = vmul.f32 %v2641_v42, %v4537_v20  ;;  %v3367_v20 = vld [vmem:[%s867_s28] ss:$0 sm:$0xff] }
 0x7b9   : > { %v3198_v47 = vclamps-f32 %v2587_v50, 1.0  ;;  %v2665_v18 = vor.u32 1.1754944e-38, %v2664_v35  ;;  %vm2663_vm1 = vcmp.eq.f32.partialorder %v2662_v8, 8.507059e+37 }
 0x7ba   : > { %v2616_v5 = vmul.f32 %v3449_v40, %v2615_v28 }
 0x7bb   : > { %v2671_v27 = vadd.f32 1.0, %v3198_v47 }
 0x7bc   : > { %v2617_v12 = vadd.f32 %v3449_v40, %v2616_v5  ;;  %v3451_v37 = vpop.eup %3450 }
 0x7bd   : > { %v2675_v62 = vmul.f32 %v2671_v27, %v2503_v3  ;;  %v2654_v55 = vmul.f32 %v3451_v37, %v2652_v56  ;;  %vm2659_vm15 = vweird.f32 %v3451_v37 }
 0x7be   : > { %v2621_v14 = vsel %vm2620_vm11, %v3449_v40, %v2617_v12  ;;  %vm2660_vm0 = vmor %vm2658_vm3, %vm2659_vm15 }
 0x7bf   : > { %v2678_v39 = vpack.c.bf16 %v2675_v62, %v2674_v63  ;;  %v2626_v11 = vsel %vm2623_vm12, %v2625_v13, %v2621_v14  ;;  %v2655_v44 = vsub.f32 1.0, %v2654_v55 }
 0x7c0   : > { %v2627_v60 = vmul.f32 %v2626_v11, %v2602_v10 }
 0x7c1   : > { %3217 = vmatmul.msk.bf16.vlgmr.msrb.gmra.mxu1 %vm2716_vm13, %v2678_v39  ;;  %v2656_v53 = vmul.f32 %v3451_v37, %v2655_v44 }
 0x7c2   : > { %v3199_v25 = vclamps-f32 %v2627_v60, 1.0 }
 0x7c3   : > { %v2657_v22 = vadd.f32 %v3451_v37, %v2656_v53 }
 0x7c4   : > { %v2672_v54 = vadd.f32 1.0, %v3199_v25 }
 0x7c5   : > { %v2661_v2 = vsel %vm2660_vm0, %v3451_v37, %v2657_v22 }
 0x7c6   : > { %v2666_v26 = vsel %vm2663_vm1, %v2665_v18, %v2661_v2  ;;  %v2676_v61 = vmul.f32 %v2672_v54, %v2504_v19  ;;  %v3368_v2 = vld [vmem:[%s870_s9] ss:$0 sm:$0xff]  ;;  %s4736_s9 = sld [smem:[#allocation16_spill]] }
 0x7c7   : > { %v2667_v34 = vmul.f32 %v2666_v26, %v2642_v23 }
 0x7c9   : > { %v3200_v17 = vclamps-f32 %v2667_v34, 1.0 }
 0x7cb   : > { %v2673_v41 = vadd.f32 1.0, %v3200_v17  ;;  %v3369_v17 = vld [vmem:[%s873_s10] ss:$0 sm:$0xff]  ;;  %s3625_s10 = smov [#allocation9]  }
 0x7cc   : > { %s2863_s13 = sshll.u32 %s3625_s10, 4  ;;  %s4738_s16 = sadd.s32 4294967295, %s4736_s9   ;;  %s2864_s13 = int_to_ptr.vmem [resolvable:$true] %s2863_s13 }
 0x7cd   : > { %v2677_v43 = vmul.f32 %v2673_v41, %v2505_v57  ;;  %p3277_p1 = scmp.eq.s32.totalorder %s4738_s16, 1 }
 0x7cf   : > { %v2679_v16 = vpack.c.bf16 %v2677_v43, %v2676_v61 }
 0x7d1   : > { %3218 = vmatmul.msk.bf16.gmra.mxu1 %vm2716_vm13, %v2679_v16 }
 0x83e   : > { %v2732_v45 = vpop.f32.mrf.mxu1 }
 0x83f   : > { %v2733_v33 = vadd.f32 %v3367_v20, %v2732_v45 }
 0x841   : > { %v2742_v49 = vadd.f32 %v2733_v33, %v4468_v1 }
 0x843   : > { %v2748_v36 = vsel %vm1294_vm2, %v2742_v49, 0.0 }
 0x844   : > { %2749 = vadd.xlane.f32.xlu1 %v2748_v36 }
 0x846   : > { %v2734_v21 = vpop.f32.mrf.mxu1 }
 0x847   : > { %v2735_v7 = vadd.f32 %v3367_v20, %v2734_v21 }
 0x849   : > { %v2743_v4 = vadd.f32 %v2735_v7, %v4470_v9 }
 0x84b   : > { %v2751_v52 = vsel %vm1294_vm2, %v2743_v4, 0.0 }
 0x84c   : > { %2752 = vadd.xlane.f32.xlu2 %v2751_v52 }
 0x84e   : > { %v2737_v50 = vpop.f32.mrf.mxu1 }
 0x84f   : > { %v2738_v32 = vadd.f32 %v3367_v20, %v2737_v50 }
 0x851   : > { %v2744_v56 = vadd.f32 %v2738_v32, %v4477_v0 }
 0x853   : > { %v2754_v40 = vsel %vm1294_vm2, %v2744_v56, 0.0 }
 0x854   : > { %2755 = vadd.xlane.f32.xlu0 %v2754_v40 }
 0x856   : > { %v2739_v24 = vpop.f32.mrf.mxu1 }
 0x857   : > { %v2740_v59 = vadd.f32 %v3367_v20, %v2739_v24 }
 0x859   : > { %v2745_v1 = vadd.f32 %v2740_v59, %v4479_v29 }
 0x85b   : > { %v2757_v47 = vsel %vm1294_vm2, %v2745_v1, 0.0 }
 0x85c   : > { %2758 = vadd.xlane.f32.xlu1 %v2757_v47 }
 0x8b7   : > { %v2750_v46 = vpop.xlane.xlu1 %2749 }
 0x8b8   : > { %v2760_v9 = vmul.f32 %v2750_v46, %v4429_v15 }
 0x8ba   : > { %v2764_v30 = vsub.f32 %v2742_v49, %v2760_v9 }
 0x8bc   : > { %v2768_v3 = vmul.f32 %v2764_v30, %v2764_v30 }
 0x8be   : > { %v2772_v27 = vsel %vm1294_vm2, %v2768_v3, 0.0 }
 0x8bf   : > { %v2753_v51 = vpop.xlane.xlu2 %2752  ;;  %2773 = vadd.xlane.f32.xlu2 %v2772_v27 }
 0x8c0   : > { %v2761_v0 = vmul.f32 %v2753_v51, %v4429_v15 }
 0x8c2   : > { %v2765_v28 = vsub.f32 %v2743_v4, %v2761_v0 }
 0x8c4   : > { %v2769_v58 = vmul.f32 %v2765_v28, %v2765_v28 }
 0x8c6   : > { %v2775_v38 = vsel %vm1294_vm2, %v2769_v58, 0.0 }
 0x8c7   : > { %2776 = vadd.xlane.f32.xlu0 %v2775_v38  ;;  %v2756_v29 = vpop.xlane.xlu0 %2755 }
 0x8c8   : > { %v2762_v31 = vmul.f32 %v2756_v29, %v4429_v15 }
 0x8ca   : > { %v4597_v63 = vsub.f32 %v2744_v56, %v2762_v31 }
 0x8cc   : > { %v2770_v62 = vmul.f32 %v4597_v63, %v4597_v63 }
 0x8ce   : > { %v2778_v5 = vsel %vm1294_vm2, %v2770_v62, 0.0 }
 0x8cf   : > { %2779 = vadd.xlane.f32.xlu1 %v2778_v5  ;;  %v2759_v39 = vpop.xlane.xlu1 %2758 }
 0x8d0   : > { %v2763_v6 = vmul.f32 %v2759_v39, %v4429_v15 }
 0x8d2   : > { %v4603_v12 = vsub.f32 %v2745_v1, %v2763_v6 }
 0x8d4   : > { %v2771_v37 = vmul.f32 %v4603_v12, %v4603_v12 }
 0x8d6   : > { %v2781_v13 = vsel %vm1294_vm2, %v2771_v37, 0.0 }
 0x8d7   : > { %2782 = vadd.xlane.f32.xlu2 %v2781_v13 }
 0x932   : > { %v2774_v48 = vpop.xlane.xlu2 %2773 }
 0x933   : > { %v2784_v14 = vmul.f32 %v2774_v48, %v4429_v15 }
 0x935   : > { %v2788_v55 = vadd.f32 1e-12, %v2784_v14 }
 0x937   : > { %3452 = vrsqrt.f32 %v2788_v55  ;;  %vm2798_vm6 = vweird.f32 %v2788_v55 }
 0x93a   : > { %v2777_v11 = vpop.xlane.xlu0 %2776 }
 0x93b   : > { %v2785_v10 = vmul.f32 %v2777_v11, %v4429_v15 }
 0x93d   : > { %v3453_v44 = vpop.eup %3452  ;;  %v2789_v42 = vadd.f32 1e-12, %v2785_v10 }
 0x93e   : > { %v2793_v35 = vmul.f32 %v3453_v44, %v2788_v55  ;;  %vm2799_vm5 = vweird.f32 %v3453_v44 }
 0x93f   : > { %3454 = vrsqrt.f32 %v2789_v42  ;;  %vm2800_vm7 = vmor %vm2798_vm6, %vm2799_vm5  ;;  %vm2808_vm9 = vweird.f32 %v2789_v42 }
 0x940   : > { %v2794_v60 = vmul.f32 %v3453_v44, %v2793_v35 }
 0x942   : > { %v2795_v53 = vmul.f32 0.5, %v2794_v60  ;;  %v2780_v23 = vpop.xlane.xlu1 %2779 }
 0x943   : > { %v2786_v26 = vmul.f32 %v2780_v23, %v4429_v15 }
 0x944   : > { %v2796_v8 = vsub.f32 1.5, %v2795_v53 }
 0x945   : > { %v3455_v22 = vpop.eup %3454  ;;  %v2790_v57 = vadd.f32 1e-12, %v2786_v26 }
 0x946   : > { %v2797_v18 = vmul.f32 %v3453_v44, %v2796_v8  ;;  %v2803_v25 = vmul.f32 %v3455_v22, %v2789_v42  ;;  %vm2809_vm8 = vweird.f32 %v3455_v22 }
 0x947   : > { %3456 = vrsqrt.f32 %v2790_v57  ;;  %vm2810_vm10 = vmor %vm2808_vm9, %vm2809_vm8  ;;  %vm2818_vm13 = vweird.f32 %v2790_v57 }
 0x948   : > { %v2801_v34 = vsel %vm2800_vm7, %v3453_v44, %v2797_v18  ;;  %v2804_v54 = vmul.f32 %v3455_v22, %v2803_v25 }
 0x949   : > { %v2832_v19 = vmul.f32 %v2801_v34, %v2764_v30 }
 0x94a   : > { %v2805_v41 = vmul.f32 0.5, %v2804_v54  ;;  %v2783_v45 = vpop.xlane.xlu2 %2782 }
 0x94b   : > { %v2839_v61 = vmul.f32 %v3368_v2, %v2832_v19  ;;  %v2787_v33 = vmul.f32 %v2783_v45, %v4429_v15 }
 0x94c   : > { %v2806_v43 = vsub.f32 1.5, %v2805_v41 }
 0x94d   : > { %v2846_v16 = vadd.f32 %v3369_v17, %v2839_v61  ;;  %v3457_v36 = vpop.eup %3456  ;;  %v2791_v7 = vadd.f32 1e-12, %v2787_v33 }
 0x94e   : > { %v2807_v20 = vmul.f32 %v3455_v22, %v2806_v43  ;;  %v2813_v4 = vmul.f32 %v3457_v36, %v2790_v57  ;;  %vm2819_vm4 = vweird.f32 %v3457_v36 }
 0x94f   : > { %2850 = vst.msk [vmem:[#allocation9] sm:$0xff] %vm1294_vm2, %v2846_v16  ;;  %3458 = vrsqrt.f32 %v2791_v7  ;;  %vm2820_vm14 = vmor %vm2818_vm13, %vm2819_vm4  ;;  %vm2828_vm12 = vweird.f32 %v2791_v7 }
 0x950   : > { %v2811_v49 = vsel %vm2810_vm10, %v3455_v22, %v2807_v20  ;;  %v2814_v50 = vmul.f32 %v3457_v36, %v2813_v4 }
 0x951   : > { %v2833_v21 = vmul.f32 %v2811_v49, %v2765_v28 }
 0x952   : > { %v2815_v56 = vmul.f32 0.5, %v2814_v50 }
 0x953   : > { %v2840_v52 = vmul.f32 %v3368_v2, %v2833_v21 }
 0x954   : > { %v2816_v40 = vsub.f32 1.5, %v2815_v56 }
 0x955   : > { %v2847_v32 = vadd.f32 %v3369_v17, %v2840_v52  ;;  %v3459_v24 = vpop.eup %3458 }
 0x956   : > { %v2817_v59 = vmul.f32 %v3457_v36, %v2816_v40  ;;  %v2823_v1 = vmul.f32 %v3459_v24, %v2791_v7  ;;  %vm2829_vm11 = vweird.f32 %v3459_v24 }
 0x957   : > { %2851 = vst.msk [vmem:[#allocation9 + $0x8] sm:$0xff] %vm1294_vm2, %v2847_v32  ;;  %vm2830_vm15 = vmor %vm2828_vm12, %vm2829_vm11 }
 0x958   : > { %v2821_v15 = vsel %vm2820_vm14, %v3457_v36, %v2817_v59  ;;  %v2824_v47 = vmul.f32 %v3459_v24, %v2823_v1 }
 0x959   : > { %v2834_v46 = vmul.f32 %v2821_v15, %v4597_v63 }
 0x95a   : > { %v2825_v9 = vmul.f32 0.5, %v2824_v47 }
 0x95b   : > { %v2841_v30 = vmul.f32 %v3368_v2, %v2834_v46 }
 0x95c   : > { %v2826_v3 = vsub.f32 1.5, %v2825_v9 }
 0x95d   : > { %v2848_v27 = vadd.f32 %v3369_v17, %v2841_v30 }
 0x95e   : > { %v2827_v51 = vmul.f32 %v3459_v24, %v2826_v3 }
 0x95f   : > { %2852 = vst.msk [vmem:[#allocation9 + $0x10] sm:$0xff] %vm1294_vm2, %v2848_v27 }
 0x960   : > { %v2831_v0 = vsel %vm2830_vm15, %v3459_v24, %v2827_v51 }
 0x961   : > { %v2835_v28 = vmul.f32 %v2831_v0, %v4603_v12 }
 0x963   : > { %v2842_v58 = vmul.f32 %v3368_v2, %v2835_v28 }
 0x965   : > { %v2849_v38 = vadd.f32 %v3369_v17, %v2842_v58 }
 0x967   : > { %2853 = vst.msk [vmem:[#allocation9 + $0x18] sm:$0xff] %vm1294_vm2, %v2849_v38 }
 0x968   : > { %3266 = dma.vmem_to_hbm [thread:$0]  (%p3277_p1), %s2864_s13, 512, %s2866_s25, [#allocation6], %s3626_s27, %s3626_s27, %s3621_s21  }
 0x969   : > { %3585 = dma.done.wait (%p3277_p1), [#allocation6], 512  }
 0x96a   : > { %3587 = vsyncadd (%p3277_p1), [#allocation6], 4294966784 }
 0x96b PF: > { %s4739_s1 = sld [smem:[#allocation16_spill]] }
 0x96c   : > { %s4740_s24 = sld [smem:[#allocation13_spill]] }
 0x96d   : > { %s4741_s25 = sld [smem:[#allocation14_spill]] }
 0x96e   : > { %s4742_s26 = sld [smem:[#allocation18_spill]] }
 0x96f   : > { %s4743_s27 = sld [smem:[#allocation15_spill]] }
 0x970   : > { %s4744_s28 = sld [smem:[#allocation17_spill]] }
 0x971   : > { %s34_s29 = sadd.s32 1, %s4739_s1  }
 0x972   : > { %p31_p2 = scmp.ge.s32.totalorder %s34_s29, 4  }
 0x974   :  { %33 = sbr.rel (!%p31_p2) target bundleno = 22 (0x16), region = 188 }
 0x979   :  { %2882 = vsyncpa [#allocation5], 1 }
 0x97a   :  { %2884 = vsyncpa [#allocation5 + $0x1], 1 }
 0x97b   :  { %2885 = vsyncpa [#allocation8], 1 }
 0x97c   :  { %2887 = vsyncpa [#allocation8 + $0x1], 1 }
 0x97d   :  { %2888 = vsyncpa [#allocation6], 1 }
 0x97e   :  { %2890 = vsyncpa [#allocation6 + $0x1], 1 }

</bundles_post_ra>
